<compile_context>
chip_gen: v5e
topology: v5e:2x2
jax: 0.10.0
libtpu: 0.0.40
codegen_flags: <defaults>
</compile_context>

<pallas_src>
import math
from functools import partial

import jax
import jax.numpy as jnp
from jax.experimental import pallas as pl
from jax.experimental.pallas import tpu as pltpu  # noqa: F401  (TPU backend)


# ------------------------------ shared math -----------------------------------


def _layer_norm(x, gamma, beta, eps=1e-5):
    mu = jnp.mean(x, axis=-1, keepdims=True)
    var = jnp.mean((x - mu) ** 2, axis=-1, keepdims=True)
    return (x - mu) * jax.lax.rsqrt(var + eps) * gamma + beta


# ------------------------------ Pallas kernel ---------------------------------


def _bottleneck_kernel(x_ref, pe_ref,
                       wq_ref, wk_ref, wv_ref, bq_ref, bk_ref, bv_ref,
                       wo_ref, bo_ref,
                       w1_ref, b1_ref, w2_ref, b2_ref,
                       g1_ref, be1_ref, g2_ref, be2_ref,
                       o_ref, *, num_heads, num_layers, batch, seq, mm_dtype):
    """Fused PE-add + `num_layers` TransformerEncoderLayers (post-LN, ReLU).

    x_ref holds all B*S rows.  Weights are stacked over a leading layer axis
    (and a head axis for attention) and pre-transposed so y = x @ W + b matches
    PyTorch's y = x @ W_pt.T + b.  1/sqrt(head_dim) is folded into W_q / b_q.
    """
    R, C = x_ref.shape
    hd = C // num_heads

    def mm(a, b):  # MXU dot with f32 accumulation; operands optionally bf16
        return jnp.dot(a.astype(mm_dtype), b.astype(mm_dtype),
                       preferred_element_type=jnp.float32)

    # ---- positional encoding (pe pre-tiled to (B*S, C) host-side) ----
    x = x_ref[...].astype(jnp.float32) + pe_ref[...]            # (B*S, C)

    # Static unroll over layers is fine at 2 layers.
    # TODO(synk): move to a grid axis / fori_loop if num_layers grows.
    for l in range(num_layers):
        # ------------------- multi-head self-attention -------------------
        attn = None
        for h in range(num_heads):                              # H small, static
            # Per-head projections: head split lives in the (host-prepared)
            # weight refs, so there is NO in-kernel lane slicing.
            q = mm(x, wq_ref[l, h]) + bq_ref[l, h]              # (R, hd), scaled
            k = mm(x, wk_ref[l, h]) + bk_ref[l, h]              # (R, hd)
            v = mm(x, wv_ref[l, h]) + bv_ref[l, h]              # (R, hd)

            # Leading-dim split only (layout preserving): (B*S, hd)->(B, S, hd)
            q3 = q.reshape(batch, seq, hd)
            k3 = k.reshape(batch, seq, hd)
            v3 = v.reshape(batch, seq, hd)

            # Batched-over-B contractions (no explicit transpose, no per-batch
            # unroll).
            s = jnp.einsum('bqd,bkd->bqk', q3.astype(mm_dtype),
                           k3.astype(mm_dtype),
                           preferred_element_type=jnp.float32)   # (B, S, S)
            s = s - jnp.max(s, axis=-1, keepdims=True)
            p = jnp.exp(s)
            p = p / jnp.sum(p, axis=-1, keepdims=True)           # exact softmax

            ctx = jnp.einsum('bqk,bkd->bqd', p.astype(mm_dtype),
                             v3.astype(mm_dtype),
                             preferred_element_type=jnp.float32)  # (B, S, hd)

            # Head output goes straight through its slice of the output
            # projection; accumulate — no concat.
            part = mm(ctx.reshape(R, hd), wo_ref[l, h])           # (R, C)
            attn = part if attn is None else attn + part
        attn = attn + bo_ref[l]                                   # (R, C)

        # ---- residual + LayerNorm 1 (post-norm) ----
        x1 = _layer_norm(x + attn, g1_ref[l], be1_ref[l])

        # ---- feed-forward (4*C) with ReLU over all B*S rows ----
        h1 = jnp.maximum(mm(x1, w1_ref[l]) + b1_ref[l], 0.0)      # (R, 4C)
        ff = mm(h1, w2_ref[l]) + b2_ref[l]                        # (R, C)

        # ---- residual + LayerNorm 2 ----
        x = _layer_norm(x1 + ff, g2_ref[l], be2_ref[l])

    o_ref[...] = x.astype(o_ref.dtype)


# --------------------------------- wrapper ------------------------------------


def bottleneck_layer_forward(x, pe_table, stacked_params, num_heads,
                             matmul_dtype=jnp.float32):
    """x: (B, S, C).  stacked_params: dict of per-layer-stacked, head-split,
    pre-transposed weights (see to_kernel_params).  Returns (B, S, C)."""
    B, S, C = x.shape
    R = B * S
    num_layers = stacked_params["wq"].shape[0]

    xr = x.reshape(R, C)
    pe = jnp.tile(pe_table[:S], (B, 1))              # (B*S, C), tiny constant

    kern = partial(_bottleneck_kernel, num_heads=num_heads,
                   num_layers=num_layers, batch=B, seq=S,
                   mm_dtype=matmul_dtype)
    out = pl.pallas_call(
        kern,
        out_shape=jax.ShapeDtypeStruct((R, C), x.dtype),
    )(xr, pe,
      stacked_params["wq"], stacked_params["wk"], stacked_params["wv"],
      stacked_params["bq"], stacked_params["bk"], stacked_params["bv"],
      stacked_params["wo"], stacked_params["bo"],
      stacked_params["w1"], stacked_params["b1"],
      stacked_params["w2"], stacked_params["b2"],
      stacked_params["g1"], stacked_params["be1"],
      stacked_params["g2"], stacked_params["be2"])
    return out.reshape(B, S, C)


# --------------------------- parameter construction ---------------------------


def sinusoidal_pe(max_len, d_model):
    pos = jnp.arange(max_len, dtype=jnp.float32)[:, None]
    div = jnp.exp(jnp.arange(0, d_model, 2, dtype=jnp.float32)
                  * (-math.log(10000.0) / d_model))
    pe = jnp.zeros((max_len, d_model), jnp.float32)
    pe = pe.at[:, 0::2].set(jnp.sin(pos * div))
    pe = pe.at[:, 1::2].set(jnp.cos(pos * div))
    return pe


def init_raw_layer_params(key, C, std=0.02):
    """PyTorch-convention (out, in) parameters for one TransformerEncoderLayer."""
    F = 4 * C
    ks = jax.random.split(key, 6)
    return {
        "in_proj_w": jax.random.normal(ks[0], (3 * C, C), jnp.float32) * std,
        "in_proj_b": jax.random.normal(ks[4], (3 * C,), jnp.float32) * std,
        "out_proj_w": jax.random.normal(ks[1], (C, C), jnp.float32) * std,
        "out_proj_b": jnp.zeros((C,), jnp.float32),
        "lin1_w": jax.random.normal(ks[2], (F, C), jnp.float32) * std,
        "lin1_b": jax.random.normal(ks[5], (F,), jnp.float32) * std,
        "lin2_w": jax.random.normal(ks[3], (C, F), jnp.float32) * std,
        "lin2_b": jnp.zeros((C,), jnp.float32),
        "g1": jnp.ones((C,), jnp.float32), "be1": jnp.zeros((C,), jnp.float32),
        "g2": jnp.ones((C,), jnp.float32), "be2": jnp.zeros((C,), jnp.float32),
    }


def to_kernel_params(raw, C, num_heads):
    """Transpose to (in, out), fold the 1/sqrt(head_dim) scale into Q, and
    split the attention weights per head so the kernel never lane-slices."""
    F = 4 * C
    hd = C // num_heads
    scale = 1.0 / math.sqrt(hd)

    wq = raw["in_proj_w"][:C].T * scale            # (C, C), scale folded
    wk = raw["in_proj_w"][C:2 * C].T
    wv = raw["in_proj_w"][2 * C:].T
    bq = raw["in_proj_b"][:C] * scale
    bk = raw["in_proj_b"][C:2 * C]
    bv = raw["in_proj_b"][2 * C:]

    def split_cols(w):                             # (C, C) -> (H, C, hd)
        return jnp.stack([w[:, h * hd:(h + 1) * hd] for h in range(num_heads)], 0)

    def split_bias(b):                             # (C,) -> (H, 1, hd)
        return b.reshape(num_heads, hd)[:, None, :]

    wo_t = raw["out_proj_w"].T                     # (C, C); rows = head-concat dim
    wo_heads = jnp.stack([wo_t[h * hd:(h + 1) * hd] for h in range(num_heads)], 0)

    return {
        "wq": split_cols(wq), "wk": split_cols(wk), "wv": split_cols(wv),
        "bq": split_bias(bq), "bk": split_bias(bk), "bv": split_bias(bv),
        "wo": wo_heads, "bo": raw["out_proj_b"].reshape(1, C),
        "w1": raw["lin1_w"].T, "b1": raw["lin1_b"].reshape(1, F),
        "w2": raw["lin2_w"].T, "b2": raw["lin2_b"].reshape(1, C),
        "g1": raw["g1"].reshape(1, C), "be1": raw["be1"].reshape(1, C),
        "g2": raw["g2"].reshape(1, C), "be2": raw["be2"].reshape(1, C),
    }


def stack_layer_params(params_list):
    return {k: jnp.stack([p[k] for p in params_list], axis=0)
            for k in params_list[0]}


# ------------------------ pure-JAX reference (sanity) --------------------------


def reference_forward(x, pe_table, raw_layers, num_heads):
    """Direct nn.TransformerEncoderLayer math (batch_first, post-LN, ReLU,
    dropout=0) with PyTorch-convention weights — independent of the kernel's
    host-side weight reorganization."""
    B, S, C = x.shape
    hd = C // num_heads
    y = x + pe_table[:S][None]
    for raw in raw_layers:
        qkv = y @ raw["in_proj_w"].T + raw["in_proj_b"]           # (B, S, 3C)
        q, k, v = jnp.split(qkv, 3, axis=-1)

        def heads(t):
            return t.reshape(B, S, num_heads, hd).transpose(0, 2, 1, 3)

        qh, kh, vh = heads(q), heads(k), heads(v)
        s = jnp.einsum('bhqd,bhkd->bhqk', qh, kh) / math.sqrt(hd)
        p = jax.nn.softmax(s, axis=-1)
        ctx = jnp.einsum('bhqk,bhkd->bhqd', p, vh)
        ctx = ctx.transpose(0, 2, 1, 3).reshape(B, S, C)
        attn = ctx @ raw["out_proj_w"].T + raw["out_proj_b"]

        x1 = _layer_norm(y + attn, raw["g1"], raw["be1"])
        h1 = jnp.maximum(x1 @ raw["lin1_w"].T + raw["lin1_b"], 0.0)
        ff = h1 @ raw["lin2_w"].T + raw["lin2_b"]
        y = _layer_norm(x1 + ff, raw["g2"], raw["be2"])
    return y


# ----------------------------------- main --------------------------------------

if __name__ == "__main__":
    # BottleneckLayer(num_channels=32, bottleneck_layers=2, max_len=16,
    #                 activation="ReLU", num_heads=4, dropout=0.0)
    B, S, C = 2, 8, 32
    num_heads = 4
    bottleneck_layers = 2
    max_len = 16

    key = jax.random.PRNGKey(0)
    k_x, k_p = jax.random.split(key)
    x = jax.random.normal(k_x, (B, S, C), jnp.float32)

    pe_table = sinusoidal_pe(max_len, C)
    layer_keys = jax.random.split(k_p, bottleneck_layers)
    raw_layers = [init_raw_layer_params(k, C) for k in layer_keys]
    stacked = stack_layer_params([to_kernel_params(r, C, num_heads)
                                  for r in raw_layers])

    out = bottleneck_layer_forward(x, pe_table, stacked, num_heads)
    jax.block_until_ready(out)

    assert out.shape == (B, S, C) and out.dtype == jnp.float32
    assert bool(jnp.all(jnp.isfinite(out)))

    # Correctness sanity check against an independent pure-JAX reference.
    ref = reference_forward(x, pe_table, raw_layers, num_heads)
    err = float(jnp.max(jnp.abs(out - ref)))
    assert err < 2e-2, f"kernel/reference mismatch: max abs err = {err}"

    print("KERNEL_OK")
</pallas_src>

<mosaic_0001>
module attributes {stable_mosaic.version = 11 : i64} {
  func.func @_bottleneck_kernel(%arg0: memref<16x32xf32, #tpu.memory_space<vmem>>, %arg1: memref<16x32xf32, #tpu.memory_space<vmem>>, %arg2: memref<2x4x32x8xf32, #tpu.memory_space<vmem>>, %arg3: memref<2x4x32x8xf32, #tpu.memory_space<vmem>>, %arg4: memref<2x4x32x8xf32, #tpu.memory_space<vmem>>, %arg5: memref<2x4x1x8xf32, #tpu.memory_space<vmem>>, %arg6: memref<2x4x1x8xf32, #tpu.memory_space<vmem>>, %arg7: memref<2x4x1x8xf32, #tpu.memory_space<vmem>>, %arg8: memref<2x4x8x32xf32, #tpu.memory_space<vmem>>, %arg9: memref<2x1x32xf32, #tpu.memory_space<vmem>>, %arg10: memref<2x32x128xf32, #tpu.memory_space<vmem>>, %arg11: memref<2x1x128xf32, #tpu.memory_space<vmem>>, %arg12: memref<2x128x32xf32, #tpu.memory_space<vmem>>, %arg13: memref<2x1x32xf32, #tpu.memory_space<vmem>>, %arg14: memref<2x1x32xf32, #tpu.memory_space<vmem>>, %arg15: memref<2x1x32xf32, #tpu.memory_space<vmem>>, %arg16: memref<2x1x32xf32, #tpu.memory_space<vmem>>, %arg17: memref<2x1x32xf32, #tpu.memory_space<vmem>>, %arg18: memref<16x32xf32, #tpu.memory_space<vmem>>) attributes {dimension_semantics = [], scalar_prefetch = 0 : i64, scratch_operands = 0 : i64, tpu.core_type = #tpu.core_type<tc>} {
    %c0 = arith.constant 0 : index
    %c0_0 = arith.constant 0 : index
    %0 = vector.load %arg0[%c0, %c0_0] : memref<16x32xf32, #tpu.memory_space<vmem>>, vector<16x32xf32>
    %c0_1 = arith.constant 0 : index
    %c0_2 = arith.constant 0 : index
    %1 = vector.load %arg1[%c0_1, %c0_2] : memref<16x32xf32, #tpu.memory_space<vmem>>, vector<16x32xf32>
    %2 = arith.addf %0, %1 : vector<16x32xf32>
    %c0_3 = arith.constant 0 : index
    %c0_4 = arith.constant 0 : index
    %c0_5 = arith.constant 0 : index
    %c0_6 = arith.constant 0 : index
    %3 = vector.load %arg2[%c0_3, %c0_4, %c0_5, %c0_6] : memref<2x4x32x8xf32, #tpu.memory_space<vmem>>, vector<1x1x32x8xf32>
    %4 = vector.shape_cast %3 : vector<1x1x32x8xf32> to vector<32x8xf32>
    %cst = arith.constant dense<0.000000e+00> : vector<16x8xf32>
    %5 = tpu.matmul %2, %4, %cst {dimension_numbers = #tpu.dot_dimension_numbers<[1], [0], [0], [1], [0, 0, 1, 1], [], []>} : vector<16x32xf32>, vector<32x8xf32>, vector<16x8xf32> -> vector<16x8xf32>
    %c0_7 = arith.constant 0 : index
    %c0_8 = arith.constant 0 : index
    %c0_9 = arith.constant 0 : index
    %c0_10 = arith.constant 0 : index
    %6 = vector.load %arg5[%c0_7, %c0_8, %c0_9, %c0_10] : memref<2x4x1x8xf32, #tpu.memory_space<vmem>>, vector<1x1x1x8xf32>
    %7 = vector.shape_cast %6 : vector<1x1x1x8xf32> to vector<1x8xf32>
    %8 = vector.broadcast %7 : vector<1x8xf32> to vector<16x8xf32>
    %9 = arith.addf %5, %8 : vector<16x8xf32>
    %c0_11 = arith.constant 0 : index
    %c0_12 = arith.constant 0 : index
    %c0_13 = arith.constant 0 : index
    %c0_14 = arith.constant 0 : index
    %10 = vector.load %arg3[%c0_11, %c0_12, %c0_13, %c0_14] : memref<2x4x32x8xf32, #tpu.memory_space<vmem>>, vector<1x1x32x8xf32>
    %11 = vector.shape_cast %10 : vector<1x1x32x8xf32> to vector<32x8xf32>
    %cst_15 = arith.constant dense<0.000000e+00> : vector<16x8xf32>
    %12 = tpu.matmul %2, %11, %cst_15 {dimension_numbers = #tpu.dot_dimension_numbers<[1], [0], [0], [1], [0, 0, 1, 1], [], []>} : vector<16x32xf32>, vector<32x8xf32>, vector<16x8xf32> -> vector<16x8xf32>
    %c0_16 = arith.constant 0 : index
    %c0_17 = arith.constant 0 : index
    %c0_18 = arith.constant 0 : index
    %c0_19 = arith.constant 0 : index
    %13 = vector.load %arg6[%c0_16, %c0_17, %c0_18, %c0_19] : memref<2x4x1x8xf32, #tpu.memory_space<vmem>>, vector<1x1x1x8xf32>
    %14 = vector.shape_cast %13 : vector<1x1x1x8xf32> to vector<1x8xf32>
    %15 = vector.broadcast %14 : vector<1x8xf32> to vector<16x8xf32>
    %16 = arith.addf %12, %15 : vector<16x8xf32>
    %c0_20 = arith.constant 0 : index
    %c0_21 = arith.constant 0 : index
    %c0_22 = arith.constant 0 : index
    %c0_23 = arith.constant 0 : index
    %17 = vector.load %arg4[%c0_20, %c0_21, %c0_22, %c0_23] : memref<2x4x32x8xf32, #tpu.memory_space<vmem>>, vector<1x1x32x8xf32>
    %18 = vector.shape_cast %17 : vector<1x1x32x8xf32> to vector<32x8xf32>
    %cst_24 = arith.constant dense<0.000000e+00> : vector<16x8xf32>
    %19 = tpu.matmul %2, %18, %cst_24 {dimension_numbers = #tpu.dot_dimension_numbers<[1], [0], [0], [1], [0, 0, 1, 1], [], []>} : vector<16x32xf32>, vector<32x8xf32>, vector<16x8xf32> -> vector<16x8xf32>
    %c0_25 = arith.constant 0 : index
    %c0_26 = arith.constant 0 : index
    %c0_27 = arith.constant 0 : index
    %c0_28 = arith.constant 0 : index
    %20 = vector.load %arg7[%c0_25, %c0_26, %c0_27, %c0_28] : memref<2x4x1x8xf32, #tpu.memory_space<vmem>>, vector<1x1x1x8xf32>
    %21 = vector.shape_cast %20 : vector<1x1x1x8xf32> to vector<1x8xf32>
    %22 = vector.broadcast %21 : vector<1x8xf32> to vector<16x8xf32>
    %23 = arith.addf %19, %22 : vector<16x8xf32>
    %24 = vector.shape_cast %9 : vector<16x8xf32> to vector<2x8x8xf32>
    %25 = vector.shape_cast %16 : vector<16x8xf32> to vector<2x8x8xf32>
    %26 = vector.shape_cast %23 : vector<16x8xf32> to vector<2x8x8xf32>
    "tpu.trace_start"() <{level = 10 : i32, message = "bqd,bkd->bqk"}> : () -> ()
    %cst_29 = arith.constant dense<0.000000e+00> : vector<2x8x8xf32>
    %27 = tpu.matmul %24, %25, %cst_29 {dimension_numbers = #tpu.dot_dimension_numbers<[2], [2], [1], [1], [0, 0, 0, 1, 1, 1], [0], [0]>} : vector<2x8x8xf32>, vector<2x8x8xf32>, vector<2x8x8xf32> -> vector<2x8x8xf32>
    "tpu.trace_stop"() : () -> ()
    %cst_30 = arith.constant dense<0xFF800000> : vector<2x8xf32>
    %28 = vector.multi_reduction <maximumf>, %27, %cst_30 [2] : vector<2x8x8xf32> to vector<2x8xf32>
    %29 = vector.shape_cast %28 : vector<2x8xf32> to vector<2x8x1xf32>
    %30 = vector.broadcast %29 : vector<2x8x1xf32> to vector<2x8x8xf32>
    %31 = arith.subf %27, %30 : vector<2x8x8xf32>
    %32 = math.exp %31 : vector<2x8x8xf32>
    %cst_31 = arith.constant dense<0.000000e+00> : vector<2x8xf32>
    %33 = vector.multi_reduction <add>, %32, %cst_31 [2] : vector<2x8x8xf32> to vector<2x8xf32>
    %34 = vector.shape_cast %33 : vector<2x8xf32> to vector<2x8x1xf32>
    %35 = vector.broadcast %34 : vector<2x8x1xf32> to vector<2x8x8xf32>
    %36 = arith.divf %32, %35 : vector<2x8x8xf32>
    "tpu.trace_start"() <{level = 10 : i32, message = "bqk,bkd->bqd"}> : () -> ()
    %cst_32 = arith.constant dense<0.000000e+00> : vector<2x8x8xf32>
    %37 = tpu.matmul %36, %26, %cst_32 {dimension_numbers = #tpu.dot_dimension_numbers<[2], [1], [1], [2], [0, 0, 0, 1, 1, 2], [0], [0]>} : vector<2x8x8xf32>, vector<2x8x8xf32>, vector<2x8x8xf32> -> vector<2x8x8xf32>
    "tpu.trace_stop"() : () -> ()
    %38 = vector.shape_cast %37 : vector<2x8x8xf32> to vector<16x8xf32>
    %c0_33 = arith.constant 0 : index
    %c0_34 = arith.constant 0 : index
    %c0_35 = arith.constant 0 : index
    %c0_36 = arith.constant 0 : index
    %39 = vector.load %arg8[%c0_33, %c0_34, %c0_35, %c0_36] : memref<2x4x8x32xf32, #tpu.memory_space<vmem>>, vector<1x1x8x32xf32>
    %40 = vector.shape_cast %39 : vector<1x1x8x32xf32> to vector<8x32xf32>
    %cst_37 = arith.constant dense<0.000000e+00> : vector<16x32xf32>
    %41 = tpu.matmul %38, %40, %cst_37 {dimension_numbers = #tpu.dot_dimension_numbers<[1], [0], [0], [1], [0, 0, 1, 1], [], []>} : vector<16x8xf32>, vector<8x32xf32>, vector<16x32xf32> -> vector<16x32xf32>
    %c0_38 = arith.constant 0 : index
    %c1 = arith.constant 1 : index
    %c0_39 = arith.constant 0 : index
    %c0_40 = arith.constant 0 : index
    %42 = vector.load %arg2[%c0_38, %c1, %c0_39, %c0_40] : memref<2x4x32x8xf32, #tpu.memory_space<vmem>>, vector<1x1x32x8xf32>
    %43 = vector.shape_cast %42 : vector<1x1x32x8xf32> to vector<32x8xf32>
    %cst_41 = arith.constant dense<0.000000e+00> : vector<16x8xf32>
    %44 = tpu.matmul %2, %43, %cst_41 {dimension_numbers = #tpu.dot_dimension_numbers<[1], [0], [0], [1], [0, 0, 1, 1], [], []>} : vector<16x32xf32>, vector<32x8xf32>, vector<16x8xf32> -> vector<16x8xf32>
    %c0_42 = arith.constant 0 : index
    %c1_43 = arith.constant 1 : index
    %c0_44 = arith.constant 0 : index
    %c0_45 = arith.constant 0 : index
    %45 = vector.load %arg5[%c0_42, %c1_43, %c0_44, %c0_45] : memref<2x4x1x8xf32, #tpu.memory_space<vmem>>, vector<1x1x1x8xf32>
    %46 = vector.shape_cast %45 : vector<1x1x1x8xf32> to vector<1x8xf32>
    %47 = vector.broadcast %46 : vector<1x8xf32> to vector<16x8xf32>
    %48 = arith.addf %44, %47 : vector<16x8xf32>
    %c0_46 = arith.constant 0 : index
    %c1_47 = arith.constant 1 : index
    %c0_48 = arith.constant 0 : index
    %c0_49 = arith.constant 0 : index
    %49 = vector.load %arg3[%c0_46, %c1_47, %c0_48, %c0_49] : memref<2x4x32x8xf32, #tpu.memory_space<vmem>>, vector<1x1x32x8xf32>
    %50 = vector.shape_cast %49 : vector<1x1x32x8xf32> to vector<32x8xf32>
    %cst_50 = arith.constant dense<0.000000e+00> : vector<16x8xf32>
    %51 = tpu.matmul %2, %50, %cst_50 {dimension_numbers = #tpu.dot_dimension_numbers<[1], [0], [0], [1], [0, 0, 1, 1], [], []>} : vector<16x32xf32>, vector<32x8xf32>, vector<16x8xf32> -> vector<16x8xf32>
    %c0_51 = arith.constant 0 : index
    %c1_52 = arith.constant 1 : index
    %c0_53 = arith.constant 0 : index
    %c0_54 = arith.constant 0 : index
    %52 = vector.load %arg6[%c0_51, %c1_52, %c0_53, %c0_54] : memref<2x4x1x8xf32, #tpu.memory_space<vmem>>, vector<1x1x1x8xf32>
    %53 = vector.shape_cast %52 : vector<1x1x1x8xf32> to vector<1x8xf32>
    %54 = vector.broadcast %53 : vector<1x8xf32> to vector<16x8xf32>
    %55 = arith.addf %51, %54 : vector<16x8xf32>
    %c0_55 = arith.constant 0 : index
    %c1_56 = arith.constant 1 : index
    %c0_57 = arith.constant 0 : index
    %c0_58 = arith.constant 0 : index
    %56 = vector.load %arg4[%c0_55, %c1_56, %c0_57, %c0_58] : memref<2x4x32x8xf32, #tpu.memory_space<vmem>>, vector<1x1x32x8xf32>
    %57 = vector.shape_cast %56 : vector<1x1x32x8xf32> to vector<32x8xf32>
    %cst_59 = arith.constant dense<0.000000e+00> : vector<16x8xf32>
    %58 = tpu.matmul %2, %57, %cst_59 {dimension_numbers = #tpu.dot_dimension_numbers<[1], [0], [0], [1], [0, 0, 1, 1], [], []>} : vector<16x32xf32>, vector<32x8xf32>, vector<16x8xf32> -> vector<16x8xf32>
    %c0_60 = arith.constant 0 : index
    %c1_61 = arith.constant 1 : index
    %c0_62 = arith.constant 0 : index
    %c0_63 = arith.constant 0 : index
    %59 = vector.load %arg7[%c0_60, %c1_61, %c0_62, %c0_63] : memref<2x4x1x8xf32, #tpu.memory_space<vmem>>, vector<1x1x1x8xf32>
    %60 = vector.shape_cast %59 : vector<1x1x1x8xf32> to vector<1x8xf32>
    %61 = vector.broadcast %60 : vector<1x8xf32> to vector<16x8xf32>
    %62 = arith.addf %58, %61 : vector<16x8xf32>
    %63 = vector.shape_cast %48 : vector<16x8xf32> to vector<2x8x8xf32>
    %64 = vector.shape_cast %55 : vector<16x8xf32> to vector<2x8x8xf32>
    %65 = vector.shape_cast %62 : vector<16x8xf32> to vector<2x8x8xf32>
    "tpu.trace_start"() <{level = 10 : i32, message = "bqd,bkd->bqk"}> : () -> ()
    %cst_64 = arith.constant dense<0.000000e+00> : vector<2x8x8xf32>
    %66 = tpu.matmul %63, %64, %cst_64 {dimension_numbers = #tpu.dot_dimension_numbers<[2], [2], [1], [1], [0, 0, 0, 1, 1, 1], [0], [0]>} : vector<2x8x8xf32>, vector<2x8x8xf32>, vector<2x8x8xf32> -> vector<2x8x8xf32>
    "tpu.trace_stop"() : () -> ()
    %cst_65 = arith.constant dense<0xFF800000> : vector<2x8xf32>
    %67 = vector.multi_reduction <maximumf>, %66, %cst_65 [2] : vector<2x8x8xf32> to vector<2x8xf32>
    %68 = vector.shape_cast %67 : vector<2x8xf32> to vector<2x8x1xf32>
    %69 = vector.broadcast %68 : vector<2x8x1xf32> to vector<2x8x8xf32>
    %70 = arith.subf %66, %69 : vector<2x8x8xf32>
    %71 = math.exp %70 : vector<2x8x8xf32>
    %cst_66 = arith.constant dense<0.000000e+00> : vector<2x8xf32>
    %72 = vector.multi_reduction <add>, %71, %cst_66 [2] : vector<2x8x8xf32> to vector<2x8xf32>
    %73 = vector.shape_cast %72 : vector<2x8xf32> to vector<2x8x1xf32>
    %74 = vector.broadcast %73 : vector<2x8x1xf32> to vector<2x8x8xf32>
    %75 = arith.divf %71, %74 : vector<2x8x8xf32>
    "tpu.trace_start"() <{level = 10 : i32, message = "bqk,bkd->bqd"}> : () -> ()
    %cst_67 = arith.constant dense<0.000000e+00> : vector<2x8x8xf32>
    %76 = tpu.matmul %75, %65, %cst_67 {dimension_numbers = #tpu.dot_dimension_numbers<[2], [1], [1], [2], [0, 0, 0, 1, 1, 2], [0], [0]>} : vector<2x8x8xf32>, vector<2x8x8xf32>, vector<2x8x8xf32> -> vector<2x8x8xf32>
    "tpu.trace_stop"() : () -> ()
    %77 = vector.shape_cast %76 : vector<2x8x8xf32> to vector<16x8xf32>
    %c0_68 = arith.constant 0 : index
    %c1_69 = arith.constant 1 : index
    %c0_70 = arith.constant 0 : index
    %c0_71 = arith.constant 0 : index
    %78 = vector.load %arg8[%c0_68, %c1_69, %c0_70, %c0_71] : memref<2x4x8x32xf32, #tpu.memory_space<vmem>>, vector<1x1x8x32xf32>
    %79 = vector.shape_cast %78 : vector<1x1x8x32xf32> to vector<8x32xf32>
    %cst_72 = arith.constant dense<0.000000e+00> : vector<16x32xf32>
    %80 = tpu.matmul %77, %79, %cst_72 {dimension_numbers = #tpu.dot_dimension_numbers<[1], [0], [0], [1], [0, 0, 1, 1], [], []>} : vector<16x8xf32>, vector<8x32xf32>, vector<16x32xf32> -> vector<16x32xf32>
    %81 = arith.addf %41, %80 : vector<16x32xf32>
    %c0_73 = arith.constant 0 : index
    %c2 = arith.constant 2 : index
    %c0_74 = arith.constant 0 : index
    %c0_75 = arith.constant 0 : index
    %82 = vector.load %arg2[%c0_73, %c2, %c0_74, %c0_75] : memref<2x4x32x8xf32, #tpu.memory_space<vmem>>, vector<1x1x32x8xf32>
    %83 = vector.shape_cast %82 : vector<1x1x32x8xf32> to vector<32x8xf32>
    %cst_76 = arith.constant dense<0.000000e+00> : vector<16x8xf32>
    %84 = tpu.matmul %2, %83, %cst_76 {dimension_numbers = #tpu.dot_dimension_numbers<[1], [0], [0], [1], [0, 0, 1, 1], [], []>} : vector<16x32xf32>, vector<32x8xf32>, vector<16x8xf32> -> vector<16x8xf32>
    %c0_77 = arith.constant 0 : index
    %c2_78 = arith.constant 2 : index
    %c0_79 = arith.constant 0 : index
    %c0_80 = arith.constant 0 : index
    %85 = vector.load %arg5[%c0_77, %c2_78, %c0_79, %c0_80] : memref<2x4x1x8xf32, #tpu.memory_space<vmem>>, vector<1x1x1x8xf32>
    %86 = vector.shape_cast %85 : vector<1x1x1x8xf32> to vector<1x8xf32>
    %87 = vector.broadcast %86 : vector<1x8xf32> to vector<16x8xf32>
    %88 = arith.addf %84, %87 : vector<16x8xf32>
    %c0_81 = arith.constant 0 : index
    %c2_82 = arith.constant 2 : index
    %c0_83 = arith.constant 0 : index
    %c0_84 = arith.constant 0 : index
    %89 = vector.load %arg3[%c0_81, %c2_82, %c0_83, %c0_84] : memref<2x4x32x8xf32, #tpu.memory_space<vmem>>, vector<1x1x32x8xf32>
    %90 = vector.shape_cast %89 : vector<1x1x32x8xf32> to vector<32x8xf32>
    %cst_85 = arith.constant dense<0.000000e+00> : vector<16x8xf32>
    %91 = tpu.matmul %2, %90, %cst_85 {dimension_numbers = #tpu.dot_dimension_numbers<[1], [0], [0], [1], [0, 0, 1, 1], [], []>} : vector<16x32xf32>, vector<32x8xf32>, vector<16x8xf32> -> vector<16x8xf32>
    %c0_86 = arith.constant 0 : index
    %c2_87 = arith.constant 2 : index
    %c0_88 = arith.constant 0 : index
    %c0_89 = arith.constant 0 : index
    %92 = vector.load %arg6[%c0_86, %c2_87, %c0_88, %c0_89] : memref<2x4x1x8xf32, #tpu.memory_space<vmem>>, vector<1x1x1x8xf32>
    %93 = vector.shape_cast %92 : vector<1x1x1x8xf32> to vector<1x8xf32>
    %94 = vector.broadcast %93 : vector<1x8xf32> to vector<16x8xf32>
    %95 = arith.addf %91, %94 : vector<16x8xf32>
    %c0_90 = arith.constant 0 : index
    %c2_91 = arith.constant 2 : index
    %c0_92 = arith.constant 0 : index
    %c0_93 = arith.constant 0 : index
    %96 = vector.load %arg4[%c0_90, %c2_91, %c0_92, %c0_93] : memref<2x4x32x8xf32, #tpu.memory_space<vmem>>, vector<1x1x32x8xf32>
    %97 = vector.shape_cast %96 : vector<1x1x32x8xf32> to vector<32x8xf32>
    %cst_94 = arith.constant dense<0.000000e+00> : vector<16x8xf32>
    %98 = tpu.matmul %2, %97, %cst_94 {dimension_numbers = #tpu.dot_dimension_numbers<[1], [0], [0], [1], [0, 0, 1, 1], [], []>} : vector<16x32xf32>, vector<32x8xf32>, vector<16x8xf32> -> vector<16x8xf32>
    %c0_95 = arith.constant 0 : index
    %c2_96 = arith.constant 2 : index
    %c0_97 = arith.constant 0 : index
    %c0_98 = arith.constant 0 : index
    %99 = vector.load %arg7[%c0_95, %c2_96, %c0_97, %c0_98] : memref<2x4x1x8xf32, #tpu.memory_space<vmem>>, vector<1x1x1x8xf32>
    %100 = vector.shape_cast %99 : vector<1x1x1x8xf32> to vector<1x8xf32>
    %101 = vector.broadcast %100 : vector<1x8xf32> to vector<16x8xf32>
    %102 = arith.addf %98, %101 : vector<16x8xf32>
    %103 = vector.shape_cast %88 : vector<16x8xf32> to vector<2x8x8xf32>
    %104 = vector.shape_cast %95 : vector<16x8xf32> to vector<2x8x8xf32>
    %105 = vector.shape_cast %102 : vector<16x8xf32> to vector<2x8x8xf32>
    "tpu.trace_start"() <{level = 10 : i32, message = "bqd,bkd->bqk"}> : () -> ()
    %cst_99 = arith.constant dense<0.000000e+00> : vector<2x8x8xf32>
    %106 = tpu.matmul %103, %104, %cst_99 {dimension_numbers = #tpu.dot_dimension_numbers<[2], [2], [1], [1], [0, 0, 0, 1, 1, 1], [0], [0]>} : vector<2x8x8xf32>, vector<2x8x8xf32>, vector<2x8x8xf32> -> vector<2x8x8xf32>
    "tpu.trace_stop"() : () -> ()
    %cst_100 = arith.constant dense<0xFF800000> : vector<2x8xf32>
    %107 = vector.multi_reduction <maximumf>, %106, %cst_100 [2] : vector<2x8x8xf32> to vector<2x8xf32>
    %108 = vector.shape_cast %107 : vector<2x8xf32> to vector<2x8x1xf32>
    %109 = vector.broadcast %108 : vector<2x8x1xf32> to vector<2x8x8xf32>
    %110 = arith.subf %106, %109 : vector<2x8x8xf32>
    %111 = math.exp %110 : vector<2x8x8xf32>
    %cst_101 = arith.constant dense<0.000000e+00> : vector<2x8xf32>
    %112 = vector.multi_reduction <add>, %111, %cst_101 [2] : vector<2x8x8xf32> to vector<2x8xf32>
    %113 = vector.shape_cast %112 : vector<2x8xf32> to vector<2x8x1xf32>
    %114 = vector.broadcast %113 : vector<2x8x1xf32> to vector<2x8x8xf32>
    %115 = arith.divf %111, %114 : vector<2x8x8xf32>
    "tpu.trace_start"() <{level = 10 : i32, message = "bqk,bkd->bqd"}> : () -> ()
    %cst_102 = arith.constant dense<0.000000e+00> : vector<2x8x8xf32>
    %116 = tpu.matmul %115, %105, %cst_102 {dimension_numbers = #tpu.dot_dimension_numbers<[2], [1], [1], [2], [0, 0, 0, 1, 1, 2], [0], [0]>} : vector<2x8x8xf32>, vector<2x8x8xf32>, vector<2x8x8xf32> -> vector<2x8x8xf32>
    "tpu.trace_stop"() : () -> ()
    %117 = vector.shape_cast %116 : vector<2x8x8xf32> to vector<16x8xf32>
    %c0_103 = arith.constant 0 : index
    %c2_104 = arith.constant 2 : index
    %c0_105 = arith.constant 0 : index
    %c0_106 = arith.constant 0 : index
    %118 = vector.load %arg8[%c0_103, %c2_104, %c0_105, %c0_106] : memref<2x4x8x32xf32, #tpu.memory_space<vmem>>, vector<1x1x8x32xf32>
    %119 = vector.shape_cast %118 : vector<1x1x8x32xf32> to vector<8x32xf32>
    %cst_107 = arith.constant dense<0.000000e+00> : vector<16x32xf32>
    %120 = tpu.matmul %117, %119, %cst_107 {dimension_numbers = #tpu.dot_dimension_numbers<[1], [0], [0], [1], [0, 0, 1, 1], [], []>} : vector<16x8xf32>, vector<8x32xf32>, vector<16x32xf32> -> vector<16x32xf32>
    %121 = arith.addf %81, %120 : vector<16x32xf32>
    %c0_108 = arith.constant 0 : index
    %c3 = arith.constant 3 : index
    %c0_109 = arith.constant 0 : index
    %c0_110 = arith.constant 0 : index
    %122 = vector.load %arg2[%c0_108, %c3, %c0_109, %c0_110] : memref<2x4x32x8xf32, #tpu.memory_space<vmem>>, vector<1x1x32x8xf32>
    %123 = vector.shape_cast %122 : vector<1x1x32x8xf32> to vector<32x8xf32>
    %cst_111 = arith.constant dense<0.000000e+00> : vector<16x8xf32>
    %124 = tpu.matmul %2, %123, %cst_111 {dimension_numbers = #tpu.dot_dimension_numbers<[1], [0], [0], [1], [0, 0, 1, 1], [], []>} : vector<16x32xf32>, vector<32x8xf32>, vector<16x8xf32> -> vector<16x8xf32>
    %c0_112 = arith.constant 0 : index
    %c3_113 = arith.constant 3 : index
    %c0_114 = arith.constant 0 : index
    %c0_115 = arith.constant 0 : index
    %125 = vector.load %arg5[%c0_112, %c3_113, %c0_114, %c0_115] : memref<2x4x1x8xf32, #tpu.memory_space<vmem>>, vector<1x1x1x8xf32>
    %126 = vector.shape_cast %125 : vector<1x1x1x8xf32> to vector<1x8xf32>
    %127 = vector.broadcast %126 : vector<1x8xf32> to vector<16x8xf32>
    %128 = arith.addf %124, %127 : vector<16x8xf32>
    %c0_116 = arith.constant 0 : index
    %c3_117 = arith.constant 3 : index
    %c0_118 = arith.constant 0 : index
    %c0_119 = arith.constant 0 : index
    %129 = vector.load %arg3[%c0_116, %c3_117, %c0_118, %c0_119] : memref<2x4x32x8xf32, #tpu.memory_space<vmem>>, vector<1x1x32x8xf32>
    %130 = vector.shape_cast %129 : vector<1x1x32x8xf32> to vector<32x8xf32>
    %cst_120 = arith.constant dense<0.000000e+00> : vector<16x8xf32>
    %131 = tpu.matmul %2, %130, %cst_120 {dimension_numbers = #tpu.dot_dimension_numbers<[1], [0], [0], [1], [0, 0, 1, 1], [], []>} : vector<16x32xf32>, vector<32x8xf32>, vector<16x8xf32> -> vector<16x8xf32>
    %c0_121 = arith.constant 0 : index
    %c3_122 = arith.constant 3 : index
    %c0_123 = arith.constant 0 : index
    %c0_124 = arith.constant 0 : index
    %132 = vector.load %arg6[%c0_121, %c3_122, %c0_123, %c0_124] : memref<2x4x1x8xf32, #tpu.memory_space<vmem>>, vector<1x1x1x8xf32>
    %133 = vector.shape_cast %132 : vector<1x1x1x8xf32> to vector<1x8xf32>
    %134 = vector.broadcast %133 : vector<1x8xf32> to vector<16x8xf32>
    %135 = arith.addf %131, %134 : vector<16x8xf32>
    %c0_125 = arith.constant 0 : index
    %c3_126 = arith.constant 3 : index
    %c0_127 = arith.constant 0 : index
    %c0_128 = arith.constant 0 : index
    %136 = vector.load %arg4[%c0_125, %c3_126, %c0_127, %c0_128] : memref<2x4x32x8xf32, #tpu.memory_space<vmem>>, vector<1x1x32x8xf32>
    %137 = vector.shape_cast %136 : vector<1x1x32x8xf32> to vector<32x8xf32>
    %cst_129 = arith.constant dense<0.000000e+00> : vector<16x8xf32>
    %138 = tpu.matmul %2, %137, %cst_129 {dimension_numbers = #tpu.dot_dimension_numbers<[1], [0], [0], [1], [0, 0, 1, 1], [], []>} : vector<16x32xf32>, vector<32x8xf32>, vector<16x8xf32> -> vector<16x8xf32>
    %c0_130 = arith.constant 0 : index
    %c3_131 = arith.constant 3 : index
    %c0_132 = arith.constant 0 : index
    %c0_133 = arith.constant 0 : index
    %139 = vector.load %arg7[%c0_130, %c3_131, %c0_132, %c0_133] : memref<2x4x1x8xf32, #tpu.memory_space<vmem>>, vector<1x1x1x8xf32>
    %140 = vector.shape_cast %139 : vector<1x1x1x8xf32> to vector<1x8xf32>
    %141 = vector.broadcast %140 : vector<1x8xf32> to vector<16x8xf32>
    %142 = arith.addf %138, %141 : vector<16x8xf32>
    %143 = vector.shape_cast %128 : vector<16x8xf32> to vector<2x8x8xf32>
    %144 = vector.shape_cast %135 : vector<16x8xf32> to vector<2x8x8xf32>
    %145 = vector.shape_cast %142 : vector<16x8xf32> to vector<2x8x8xf32>
    "tpu.trace_start"() <{level = 10 : i32, message = "bqd,bkd->bqk"}> : () -> ()
    %cst_134 = arith.constant dense<0.000000e+00> : vector<2x8x8xf32>
    %146 = tpu.matmul %143, %144, %cst_134 {dimension_numbers = #tpu.dot_dimension_numbers<[2], [2], [1], [1], [0, 0, 0, 1, 1, 1], [0], [0]>} : vector<2x8x8xf32>, vector<2x8x8xf32>, vector<2x8x8xf32> -> vector<2x8x8xf32>
    "tpu.trace_stop"() : () -> ()
    %cst_135 = arith.constant dense<0xFF800000> : vector<2x8xf32>
    %147 = vector.multi_reduction <maximumf>, %146, %cst_135 [2] : vector<2x8x8xf32> to vector<2x8xf32>
    %148 = vector.shape_cast %147 : vector<2x8xf32> to vector<2x8x1xf32>
    %149 = vector.broadcast %148 : vector<2x8x1xf32> to vector<2x8x8xf32>
    %150 = arith.subf %146, %149 : vector<2x8x8xf32>
    %151 = math.exp %150 : vector<2x8x8xf32>
    %cst_136 = arith.constant dense<0.000000e+00> : vector<2x8xf32>
    %152 = vector.multi_reduction <add>, %151, %cst_136 [2] : vector<2x8x8xf32> to vector<2x8xf32>
    %153 = vector.shape_cast %152 : vector<2x8xf32> to vector<2x8x1xf32>
    %154 = vector.broadcast %153 : vector<2x8x1xf32> to vector<2x8x8xf32>
    %155 = arith.divf %151, %154 : vector<2x8x8xf32>
    "tpu.trace_start"() <{level = 10 : i32, message = "bqk,bkd->bqd"}> : () -> ()
    %cst_137 = arith.constant dense<0.000000e+00> : vector<2x8x8xf32>
    %156 = tpu.matmul %155, %145, %cst_137 {dimension_numbers = #tpu.dot_dimension_numbers<[2], [1], [1], [2], [0, 0, 0, 1, 1, 2], [0], [0]>} : vector<2x8x8xf32>, vector<2x8x8xf32>, vector<2x8x8xf32> -> vector<2x8x8xf32>
    "tpu.trace_stop"() : () -> ()
    %157 = vector.shape_cast %156 : vector<2x8x8xf32> to vector<16x8xf32>
    %c0_138 = arith.constant 0 : index
    %c3_139 = arith.constant 3 : index
    %c0_140 = arith.constant 0 : index
    %c0_141 = arith.constant 0 : index
    %158 = vector.load %arg8[%c0_138, %c3_139, %c0_140, %c0_141] : memref<2x4x8x32xf32, #tpu.memory_space<vmem>>, vector<1x1x8x32xf32>
    %159 = vector.shape_cast %158 : vector<1x1x8x32xf32> to vector<8x32xf32>
    %cst_142 = arith.constant dense<0.000000e+00> : vector<16x32xf32>
    %160 = tpu.matmul %157, %159, %cst_142 {dimension_numbers = #tpu.dot_dimension_numbers<[1], [0], [0], [1], [0, 0, 1, 1], [], []>} : vector<16x8xf32>, vector<8x32xf32>, vector<16x32xf32> -> vector<16x32xf32>
    %161 = arith.addf %121, %160 : vector<16x32xf32>
    %c0_143 = arith.constant 0 : index
    %c0_144 = arith.constant 0 : index
    %c0_145 = arith.constant 0 : index
    %162 = vector.load %arg9[%c0_143, %c0_144, %c0_145] : memref<2x1x32xf32, #tpu.memory_space<vmem>>, vector<1x1x32xf32>
    %163 = vector.shape_cast %162 : vector<1x1x32xf32> to vector<1x32xf32>
    %164 = vector.broadcast %163 : vector<1x32xf32> to vector<16x32xf32>
    %165 = arith.addf %161, %164 : vector<16x32xf32>
    %166 = arith.addf %2, %165 : vector<16x32xf32>
    %c0_146 = arith.constant 0 : index
    %c0_147 = arith.constant 0 : index
    %c0_148 = arith.constant 0 : index
    %167 = vector.load %arg14[%c0_146, %c0_147, %c0_148] : memref<2x1x32xf32, #tpu.memory_space<vmem>>, vector<1x1x32xf32>
    %168 = vector.shape_cast %167 : vector<1x1x32xf32> to vector<1x32xf32>
    %c0_149 = arith.constant 0 : index
    %c0_150 = arith.constant 0 : index
    %c0_151 = arith.constant 0 : index
    %169 = vector.load %arg15[%c0_149, %c0_150, %c0_151] : memref<2x1x32xf32, #tpu.memory_space<vmem>>, vector<1x1x32xf32>
    %170 = vector.shape_cast %169 : vector<1x1x32xf32> to vector<1x32xf32>
    %cst_152 = arith.constant dense<0.000000e+00> : vector<16xf32>
    %171 = vector.multi_reduction <add>, %166, %cst_152 [1] : vector<16x32xf32> to vector<16xf32>
    %172 = vector.shape_cast %171 : vector<16xf32> to vector<16x1xf32>
    %cst_153 = arith.constant 3.200000e+01 : f32
    %173 = vector.broadcast %cst_153 : f32 to vector<16x1xf32>
    %174 = arith.divf %172, %173 : vector<16x1xf32>
    %175 = vector.broadcast %174 : vector<16x1xf32> to vector<16x32xf32>
    %176 = arith.subf %166, %175 : vector<16x32xf32>
    %177 = arith.mulf %176, %176 : vector<16x32xf32>
    %cst_154 = arith.constant dense<0.000000e+00> : vector<16xf32>
    %178 = vector.multi_reduction <add>, %177, %cst_154 [1] : vector<16x32xf32> to vector<16xf32>
    %179 = vector.shape_cast %178 : vector<16xf32> to vector<16x1xf32>
    %cst_155 = arith.constant 3.200000e+01 : f32
    %180 = vector.broadcast %cst_155 : f32 to vector<16x1xf32>
    %181 = arith.divf %179, %180 : vector<16x1xf32>
    %182 = vector.broadcast %174 : vector<16x1xf32> to vector<16x32xf32>
    %183 = arith.subf %166, %182 : vector<16x32xf32>
    %cst_156 = arith.constant 9.99999974E-6 : f32
    %184 = vector.broadcast %cst_156 : f32 to vector<16x1xf32>
    %185 = arith.addf %181, %184 : vector<16x1xf32>
    %186 = math.rsqrt %185 : vector<16x1xf32>
    %187 = vector.broadcast %186 : vector<16x1xf32> to vector<16x32xf32>
    %188 = arith.mulf %183, %187 : vector<16x32xf32>
    %189 = vector.broadcast %168 : vector<1x32xf32> to vector<16x32xf32>
    %190 = arith.mulf %188, %189 : vector<16x32xf32>
    %191 = vector.broadcast %170 : vector<1x32xf32> to vector<16x32xf32>
    %192 = arith.addf %190, %191 : vector<16x32xf32>
    %c0_157 = arith.constant 0 : index
    %c0_158 = arith.constant 0 : index
    %c0_159 = arith.constant 0 : index
    %193 = vector.load %arg10[%c0_157, %c0_158, %c0_159] : memref<2x32x128xf32, #tpu.memory_space<vmem>>, vector<1x32x128xf32>
    %194 = vector.shape_cast %193 : vector<1x32x128xf32> to vector<32x128xf32>
    %cst_160 = arith.constant dense<0.000000e+00> : vector<16x128xf32>
    %195 = tpu.matmul %192, %194, %cst_160 {dimension_numbers = #tpu.dot_dimension_numbers<[1], [0], [0], [1], [0, 0, 1, 1], [], []>} : vector<16x32xf32>, vector<32x128xf32>, vector<16x128xf32> -> vector<16x128xf32>
    %c0_161 = arith.constant 0 : index
    %c0_162 = arith.constant 0 : index
    %c0_163 = arith.constant 0 : index
    %196 = vector.load %arg11[%c0_161, %c0_162, %c0_163] : memref<2x1x128xf32, #tpu.memory_space<vmem>>, vector<1x1x128xf32>
    %197 = vector.shape_cast %196 : vector<1x1x128xf32> to vector<1x128xf32>
    %198 = vector.broadcast %197 : vector<1x128xf32> to vector<16x128xf32>
    %199 = arith.addf %195, %198 : vector<16x128xf32>
    %cst_164 = arith.constant 0.000000e+00 : f32
    %200 = vector.broadcast %cst_164 : f32 to vector<16x128xf32>
    %201 = arith.maximumf %199, %200 : vector<16x128xf32>
    %c0_165 = arith.constant 0 : index
    %c0_166 = arith.constant 0 : index
    %c0_167 = arith.constant 0 : index
    %202 = vector.load %arg12[%c0_165, %c0_166, %c0_167] : memref<2x128x32xf32, #tpu.memory_space<vmem>>, vector<1x128x32xf32>
    %203 = vector.shape_cast %202 : vector<1x128x32xf32> to vector<128x32xf32>
    %cst_168 = arith.constant dense<0.000000e+00> : vector<16x32xf32>
    %204 = tpu.matmul %201, %203, %cst_168 {dimension_numbers = #tpu.dot_dimension_numbers<[1], [0], [0], [1], [0, 0, 1, 1], [], []>} : vector<16x128xf32>, vector<128x32xf32>, vector<16x32xf32> -> vector<16x32xf32>
    %c0_169 = arith.constant 0 : index
    %c0_170 = arith.constant 0 : index
    %c0_171 = arith.constant 0 : index
    %205 = vector.load %arg13[%c0_169, %c0_170, %c0_171] : memref<2x1x32xf32, #tpu.memory_space<vmem>>, vector<1x1x32xf32>
    %206 = vector.shape_cast %205 : vector<1x1x32xf32> to vector<1x32xf32>
    %207 = vector.broadcast %206 : vector<1x32xf32> to vector<16x32xf32>
    %208 = arith.addf %204, %207 : vector<16x32xf32>
    %209 = arith.addf %192, %208 : vector<16x32xf32>
    %c0_172 = arith.constant 0 : index
    %c0_173 = arith.constant 0 : index
    %c0_174 = arith.constant 0 : index
    %210 = vector.load %arg16[%c0_172, %c0_173, %c0_174] : memref<2x1x32xf32, #tpu.memory_space<vmem>>, vector<1x1x32xf32>
    %211 = vector.shape_cast %210 : vector<1x1x32xf32> to vector<1x32xf32>
    %c0_175 = arith.constant 0 : index
    %c0_176 = arith.constant 0 : index
    %c0_177 = arith.constant 0 : index
    %212 = vector.load %arg17[%c0_175, %c0_176, %c0_177] : memref<2x1x32xf32, #tpu.memory_space<vmem>>, vector<1x1x32xf32>
    %213 = vector.shape_cast %212 : vector<1x1x32xf32> to vector<1x32xf32>
    %cst_178 = arith.constant dense<0.000000e+00> : vector<16xf32>
    %214 = vector.multi_reduction <add>, %209, %cst_178 [1] : vector<16x32xf32> to vector<16xf32>
    %215 = vector.shape_cast %214 : vector<16xf32> to vector<16x1xf32>
    %cst_179 = arith.constant 3.200000e+01 : f32
    %216 = vector.broadcast %cst_179 : f32 to vector<16x1xf32>
    %217 = arith.divf %215, %216 : vector<16x1xf32>
    %218 = vector.broadcast %217 : vector<16x1xf32> to vector<16x32xf32>
    %219 = arith.subf %209, %218 : vector<16x32xf32>
    %220 = arith.mulf %219, %219 : vector<16x32xf32>
    %cst_180 = arith.constant dense<0.000000e+00> : vector<16xf32>
    %221 = vector.multi_reduction <add>, %220, %cst_180 [1] : vector<16x32xf32> to vector<16xf32>
    %222 = vector.shape_cast %221 : vector<16xf32> to vector<16x1xf32>
    %cst_181 = arith.constant 3.200000e+01 : f32
    %223 = vector.broadcast %cst_181 : f32 to vector<16x1xf32>
    %224 = arith.divf %222, %223 : vector<16x1xf32>
    %225 = vector.broadcast %217 : vector<16x1xf32> to vector<16x32xf32>
    %226 = arith.subf %209, %225 : vector<16x32xf32>
    %cst_182 = arith.constant 9.99999974E-6 : f32
    %227 = vector.broadcast %cst_182 : f32 to vector<16x1xf32>
    %228 = arith.addf %224, %227 : vector<16x1xf32>
    %229 = math.rsqrt %228 : vector<16x1xf32>
    %230 = vector.broadcast %229 : vector<16x1xf32> to vector<16x32xf32>
    %231 = arith.mulf %226, %230 : vector<16x32xf32>
    %232 = vector.broadcast %211 : vector<1x32xf32> to vector<16x32xf32>
    %233 = arith.mulf %231, %232 : vector<16x32xf32>
    %234 = vector.broadcast %213 : vector<1x32xf32> to vector<16x32xf32>
    %235 = arith.addf %233, %234 : vector<16x32xf32>
    %c1_183 = arith.constant 1 : index
    %c0_184 = arith.constant 0 : index
    %c0_185 = arith.constant 0 : index
    %c0_186 = arith.constant 0 : index
    %236 = vector.load %arg2[%c1_183, %c0_184, %c0_185, %c0_186] : memref<2x4x32x8xf32, #tpu.memory_space<vmem>>, vector<1x1x32x8xf32>
    %237 = vector.shape_cast %236 : vector<1x1x32x8xf32> to vector<32x8xf32>
    %cst_187 = arith.constant dense<0.000000e+00> : vector<16x8xf32>
    %238 = tpu.matmul %235, %237, %cst_187 {dimension_numbers = #tpu.dot_dimension_numbers<[1], [0], [0], [1], [0, 0, 1, 1], [], []>} : vector<16x32xf32>, vector<32x8xf32>, vector<16x8xf32> -> vector<16x8xf32>
    %c1_188 = arith.constant 1 : index
    %c0_189 = arith.constant 0 : index
    %c0_190 = arith.constant 0 : index
    %c0_191 = arith.constant 0 : index
    %239 = vector.load %arg5[%c1_188, %c0_189, %c0_190, %c0_191] : memref<2x4x1x8xf32, #tpu.memory_space<vmem>>, vector<1x1x1x8xf32>
    %240 = vector.shape_cast %239 : vector<1x1x1x8xf32> to vector<1x8xf32>
    %241 = vector.broadcast %240 : vector<1x8xf32> to vector<16x8xf32>
    %242 = arith.addf %238, %241 : vector<16x8xf32>
    %c1_192 = arith.constant 1 : index
    %c0_193 = arith.constant 0 : index
    %c0_194 = arith.constant 0 : index
    %c0_195 = arith.constant 0 : index
    %243 = vector.load %arg3[%c1_192, %c0_193, %c0_194, %c0_195] : memref<2x4x32x8xf32, #tpu.memory_space<vmem>>, vector<1x1x32x8xf32>
    %244 = vector.shape_cast %243 : vector<1x1x32x8xf32> to vector<32x8xf32>
    %cst_196 = arith.constant dense<0.000000e+00> : vector<16x8xf32>
    %245 = tpu.matmul %235, %244, %cst_196 {dimension_numbers = #tpu.dot_dimension_numbers<[1], [0], [0], [1], [0, 0, 1, 1], [], []>} : vector<16x32xf32>, vector<32x8xf32>, vector<16x8xf32> -> vector<16x8xf32>
    %c1_197 = arith.constant 1 : index
    %c0_198 = arith.constant 0 : index
    %c0_199 = arith.constant 0 : index
    %c0_200 = arith.constant 0 : index
    %246 = vector.load %arg6[%c1_197, %c0_198, %c0_199, %c0_200] : memref<2x4x1x8xf32, #tpu.memory_space<vmem>>, vector<1x1x1x8xf32>
    %247 = vector.shape_cast %246 : vector<1x1x1x8xf32> to vector<1x8xf32>
    %248 = vector.broadcast %247 : vector<1x8xf32> to vector<16x8xf32>
    %249 = arith.addf %245, %248 : vector<16x8xf32>
    %c1_201 = arith.constant 1 : index
    %c0_202 = arith.constant 0 : index
    %c0_203 = arith.constant 0 : index
    %c0_204 = arith.constant 0 : index
    %250 = vector.load %arg4[%c1_201, %c0_202, %c0_203, %c0_204] : memref<2x4x32x8xf32, #tpu.memory_space<vmem>>, vector<1x1x32x8xf32>
    %251 = vector.shape_cast %250 : vector<1x1x32x8xf32> to vector<32x8xf32>
    %cst_205 = arith.constant dense<0.000000e+00> : vector<16x8xf32>
    %252 = tpu.matmul %235, %251, %cst_205 {dimension_numbers = #tpu.dot_dimension_numbers<[1], [0], [0], [1], [0, 0, 1, 1], [], []>} : vector<16x32xf32>, vector<32x8xf32>, vector<16x8xf32> -> vector<16x8xf32>
    %c1_206 = arith.constant 1 : index
    %c0_207 = arith.constant 0 : index
    %c0_208 = arith.constant 0 : index
    %c0_209 = arith.constant 0 : index
    %253 = vector.load %arg7[%c1_206, %c0_207, %c0_208, %c0_209] : memref<2x4x1x8xf32, #tpu.memory_space<vmem>>, vector<1x1x1x8xf32>
    %254 = vector.shape_cast %253 : vector<1x1x1x8xf32> to vector<1x8xf32>
    %255 = vector.broadcast %254 : vector<1x8xf32> to vector<16x8xf32>
    %256 = arith.addf %252, %255 : vector<16x8xf32>
    %257 = vector.shape_cast %242 : vector<16x8xf32> to vector<2x8x8xf32>
    %258 = vector.shape_cast %249 : vector<16x8xf32> to vector<2x8x8xf32>
    %259 = vector.shape_cast %256 : vector<16x8xf32> to vector<2x8x8xf32>
    "tpu.trace_start"() <{level = 10 : i32, message = "bqd,bkd->bqk"}> : () -> ()
    %cst_210 = arith.constant dense<0.000000e+00> : vector<2x8x8xf32>
    %260 = tpu.matmul %257, %258, %cst_210 {dimension_numbers = #tpu.dot_dimension_numbers<[2], [2], [1], [1], [0, 0, 0, 1, 1, 1], [0], [0]>} : vector<2x8x8xf32>, vector<2x8x8xf32>, vector<2x8x8xf32> -> vector<2x8x8xf32>
    "tpu.trace_stop"() : () -> ()
    %cst_211 = arith.constant dense<0xFF800000> : vector<2x8xf32>
    %261 = vector.multi_reduction <maximumf>, %260, %cst_211 [2] : vector<2x8x8xf32> to vector<2x8xf32>
    %262 = vector.shape_cast %261 : vector<2x8xf32> to vector<2x8x1xf32>
    %263 = vector.broadcast %262 : vector<2x8x1xf32> to vector<2x8x8xf32>
    %264 = arith.subf %260, %263 : vector<2x8x8xf32>
    %265 = math.exp %264 : vector<2x8x8xf32>
    %cst_212 = arith.constant dense<0.000000e+00> : vector<2x8xf32>
    %266 = vector.multi_reduction <add>, %265, %cst_212 [2] : vector<2x8x8xf32> to vector<2x8xf32>
    %267 = vector.shape_cast %266 : vector<2x8xf32> to vector<2x8x1xf32>
    %268 = vector.broadcast %267 : vector<2x8x1xf32> to vector<2x8x8xf32>
    %269 = arith.divf %265, %268 : vector<2x8x8xf32>
    "tpu.trace_start"() <{level = 10 : i32, message = "bqk,bkd->bqd"}> : () -> ()
    %cst_213 = arith.constant dense<0.000000e+00> : vector<2x8x8xf32>
    %270 = tpu.matmul %269, %259, %cst_213 {dimension_numbers = #tpu.dot_dimension_numbers<[2], [1], [1], [2], [0, 0, 0, 1, 1, 2], [0], [0]>} : vector<2x8x8xf32>, vector<2x8x8xf32>, vector<2x8x8xf32> -> vector<2x8x8xf32>
    "tpu.trace_stop"() : () -> ()
    %271 = vector.shape_cast %270 : vector<2x8x8xf32> to vector<16x8xf32>
    %c1_214 = arith.constant 1 : index
    %c0_215 = arith.constant 0 : index
    %c0_216 = arith.constant 0 : index
    %c0_217 = arith.constant 0 : index
    %272 = vector.load %arg8[%c1_214, %c0_215, %c0_216, %c0_217] : memref<2x4x8x32xf32, #tpu.memory_space<vmem>>, vector<1x1x8x32xf32>
    %273 = vector.shape_cast %272 : vector<1x1x8x32xf32> to vector<8x32xf32>
    %cst_218 = arith.constant dense<0.000000e+00> : vector<16x32xf32>
    %274 = tpu.matmul %271, %273, %cst_218 {dimension_numbers = #tpu.dot_dimension_numbers<[1], [0], [0], [1], [0, 0, 1, 1], [], []>} : vector<16x8xf32>, vector<8x32xf32>, vector<16x32xf32> -> vector<16x32xf32>
    %c1_219 = arith.constant 1 : index
    %c1_220 = arith.constant 1 : index
    %c0_221 = arith.constant 0 : index
    %c0_222 = arith.constant 0 : index
    %275 = vector.load %arg2[%c1_219, %c1_220, %c0_221, %c0_222] : memref<2x4x32x8xf32, #tpu.memory_space<vmem>>, vector<1x1x32x8xf32>
    %276 = vector.shape_cast %275 : vector<1x1x32x8xf32> to vector<32x8xf32>
    %cst_223 = arith.constant dense<0.000000e+00> : vector<16x8xf32>
    %277 = tpu.matmul %235, %276, %cst_223 {dimension_numbers = #tpu.dot_dimension_numbers<[1], [0], [0], [1], [0, 0, 1, 1], [], []>} : vector<16x32xf32>, vector<32x8xf32>, vector<16x8xf32> -> vector<16x8xf32>
    %c1_224 = arith.constant 1 : index
    %c1_225 = arith.constant 1 : index
    %c0_226 = arith.constant 0 : index
    %c0_227 = arith.constant 0 : index
    %278 = vector.load %arg5[%c1_224, %c1_225, %c0_226, %c0_227] : memref<2x4x1x8xf32, #tpu.memory_space<vmem>>, vector<1x1x1x8xf32>
    %279 = vector.shape_cast %278 : vector<1x1x1x8xf32> to vector<1x8xf32>
    %280 = vector.broadcast %279 : vector<1x8xf32> to vector<16x8xf32>
    %281 = arith.addf %277, %280 : vector<16x8xf32>
    %c1_228 = arith.constant 1 : index
    %c1_229 = arith.constant 1 : index
    %c0_230 = arith.constant 0 : index
    %c0_231 = arith.constant 0 : index
    %282 = vector.load %arg3[%c1_228, %c1_229, %c0_230, %c0_231] : memref<2x4x32x8xf32, #tpu.memory_space<vmem>>, vector<1x1x32x8xf32>
    %283 = vector.shape_cast %282 : vector<1x1x32x8xf32> to vector<32x8xf32>
    %cst_232 = arith.constant dense<0.000000e+00> : vector<16x8xf32>
    %284 = tpu.matmul %235, %283, %cst_232 {dimension_numbers = #tpu.dot_dimension_numbers<[1], [0], [0], [1], [0, 0, 1, 1], [], []>} : vector<16x32xf32>, vector<32x8xf32>, vector<16x8xf32> -> vector<16x8xf32>
    %c1_233 = arith.constant 1 : index
    %c1_234 = arith.constant 1 : index
    %c0_235 = arith.constant 0 : index
    %c0_236 = arith.constant 0 : index
    %285 = vector.load %arg6[%c1_233, %c1_234, %c0_235, %c0_236] : memref<2x4x1x8xf32, #tpu.memory_space<vmem>>, vector<1x1x1x8xf32>
    %286 = vector.shape_cast %285 : vector<1x1x1x8xf32> to vector<1x8xf32>
    %287 = vector.broadcast %286 : vector<1x8xf32> to vector<16x8xf32>
    %288 = arith.addf %284, %287 : vector<16x8xf32>
    %c1_237 = arith.constant 1 : index
    %c1_238 = arith.constant 1 : index
    %c0_239 = arith.constant 0 : index
    %c0_240 = arith.constant 0 : index
    %289 = vector.load %arg4[%c1_237, %c1_238, %c0_239, %c0_240] : memref<2x4x32x8xf32, #tpu.memory_space<vmem>>, vector<1x1x32x8xf32>
    %290 = vector.shape_cast %289 : vector<1x1x32x8xf32> to vector<32x8xf32>
    %cst_241 = arith.constant dense<0.000000e+00> : vector<16x8xf32>
    %291 = tpu.matmul %235, %290, %cst_241 {dimension_numbers = #tpu.dot_dimension_numbers<[1], [0], [0], [1], [0, 0, 1, 1], [], []>} : vector<16x32xf32>, vector<32x8xf32>, vector<16x8xf32> -> vector<16x8xf32>
    %c1_242 = arith.constant 1 : index
    %c1_243 = arith.constant 1 : index
    %c0_244 = arith.constant 0 : index
    %c0_245 = arith.constant 0 : index
    %292 = vector.load %arg7[%c1_242, %c1_243, %c0_244, %c0_245] : memref<2x4x1x8xf32, #tpu.memory_space<vmem>>, vector<1x1x1x8xf32>
    %293 = vector.shape_cast %292 : vector<1x1x1x8xf32> to vector<1x8xf32>
    %294 = vector.broadcast %293 : vector<1x8xf32> to vector<16x8xf32>
    %295 = arith.addf %291, %294 : vector<16x8xf32>
    %296 = vector.shape_cast %281 : vector<16x8xf32> to vector<2x8x8xf32>
    %297 = vector.shape_cast %288 : vector<16x8xf32> to vector<2x8x8xf32>
    %298 = vector.shape_cast %295 : vector<16x8xf32> to vector<2x8x8xf32>
    "tpu.trace_start"() <{level = 10 : i32, message = "bqd,bkd->bqk"}> : () -> ()
    %cst_246 = arith.constant dense<0.000000e+00> : vector<2x8x8xf32>
    %299 = tpu.matmul %296, %297, %cst_246 {dimension_numbers = #tpu.dot_dimension_numbers<[2], [2], [1], [1], [0, 0, 0, 1, 1, 1], [0], [0]>} : vector<2x8x8xf32>, vector<2x8x8xf32>, vector<2x8x8xf32> -> vector<2x8x8xf32>
    "tpu.trace_stop"() : () -> ()
    %cst_247 = arith.constant dense<0xFF800000> : vector<2x8xf32>
    %300 = vector.multi_reduction <maximumf>, %299, %cst_247 [2] : vector<2x8x8xf32> to vector<2x8xf32>
    %301 = vector.shape_cast %300 : vector<2x8xf32> to vector<2x8x1xf32>
    %302 = vector.broadcast %301 : vector<2x8x1xf32> to vector<2x8x8xf32>
    %303 = arith.subf %299, %302 : vector<2x8x8xf32>
    %304 = math.exp %303 : vector<2x8x8xf32>
    %cst_248 = arith.constant dense<0.000000e+00> : vector<2x8xf32>
    %305 = vector.multi_reduction <add>, %304, %cst_248 [2] : vector<2x8x8xf32> to vector<2x8xf32>
    %306 = vector.shape_cast %305 : vector<2x8xf32> to vector<2x8x1xf32>
    %307 = vector.broadcast %306 : vector<2x8x1xf32> to vector<2x8x8xf32>
    %308 = arith.divf %304, %307 : vector<2x8x8xf32>
    "tpu.trace_start"() <{level = 10 : i32, message = "bqk,bkd->bqd"}> : () -> ()
    %cst_249 = arith.constant dense<0.000000e+00> : vector<2x8x8xf32>
    %309 = tpu.matmul %308, %298, %cst_249 {dimension_numbers = #tpu.dot_dimension_numbers<[2], [1], [1], [2], [0, 0, 0, 1, 1, 2], [0], [0]>} : vector<2x8x8xf32>, vector<2x8x8xf32>, vector<2x8x8xf32> -> vector<2x8x8xf32>
    "tpu.trace_stop"() : () -> ()
    %310 = vector.shape_cast %309 : vector<2x8x8xf32> to vector<16x8xf32>
    %c1_250 = arith.constant 1 : index
    %c1_251 = arith.constant 1 : index
    %c0_252 = arith.constant 0 : index
    %c0_253 = arith.constant 0 : index
    %311 = vector.load %arg8[%c1_250, %c1_251, %c0_252, %c0_253] : memref<2x4x8x32xf32, #tpu.memory_space<vmem>>, vector<1x1x8x32xf32>
    %312 = vector.shape_cast %311 : vector<1x1x8x32xf32> to vector<8x32xf32>
    %cst_254 = arith.constant dense<0.000000e+00> : vector<16x32xf32>
    %313 = tpu.matmul %310, %312, %cst_254 {dimension_numbers = #tpu.dot_dimension_numbers<[1], [0], [0], [1], [0, 0, 1, 1], [], []>} : vector<16x8xf32>, vector<8x32xf32>, vector<16x32xf32> -> vector<16x32xf32>
    %314 = arith.addf %274, %313 : vector<16x32xf32>
    %c1_255 = arith.constant 1 : index
    %c2_256 = arith.constant 2 : index
    %c0_257 = arith.constant 0 : index
    %c0_258 = arith.constant 0 : index
    %315 = vector.load %arg2[%c1_255, %c2_256, %c0_257, %c0_258] : memref<2x4x32x8xf32, #tpu.memory_space<vmem>>, vector<1x1x32x8xf32>
    %316 = vector.shape_cast %315 : vector<1x1x32x8xf32> to vector<32x8xf32>
    %cst_259 = arith.constant dense<0.000000e+00> : vector<16x8xf32>
    %317 = tpu.matmul %235, %316, %cst_259 {dimension_numbers = #tpu.dot_dimension_numbers<[1], [0], [0], [1], [0, 0, 1, 1], [], []>} : vector<16x32xf32>, vector<32x8xf32>, vector<16x8xf32> -> vector<16x8xf32>
    %c1_260 = arith.constant 1 : index
    %c2_261 = arith.constant 2 : index
    %c0_262 = arith.constant 0 : index
    %c0_263 = arith.constant 0 : index
    %318 = vector.load %arg5[%c1_260, %c2_261, %c0_262, %c0_263] : memref<2x4x1x8xf32, #tpu.memory_space<vmem>>, vector<1x1x1x8xf32>
    %319 = vector.shape_cast %318 : vector<1x1x1x8xf32> to vector<1x8xf32>
    %320 = vector.broadcast %319 : vector<1x8xf32> to vector<16x8xf32>
    %321 = arith.addf %317, %320 : vector<16x8xf32>
    %c1_264 = arith.constant 1 : index
    %c2_265 = arith.constant 2 : index
    %c0_266 = arith.constant 0 : index
    %c0_267 = arith.constant 0 : index
    %322 = vector.load %arg3[%c1_264, %c2_265, %c0_266, %c0_267] : memref<2x4x32x8xf32, #tpu.memory_space<vmem>>, vector<1x1x32x8xf32>
    %323 = vector.shape_cast %322 : vector<1x1x32x8xf32> to vector<32x8xf32>
    %cst_268 = arith.constant dense<0.000000e+00> : vector<16x8xf32>
    %324 = tpu.matmul %235, %323, %cst_268 {dimension_numbers = #tpu.dot_dimension_numbers<[1], [0], [0], [1], [0, 0, 1, 1], [], []>} : vector<16x32xf32>, vector<32x8xf32>, vector<16x8xf32> -> vector<16x8xf32>
    %c1_269 = arith.constant 1 : index
    %c2_270 = arith.constant 2 : index
    %c0_271 = arith.constant 0 : index
    %c0_272 = arith.constant 0 : index
    %325 = vector.load %arg6[%c1_269, %c2_270, %c0_271, %c0_272] : memref<2x4x1x8xf32, #tpu.memory_space<vmem>>, vector<1x1x1x8xf32>
    %326 = vector.shape_cast %325 : vector<1x1x1x8xf32> to vector<1x8xf32>
    %327 = vector.broadcast %326 : vector<1x8xf32> to vector<16x8xf32>
    %328 = arith.addf %324, %327 : vector<16x8xf32>
    %c1_273 = arith.constant 1 : index
    %c2_274 = arith.constant 2 : index
    %c0_275 = arith.constant 0 : index
    %c0_276 = arith.constant 0 : index
    %329 = vector.load %arg4[%c1_273, %c2_274, %c0_275, %c0_276] : memref<2x4x32x8xf32, #tpu.memory_space<vmem>>, vector<1x1x32x8xf32>
    %330 = vector.shape_cast %329 : vector<1x1x32x8xf32> to vector<32x8xf32>
    %cst_277 = arith.constant dense<0.000000e+00> : vector<16x8xf32>
    %331 = tpu.matmul %235, %330, %cst_277 {dimension_numbers = #tpu.dot_dimension_numbers<[1], [0], [0], [1], [0, 0, 1, 1], [], []>} : vector<16x32xf32>, vector<32x8xf32>, vector<16x8xf32> -> vector<16x8xf32>
    %c1_278 = arith.constant 1 : index
    %c2_279 = arith.constant 2 : index
    %c0_280 = arith.constant 0 : index
    %c0_281 = arith.constant 0 : index
    %332 = vector.load %arg7[%c1_278, %c2_279, %c0_280, %c0_281] : memref<2x4x1x8xf32, #tpu.memory_space<vmem>>, vector<1x1x1x8xf32>
    %333 = vector.shape_cast %332 : vector<1x1x1x8xf32> to vector<1x8xf32>
    %334 = vector.broadcast %333 : vector<1x8xf32> to vector<16x8xf32>
    %335 = arith.addf %331, %334 : vector<16x8xf32>
    %336 = vector.shape_cast %321 : vector<16x8xf32> to vector<2x8x8xf32>
    %337 = vector.shape_cast %328 : vector<16x8xf32> to vector<2x8x8xf32>
    %338 = vector.shape_cast %335 : vector<16x8xf32> to vector<2x8x8xf32>
    "tpu.trace_start"() <{level = 10 : i32, message = "bqd,bkd->bqk"}> : () -> ()
    %cst_282 = arith.constant dense<0.000000e+00> : vector<2x8x8xf32>
    %339 = tpu.matmul %336, %337, %cst_282 {dimension_numbers = #tpu.dot_dimension_numbers<[2], [2], [1], [1], [0, 0, 0, 1, 1, 1], [0], [0]>} : vector<2x8x8xf32>, vector<2x8x8xf32>, vector<2x8x8xf32> -> vector<2x8x8xf32>
    "tpu.trace_stop"() : () -> ()
    %cst_283 = arith.constant dense<0xFF800000> : vector<2x8xf32>
    %340 = vector.multi_reduction <maximumf>, %339, %cst_283 [2] : vector<2x8x8xf32> to vector<2x8xf32>
    %341 = vector.shape_cast %340 : vector<2x8xf32> to vector<2x8x1xf32>
    %342 = vector.broadcast %341 : vector<2x8x1xf32> to vector<2x8x8xf32>
    %343 = arith.subf %339, %342 : vector<2x8x8xf32>
    %344 = math.exp %343 : vector<2x8x8xf32>
    %cst_284 = arith.constant dense<0.000000e+00> : vector<2x8xf32>
    %345 = vector.multi_reduction <add>, %344, %cst_284 [2] : vector<2x8x8xf32> to vector<2x8xf32>
    %346 = vector.shape_cast %345 : vector<2x8xf32> to vector<2x8x1xf32>
    %347 = vector.broadcast %346 : vector<2x8x1xf32> to vector<2x8x8xf32>
    %348 = arith.divf %344, %347 : vector<2x8x8xf32>
    "tpu.trace_start"() <{level = 10 : i32, message = "bqk,bkd->bqd"}> : () -> ()
    %cst_285 = arith.constant dense<0.000000e+00> : vector<2x8x8xf32>
    %349 = tpu.matmul %348, %338, %cst_285 {dimension_numbers = #tpu.dot_dimension_numbers<[2], [1], [1], [2], [0, 0, 0, 1, 1, 2], [0], [0]>} : vector<2x8x8xf32>, vector<2x8x8xf32>, vector<2x8x8xf32> -> vector<2x8x8xf32>
    "tpu.trace_stop"() : () -> ()
    %350 = vector.shape_cast %349 : vector<2x8x8xf32> to vector<16x8xf32>
    %c1_286 = arith.constant 1 : index
    %c2_287 = arith.constant 2 : index
    %c0_288 = arith.constant 0 : index
    %c0_289 = arith.constant 0 : index
    %351 = vector.load %arg8[%c1_286, %c2_287, %c0_288, %c0_289] : memref<2x4x8x32xf32, #tpu.memory_space<vmem>>, vector<1x1x8x32xf32>
    %352 = vector.shape_cast %351 : vector<1x1x8x32xf32> to vector<8x32xf32>
    %cst_290 = arith.constant dense<0.000000e+00> : vector<16x32xf32>
    %353 = tpu.matmul %350, %352, %cst_290 {dimension_numbers = #tpu.dot_dimension_numbers<[1], [0], [0], [1], [0, 0, 1, 1], [], []>} : vector<16x8xf32>, vector<8x32xf32>, vector<16x32xf32> -> vector<16x32xf32>
    %354 = arith.addf %314, %353 : vector<16x32xf32>
    %c1_291 = arith.constant 1 : index
    %c3_292 = arith.constant 3 : index
    %c0_293 = arith.constant 0 : index
    %c0_294 = arith.constant 0 : index
    %355 = vector.load %arg2[%c1_291, %c3_292, %c0_293, %c0_294] : memref<2x4x32x8xf32, #tpu.memory_space<vmem>>, vector<1x1x32x8xf32>
    %356 = vector.shape_cast %355 : vector<1x1x32x8xf32> to vector<32x8xf32>
    %cst_295 = arith.constant dense<0.000000e+00> : vector<16x8xf32>
    %357 = tpu.matmul %235, %356, %cst_295 {dimension_numbers = #tpu.dot_dimension_numbers<[1], [0], [0], [1], [0, 0, 1, 1], [], []>} : vector<16x32xf32>, vector<32x8xf32>, vector<16x8xf32> -> vector<16x8xf32>
    %c1_296 = arith.constant 1 : index
    %c3_297 = arith.constant 3 : index
    %c0_298 = arith.constant 0 : index
    %c0_299 = arith.constant 0 : index
    %358 = vector.load %arg5[%c1_296, %c3_297, %c0_298, %c0_299] : memref<2x4x1x8xf32, #tpu.memory_space<vmem>>, vector<1x1x1x8xf32>
    %359 = vector.shape_cast %358 : vector<1x1x1x8xf32> to vector<1x8xf32>
    %360 = vector.broadcast %359 : vector<1x8xf32> to vector<16x8xf32>
    %361 = arith.addf %357, %360 : vector<16x8xf32>
    %c1_300 = arith.constant 1 : index
    %c3_301 = arith.constant 3 : index
    %c0_302 = arith.constant 0 : index
    %c0_303 = arith.constant 0 : index
    %362 = vector.load %arg3[%c1_300, %c3_301, %c0_302, %c0_303] : memref<2x4x32x8xf32, #tpu.memory_space<vmem>>, vector<1x1x32x8xf32>
    %363 = vector.shape_cast %362 : vector<1x1x32x8xf32> to vector<32x8xf32>
    %cst_304 = arith.constant dense<0.000000e+00> : vector<16x8xf32>
    %364 = tpu.matmul %235, %363, %cst_304 {dimension_numbers = #tpu.dot_dimension_numbers<[1], [0], [0], [1], [0, 0, 1, 1], [], []>} : vector<16x32xf32>, vector<32x8xf32>, vector<16x8xf32> -> vector<16x8xf32>
    %c1_305 = arith.constant 1 : index
    %c3_306 = arith.constant 3 : index
    %c0_307 = arith.constant 0 : index
    %c0_308 = arith.constant 0 : index
    %365 = vector.load %arg6[%c1_305, %c3_306, %c0_307, %c0_308] : memref<2x4x1x8xf32, #tpu.memory_space<vmem>>, vector<1x1x1x8xf32>
    %366 = vector.shape_cast %365 : vector<1x1x1x8xf32> to vector<1x8xf32>
    %367 = vector.broadcast %366 : vector<1x8xf32> to vector<16x8xf32>
    %368 = arith.addf %364, %367 : vector<16x8xf32>
    %c1_309 = arith.constant 1 : index
    %c3_310 = arith.constant 3 : index
    %c0_311 = arith.constant 0 : index
    %c0_312 = arith.constant 0 : index
    %369 = vector.load %arg4[%c1_309, %c3_310, %c0_311, %c0_312] : memref<2x4x32x8xf32, #tpu.memory_space<vmem>>, vector<1x1x32x8xf32>
    %370 = vector.shape_cast %369 : vector<1x1x32x8xf32> to vector<32x8xf32>
    %cst_313 = arith.constant dense<0.000000e+00> : vector<16x8xf32>
    %371 = tpu.matmul %235, %370, %cst_313 {dimension_numbers = #tpu.dot_dimension_numbers<[1], [0], [0], [1], [0, 0, 1, 1], [], []>} : vector<16x32xf32>, vector<32x8xf32>, vector<16x8xf32> -> vector<16x8xf32>
    %c1_314 = arith.constant 1 : index
    %c3_315 = arith.constant 3 : index
    %c0_316 = arith.constant 0 : index
    %c0_317 = arith.constant 0 : index
    %372 = vector.load %arg7[%c1_314, %c3_315, %c0_316, %c0_317] : memref<2x4x1x8xf32, #tpu.memory_space<vmem>>, vector<1x1x1x8xf32>
    %373 = vector.shape_cast %372 : vector<1x1x1x8xf32> to vector<1x8xf32>
    %374 = vector.broadcast %373 : vector<1x8xf32> to vector<16x8xf32>
    %375 = arith.addf %371, %374 : vector<16x8xf32>
    %376 = vector.shape_cast %361 : vector<16x8xf32> to vector<2x8x8xf32>
    %377 = vector.shape_cast %368 : vector<16x8xf32> to vector<2x8x8xf32>
    %378 = vector.shape_cast %375 : vector<16x8xf32> to vector<2x8x8xf32>
    "tpu.trace_start"() <{level = 10 : i32, message = "bqd,bkd->bqk"}> : () -> ()
    %cst_318 = arith.constant dense<0.000000e+00> : vector<2x8x8xf32>
    %379 = tpu.matmul %376, %377, %cst_318 {dimension_numbers = #tpu.dot_dimension_numbers<[2], [2], [1], [1], [0, 0, 0, 1, 1, 1], [0], [0]>} : vector<2x8x8xf32>, vector<2x8x8xf32>, vector<2x8x8xf32> -> vector<2x8x8xf32>
    "tpu.trace_stop"() : () -> ()
    %cst_319 = arith.constant dense<0xFF800000> : vector<2x8xf32>
    %380 = vector.multi_reduction <maximumf>, %379, %cst_319 [2] : vector<2x8x8xf32> to vector<2x8xf32>
    %381 = vector.shape_cast %380 : vector<2x8xf32> to vector<2x8x1xf32>
    %382 = vector.broadcast %381 : vector<2x8x1xf32> to vector<2x8x8xf32>
    %383 = arith.subf %379, %382 : vector<2x8x8xf32>
    %384 = math.exp %383 : vector<2x8x8xf32>
    %cst_320 = arith.constant dense<0.000000e+00> : vector<2x8xf32>
    %385 = vector.multi_reduction <add>, %384, %cst_320 [2] : vector<2x8x8xf32> to vector<2x8xf32>
    %386 = vector.shape_cast %385 : vector<2x8xf32> to vector<2x8x1xf32>
    %387 = vector.broadcast %386 : vector<2x8x1xf32> to vector<2x8x8xf32>
    %388 = arith.divf %384, %387 : vector<2x8x8xf32>
    "tpu.trace_start"() <{level = 10 : i32, message = "bqk,bkd->bqd"}> : () -> ()
    %cst_321 = arith.constant dense<0.000000e+00> : vector<2x8x8xf32>
    %389 = tpu.matmul %388, %378, %cst_321 {dimension_numbers = #tpu.dot_dimension_numbers<[2], [1], [1], [2], [0, 0, 0, 1, 1, 2], [0], [0]>} : vector<2x8x8xf32>, vector<2x8x8xf32>, vector<2x8x8xf32> -> vector<2x8x8xf32>
    "tpu.trace_stop"() : () -> ()
    %390 = vector.shape_cast %389 : vector<2x8x8xf32> to vector<16x8xf32>
    %c1_322 = arith.constant 1 : index
    %c3_323 = arith.constant 3 : index
    %c0_324 = arith.constant 0 : index
    %c0_325 = arith.constant 0 : index
    %391 = vector.load %arg8[%c1_322, %c3_323, %c0_324, %c0_325] : memref<2x4x8x32xf32, #tpu.memory_space<vmem>>, vector<1x1x8x32xf32>
    %392 = vector.shape_cast %391 : vector<1x1x8x32xf32> to vector<8x32xf32>
    %cst_326 = arith.constant dense<0.000000e+00> : vector<16x32xf32>
    %393 = tpu.matmul %390, %392, %cst_326 {dimension_numbers = #tpu.dot_dimension_numbers<[1], [0], [0], [1], [0, 0, 1, 1], [], []>} : vector<16x8xf32>, vector<8x32xf32>, vector<16x32xf32> -> vector<16x32xf32>
    %394 = arith.addf %354, %393 : vector<16x32xf32>
    %c1_327 = arith.constant 1 : index
    %c0_328 = arith.constant 0 : index
    %c0_329 = arith.constant 0 : index
    %395 = vector.load %arg9[%c1_327, %c0_328, %c0_329] : memref<2x1x32xf32, #tpu.memory_space<vmem>>, vector<1x1x32xf32>
    %396 = vector.shape_cast %395 : vector<1x1x32xf32> to vector<1x32xf32>
    %397 = vector.broadcast %396 : vector<1x32xf32> to vector<16x32xf32>
    %398 = arith.addf %394, %397 : vector<16x32xf32>
    %399 = arith.addf %235, %398 : vector<16x32xf32>
    %c1_330 = arith.constant 1 : index
    %c0_331 = arith.constant 0 : index
    %c0_332 = arith.constant 0 : index
    %400 = vector.load %arg14[%c1_330, %c0_331, %c0_332] : memref<2x1x32xf32, #tpu.memory_space<vmem>>, vector<1x1x32xf32>
    %401 = vector.shape_cast %400 : vector<1x1x32xf32> to vector<1x32xf32>
    %c1_333 = arith.constant 1 : index
    %c0_334 = arith.constant 0 : index
    %c0_335 = arith.constant 0 : index
    %402 = vector.load %arg15[%c1_333, %c0_334, %c0_335] : memref<2x1x32xf32, #tpu.memory_space<vmem>>, vector<1x1x32xf32>
    %403 = vector.shape_cast %402 : vector<1x1x32xf32> to vector<1x32xf32>
    %cst_336 = arith.constant dense<0.000000e+00> : vector<16xf32>
    %404 = vector.multi_reduction <add>, %399, %cst_336 [1] : vector<16x32xf32> to vector<16xf32>
    %405 = vector.shape_cast %404 : vector<16xf32> to vector<16x1xf32>
    %cst_337 = arith.constant 3.200000e+01 : f32
    %406 = vector.broadcast %cst_337 : f32 to vector<16x1xf32>
    %407 = arith.divf %405, %406 : vector<16x1xf32>
    %408 = vector.broadcast %407 : vector<16x1xf32> to vector<16x32xf32>
    %409 = arith.subf %399, %408 : vector<16x32xf32>
    %410 = arith.mulf %409, %409 : vector<16x32xf32>
    %cst_338 = arith.constant dense<0.000000e+00> : vector<16xf32>
    %411 = vector.multi_reduction <add>, %410, %cst_338 [1] : vector<16x32xf32> to vector<16xf32>
    %412 = vector.shape_cast %411 : vector<16xf32> to vector<16x1xf32>
    %cst_339 = arith.constant 3.200000e+01 : f32
    %413 = vector.broadcast %cst_339 : f32 to vector<16x1xf32>
    %414 = arith.divf %412, %413 : vector<16x1xf32>
    %415 = vector.broadcast %407 : vector<16x1xf32> to vector<16x32xf32>
    %416 = arith.subf %399, %415 : vector<16x32xf32>
    %cst_340 = arith.constant 9.99999974E-6 : f32
    %417 = vector.broadcast %cst_340 : f32 to vector<16x1xf32>
    %418 = arith.addf %414, %417 : vector<16x1xf32>
    %419 = math.rsqrt %418 : vector<16x1xf32>
    %420 = vector.broadcast %419 : vector<16x1xf32> to vector<16x32xf32>
    %421 = arith.mulf %416, %420 : vector<16x32xf32>
    %422 = vector.broadcast %401 : vector<1x32xf32> to vector<16x32xf32>
    %423 = arith.mulf %421, %422 : vector<16x32xf32>
    %424 = vector.broadcast %403 : vector<1x32xf32> to vector<16x32xf32>
    %425 = arith.addf %423, %424 : vector<16x32xf32>
    %c1_341 = arith.constant 1 : index
    %c0_342 = arith.constant 0 : index
    %c0_343 = arith.constant 0 : index
    %426 = vector.load %arg10[%c1_341, %c0_342, %c0_343] : memref<2x32x128xf32, #tpu.memory_space<vmem>>, vector<1x32x128xf32>
    %427 = vector.shape_cast %426 : vector<1x32x128xf32> to vector<32x128xf32>
    %cst_344 = arith.constant dense<0.000000e+00> : vector<16x128xf32>
    %428 = tpu.matmul %425, %427, %cst_344 {dimension_numbers = #tpu.dot_dimension_numbers<[1], [0], [0], [1], [0, 0, 1, 1], [], []>} : vector<16x32xf32>, vector<32x128xf32>, vector<16x128xf32> -> vector<16x128xf32>
    %c1_345 = arith.constant 1 : index
    %c0_346 = arith.constant 0 : index
    %c0_347 = arith.constant 0 : index
    %429 = vector.load %arg11[%c1_345, %c0_346, %c0_347] : memref<2x1x128xf32, #tpu.memory_space<vmem>>, vector<1x1x128xf32>
    %430 = vector.shape_cast %429 : vector<1x1x128xf32> to vector<1x128xf32>
    %431 = vector.broadcast %430 : vector<1x128xf32> to vector<16x128xf32>
    %432 = arith.addf %428, %431 : vector<16x128xf32>
    %cst_348 = arith.constant 0.000000e+00 : f32
    %433 = vector.broadcast %cst_348 : f32 to vector<16x128xf32>
    %434 = arith.maximumf %432, %433 : vector<16x128xf32>
    %c1_349 = arith.constant 1 : index
    %c0_350 = arith.constant 0 : index
    %c0_351 = arith.constant 0 : index
    %435 = vector.load %arg12[%c1_349, %c0_350, %c0_351] : memref<2x128x32xf32, #tpu.memory_space<vmem>>, vector<1x128x32xf32>
    %436 = vector.shape_cast %435 : vector<1x128x32xf32> to vector<128x32xf32>
    %cst_352 = arith.constant dense<0.000000e+00> : vector<16x32xf32>
    %437 = tpu.matmul %434, %436, %cst_352 {dimension_numbers = #tpu.dot_dimension_numbers<[1], [0], [0], [1], [0, 0, 1, 1], [], []>} : vector<16x128xf32>, vector<128x32xf32>, vector<16x32xf32> -> vector<16x32xf32>
    %c1_353 = arith.constant 1 : index
    %c0_354 = arith.constant 0 : index
    %c0_355 = arith.constant 0 : index
    %438 = vector.load %arg13[%c1_353, %c0_354, %c0_355] : memref<2x1x32xf32, #tpu.memory_space<vmem>>, vector<1x1x32xf32>
    %439 = vector.shape_cast %438 : vector<1x1x32xf32> to vector<1x32xf32>
    %440 = vector.broadcast %439 : vector<1x32xf32> to vector<16x32xf32>
    %441 = arith.addf %437, %440 : vector<16x32xf32>
    %442 = arith.addf %425, %441 : vector<16x32xf32>
    %c1_356 = arith.constant 1 : index
    %c0_357 = arith.constant 0 : index
    %c0_358 = arith.constant 0 : index
    %443 = vector.load %arg16[%c1_356, %c0_357, %c0_358] : memref<2x1x32xf32, #tpu.memory_space<vmem>>, vector<1x1x32xf32>
    %444 = vector.shape_cast %443 : vector<1x1x32xf32> to vector<1x32xf32>
    %c1_359 = arith.constant 1 : index
    %c0_360 = arith.constant 0 : index
    %c0_361 = arith.constant 0 : index
    %445 = vector.load %arg17[%c1_359, %c0_360, %c0_361] : memref<2x1x32xf32, #tpu.memory_space<vmem>>, vector<1x1x32xf32>
    %446 = vector.shape_cast %445 : vector<1x1x32xf32> to vector<1x32xf32>
    %cst_362 = arith.constant dense<0.000000e+00> : vector<16xf32>
    %447 = vector.multi_reduction <add>, %442, %cst_362 [1] : vector<16x32xf32> to vector<16xf32>
    %448 = vector.shape_cast %447 : vector<16xf32> to vector<16x1xf32>
    %cst_363 = arith.constant 3.200000e+01 : f32
    %449 = vector.broadcast %cst_363 : f32 to vector<16x1xf32>
    %450 = arith.divf %448, %449 : vector<16x1xf32>
    %451 = vector.broadcast %450 : vector<16x1xf32> to vector<16x32xf32>
    %452 = arith.subf %442, %451 : vector<16x32xf32>
    %453 = arith.mulf %452, %452 : vector<16x32xf32>
    %cst_364 = arith.constant dense<0.000000e+00> : vector<16xf32>
    %454 = vector.multi_reduction <add>, %453, %cst_364 [1] : vector<16x32xf32> to vector<16xf32>
    %455 = vector.shape_cast %454 : vector<16xf32> to vector<16x1xf32>
    %cst_365 = arith.constant 3.200000e+01 : f32
    %456 = vector.broadcast %cst_365 : f32 to vector<16x1xf32>
    %457 = arith.divf %455, %456 : vector<16x1xf32>
    %458 = vector.broadcast %450 : vector<16x1xf32> to vector<16x32xf32>
    %459 = arith.subf %442, %458 : vector<16x32xf32>
    %cst_366 = arith.constant 9.99999974E-6 : f32
    %460 = vector.broadcast %cst_366 : f32 to vector<16x1xf32>
    %461 = arith.addf %457, %460 : vector<16x1xf32>
    %462 = math.rsqrt %461 : vector<16x1xf32>
    %463 = vector.broadcast %462 : vector<16x1xf32> to vector<16x32xf32>
    %464 = arith.mulf %459, %463 : vector<16x32xf32>
    %465 = vector.broadcast %444 : vector<1x32xf32> to vector<16x32xf32>
    %466 = arith.mulf %464, %465 : vector<16x32xf32>
    %467 = vector.broadcast %446 : vector<1x32xf32> to vector<16x32xf32>
    %468 = arith.addf %466, %467 : vector<16x32xf32>
    %c0_367 = arith.constant 0 : index
    %c0_368 = arith.constant 0 : index
    %469 = vector.load %arg18[%c0_367, %c0_368] : memref<16x32xf32, #tpu.memory_space<vmem>>, vector<16x32xf32>
    tpu.vector_store %arg18[%c0_367, %c0_368], %468 {strides = array<i32>} : memref<16x32xf32, #tpu.memory_space<vmem>>, vector<16x32xf32>,
    return
  }
}

</mosaic_0001>

<bundles_post_ra>
// kernel: tpu_custom_call.1
= control target key start
LH: loop header
LB: loop body
LE: loop exit
PB: predicated region body
PF: predicated region fallthrough
CT: control target
= control target key end

     0   :  { %s4098_s0 = inlined_call_operand.vmem [shape: f32[16,32], index: 0, kind: input, shape index: {}]   ;;  %s4099_s1 = inlined_call_operand.vmem [shape: f32[16,32], index: 1, kind: input, shape index: {}]   ;;  %s4100_s2 = inlined_call_operand.vmem [shape: f32[2,4,32,8], index: 2, kind: input, shape index: {}]   ;;  %s4101_s3 = inlined_call_operand.vmem [shape: f32[2,4,32,8], index: 3, kind: input, shape index: {}]   ;;  %s4102_s4 = inlined_call_operand.vmem [shape: f32[2,4,32,8], index: 4, kind: input, shape index: {}]   ;;  %s4103_s5 = inlined_call_operand.vmem [shape: f32[2,4,1,8], index: 5, kind: input, shape index: {}]   ;;  %s4104_s6 = inlined_call_operand.vmem [shape: f32[2,4,1,8], index: 6, kind: input, shape index: {}]   ;;  %s4105_s7 = inlined_call_operand.vmem [shape: f32[2,4,1,8], index: 7, kind: input, shape index: {}]   ;;  %s4106_s8 = inlined_call_operand.vmem [shape: f32[2,4,8,32], index: 8, kind: input, shape index: {}]   ;;  %s4107_s9 = inlined_call_operand.vmem [shape: f32[2,1,32], index: 9, kind: input, shape index: {}]   ;;  %s4108_s10 = inlined_call_operand.vmem [shape: f32[2,32,128], index: 10, kind: input, shape index: {}]   ;;  %s4109_s11 = inlined_call_operand.vmem [shape: f32[2,1,128], index: 11, kind: input, shape index: {}]   ;;  %s4110_s12 = inlined_call_operand.vmem [shape: f32[2,128,32], index: 12, kind: input, shape index: {}]   ;;  %s4111_s13 = inlined_call_operand.vmem [shape: f32[2,1,32], index: 13, kind: input, shape index: {}]   ;;  %s4112_s14 = inlined_call_operand.vmem [shape: f32[2,1,32], index: 14, kind: input, shape index: {}]   ;;  %s4113_s15 = inlined_call_operand.vmem [shape: f32[2,1,32], index: 15, kind: input, shape index: {}]   ;;  %s4114_s16 = inlined_call_operand.vmem [shape: f32[2,1,32], index: 16, kind: input, shape index: {}]   ;;  %s4115_s17 = inlined_call_operand.vmem [shape: f32[2,1,32], index: 17, kind: input, shape index: {}]   ;;  %s4116_s18 = inlined_call_operand.hbm [shape: f32[16,32], index: 18, kind: output, shape index: {}]  }
   0x1   :  { %4120 = sst [smem:[#allocation5_spill]] %s4098_s0 }
   0x2   :  { %4121 = sst [smem:[#allocation6_spill]] %s4099_s1 }
   0x3   :  { %4122 = sst [smem:[#allocation7_spill]] %s4100_s2 }
   0x4   :  { %v107_v0 = vld [vmem:[%s4101_s3 + $0x18] sm:$0xff]  ;;  %v106_v1 = vld [vmem:[%s4101_s3 + $0x10] sm:$0xff]  ;;  %s4123_s1 = sld [smem:[#allocation7_spill]]  ;;  %v105_v3 = vld [vmem:[%s4101_s3 + $0x8] sm:$0xff]  ;;  %vm74_vm0 = vcmask 261120  }
   0x5   :  { %124 = vmatpush.msra.mxu1 %v107_v0  ;;  %s4124_s27 = sld [smem:[#allocation5_spill]]  ;;  %v104_v8 = vld [vmem:[%s4101_s3] sm:$0xff]  ;;  %v138_v11 = vld [vmem:[%s4102_s4 + $0x18] sm:$0xff]  ;;  %v137_v12 = vld [vmem:[%s4102_s4 + $0x10] sm:$0xff] }
   0x6   :  { %s4125_s30 = sld [smem:[#allocation6_spill]]  ;;  %155 = vmatpush.msra.mxu3 %v138_v11  ;;  %v136_v13 = vld [vmem:[%s4102_s4 + $0x8] sm:$0xff]  ;;  %v135_v16 = vld [vmem:[%s4102_s4] sm:$0xff] }
   0x7   :  { %125 = vmatpush.msra.mxu1 %v106_v1 }
   0x8   :  { %156 = vmatpush.msra.mxu3 %v137_v12 }
   0x9   :  { %126 = vmatpush.msra.mxu1 %v105_v3 }
   0xa   :  { %v69_v2 = vld [vmem:[%s4123_s1 + $0x18] sm:$0xff]  ;;  %v68_v4 = vld [vmem:[%s4123_s1 + $0x10] sm:$0xff]  ;;  %v67_v5 = vld [vmem:[%s4123_s1 + $0x8] sm:$0xff]  ;;  %157 = vmatpush.msra.mxu3 %v136_v13 }
   0xb   :  { %93 = vmatpush.msra.mxu0 %v69_v2  ;;  %v60_v6 = vld [vmem:[%s4124_s27] sm:$0xff]  ;;  %127 = vmatpush.msra.mxu1 %v104_v8  ;;  %v61_v14 = vld [vmem:[%s4124_s27 + $0x8] sm:$0xff] }
   0xc   :  { %v62_v7 = vld [vmem:[%s4125_s30] sm:$0xff]  ;;  %v63_v15 = vld [vmem:[%s4125_s30 + $0x8] sm:$0xff]  ;;  %158 = vmatpush.msra.mxu3 %v135_v16 }
   0xd   :  { %94 = vmatpush.msra.mxu0 %v68_v4  ;;  %v3264_v9 = vadd.f32 %v62_v7, %v60_v6  ;;  %v66_v10 = vld [vmem:[%s4123_s1] sm:$0xff]  ;;  %v3291_v17 = vadd.f32 %v63_v15, %v61_v14 }
   0xf   :  { %95 = vmatpush.msra.mxu0 %v67_v5  ;;  %2735 = vmatmul.msk.f32.vlgmr.msra.gmra.mxu1 %vm74_vm0, %v3264_v9 }
  0x10   :  { %2737 = vmatmul.msk.f32.vlgmr.msra.gmra.mxu3 %vm74_vm0, %v3264_v9 }
  0x11   :  { %96 = vmatpush.msra.mxu0 %v66_v10 }
  0x12   :  { %2733 = vmatmul.msk.f32.vlgmr.msra.gmra.mxu0 %vm74_vm0, %v3264_v9 }
  0x17   :  { %2736 = vmatmul.msk.f32.gmra.mxu1 %vm74_vm0, %v3291_v17 }
  0x1a   :  { %2734 = vmatmul.msk.f32.gmra.mxu0 %vm74_vm0, %v3291_v17 }
  0x1b   :  { %23 = vsyncpa [#allocation3], 0  ;;  %2738 = vmatmul.msk.f32.gmra.mxu3 %vm74_vm0, %v3291_v17  ;;  %v2992_v18 = vld [vmem:[%s4104_s6] ss:$0 sm:$0xff]  ;;  %vm166_vm1 = vcmask 64512   ;;  %v2755_v37 = vld [vmem:[%s4101_s3 + $0x38] sm:$0xff] }
  0x1c   :  { %v2993_v19 = vld [vmem:[%s4103_s5] ss:$0 sm:$0xff]  ;;  %369 = vmatpush.msra.mxu2 %v2755_v37  ;;  %v2754_v38 = vld [vmem:[%s4101_s3 + $0x30] sm:$0xff]  ;;  %v2753_v39 = vld [vmem:[%s4101_s3 + $0x28] sm:$0xff]  ;;  %s2721_s22 = sshll.u32 %s4116_s18, 4  ;;  %s3141_s2 = smov 8   ;;  %s2722_s22 = int_to_ptr.hbm [resolvable:$true] %s2721_s22 }
  0x1d   :  { %v2994_v27 = vld [vmem:[%s4105_s7] ss:$0 sm:$0xff]  ;;  %v2748_v40 = vld [vmem:[%s4123_s1 + $0x38] sm:$0xff]  ;;  %v2747_v41 = vld [vmem:[%s4123_s1 + $0x30] sm:$0xff] }
  0x1e   :  { %370 = vmatpush.msra.mxu2 %v2754_v38  ;;  %v2752_v42 = vld [vmem:[%s4101_s3 + $0x20] sm:$0xff]  ;;  %336 = vmatpush.msrb.mxu1 %v2748_v40  ;;  %v2746_v43 = vld [vmem:[%s4123_s1 + $0x28] sm:$0xff] }
  0x1f   :  { %v2745_v44 = vld [vmem:[%s4123_s1 + $0x20] sm:$0xff] }
  0x20   :  { %371 = vmatpush.msra.mxu2 %v2753_v39  ;;  %337 = vmatpush.msrb.mxu1 %v2747_v41  ;;  %v2995_v55 = vld [vmem:[%s4104_s6 + $0x1] ss:$0 sm:$0xff] }
  0x21   :  { %v2759_v37 = vld [vmem:[%s4102_s4 + $0x20] sm:$0xff] }
  0x22   :  { %372 = vmatpush.msra.mxu2 %v2752_v42  ;;  %338 = vmatpush.msrb.mxu1 %v2746_v43 }
  0x23   :  { %2757 = vmatmul.msk.f32.vlgmr.msra.gmra.mxu2 %vm74_vm0, %v3264_v9 }
  0x24   :  { %339 = vmatpush.msrb.mxu1 %v2745_v44 }
  0x25   :  { %2750 = vmatmul.msk.f32.vlgmr.msrb.gmra.mxu1 %vm74_vm0, %v3264_v9 }
  0x2b   :  { %2758 = vmatmul.msk.f32.gmra.mxu2 %vm74_vm0, %v3291_v17 }
  0x2d   :  { %2751 = vmatmul.msk.f32.gmra.mxu1 %vm74_vm0, %v3291_v17 }
  0x8c   :  { %v129_v20 = vpop.f32.mrf.mxu1 }
  0x8d   :  { %v130_v22 = vadd.f32 %v2992_v18, %v129_v20 }
  0x8f   :  { %v98_v21 = vpop.f32.mrf.mxu0  ;;  %2739 = vmatpush.xpose.msk.msrb.mxu3 %vm166_vm1, %v130_v22 }
  0x90   :  { %v99_v23 = vadd.f32 %v2993_v19, %v98_v21 }
  0x92   :  { %2740 = vmatmul.msk.f32.vlgmr.msrb.gmra.mxu3 %vm166_vm1, %v99_v23  ;;  %v2996_v23 = vld [vmem:[%s4103_s5 + $0x1] ss:$0 sm:$0xff] }
  0x93   :  { %v160_v29 = vpop.f32.mrf.mxu3 }
  0x94   :  { %v132_v24 = vpop.f32.mrf.mxu1  ;;  %v161_v30 = vadd.f32 %v2994_v27, %v160_v29 }
  0x95   :  { %v133_v26 = vadd.f32 %v2992_v18, %v132_v24 }
  0x97   :  { %v101_v25 = vpop.f32.mrf.mxu0  ;;  %2741 = vmatpush.xpose.msk.msra.mxu3 %vm166_vm1, %v133_v26 }
  0x98   :  { %v102_v28 = vadd.f32 %v2993_v19, %v101_v25 }
  0x9a   :  { %2742 = vmatmul.msk.f32.vlgmr.msra.gmra.mxu3 %vm166_vm1, %v102_v28 }
  0x9b   :  { %285 = vmatpush.msrb.mxu3 %v161_v30 }
  0x9e   :  { %v163_v31 = vpop.f32.mrf.mxu3 }
  0x9f   :  { %v164_v32 = vadd.f32 %v2994_v27, %v163_v31  ;;  %v313_v27 = vld [vmem:[%s4106_s8] sm:$0xff] }
  0xa1   :  { %308 = vmatpush.msrb.mxu0 %v164_v32 }
  0xa2   :  { %v341_v22 = vpop.f32.mrf.mxu1 }
  0xa3   :  { %v342_v24 = vadd.f32 %v2996_v23, %v341_v22 }
  0xa6   :  { %v374_v56 = vpop.f32.mrf.mxu2 }
  0xa7   :  { %v375_v57 = vadd.f32 %v2995_v55, %v374_v56  ;;  %v2784_v56 = vld [vmem:[%s4101_s3 + $0x40] sm:$0xff] }
  0xa9   :  { %2766 = vmatpush.xpose.msk.msra.mxu0 %vm166_vm1, %v375_v57  ;;  %v2780_v57 = vld [vmem:[%s4123_s1 + $0x58] sm:$0xff] }
  0xaa   :  { %v344_v25 = vpop.f32.mrf.mxu1 }
  0xab   :  { %v345_v26 = vadd.f32 %v2996_v23, %v344_v25  ;;  %v2772_v23 = vld [vmem:[%s4106_s8 + $0x8] sm:$0xff] }
  0xae   :  { %v377_v15 = vpop.f32.mrf.mxu2 }
  0xaf   :  { %v378_v20 = vadd.f32 %v2995_v55, %v377_v15  ;;  %v2785_v55 = vld [vmem:[%s4101_s3 + $0x48] sm:$0xff] }
 0x115   :  { %v190_v33 = vpop.f32.mrf.mxu3 }
 0x116   :  { %v219_v34 = vsel %vm166_vm1, %v190_v33, -inf }
 0x117   :  { %220 = vmax.xlane.f32.xlu1 %v219_v34  ;;  %v2762_v34 = vld [vmem:[%s4102_s4 + $0x38] sm:$0xff] }
 0x118   :  { %402 = vmatpush.msra.mxu3 %v2762_v34 }
 0x11d   :  { %v216_v35 = vpop.f32.mrf.mxu3 }
 0x11e   :  { %v222_v36 = vsel %vm166_vm1, %v216_v35, -inf }
 0x11f   :  { %223 = vmax.xlane.f32.xlu0 %v222_v36  ;;  %v2760_v36 = vld [vmem:[%s4102_s4 + $0x28] sm:$0xff] }
 0x18a   :  { %v221_v45 = vpop.xlane.xlu1 %220 }
 0x18b   :  { %v225_v46 = vsub.f32 %v190_v33, %v221_v45 }
 0x18d   :  { %v227_v47 = vmul.f32 1.442695, %v225_v46 }
 0x18f   :  { %3030 = vpow2.f32 %v227_v47 }
 0x192   :  { %v224_v48 = vpop.xlane.xlu0 %223 }
 0x193   :  { %v226_v49 = vsub.f32 %v216_v35, %v224_v48  ;;  %v2761_v35 = vld [vmem:[%s4102_s4 + $0x30] sm:$0xff]  ;;  %v2997_v48 = vld [vmem:[%s4105_s7 + $0x1] ss:$0 sm:$0xff] }
 0x194   :  { %403 = vmatpush.msra.mxu3 %v2761_v35 }
 0x195   :  { %v3031_v50 = vpop.eup %3030  ;;  %v229_v51 = vmul.f32 1.442695, %v226_v49 }
 0x196   :  { %v231_v52 = vsel %vm166_vm1, %v3031_v50, 0.0  ;;  %404 = vmatpush.msra.mxu3 %v2760_v36 }
 0x197   :  { %3032 = vpow2.f32 %v229_v51  ;;  %232 = vadd.xlane.f32.xlu1 %v231_v52 }
 0x198   :  { %405 = vmatpush.msra.mxu3 %v2759_v37 }
 0x19d   :  { %v3033_v53 = vpop.eup %3032 }
 0x19e   :  { %v234_v54 = vsel %vm166_vm1, %v3033_v53, 0.0 }
 0x19f   :  { %235 = vadd.xlane.f32.xlu0 %v234_v54  ;;  %v2786_v54 = vld [vmem:[%s4101_s3 + $0x50] sm:$0xff] }
 0x20a   :  { %v233_v58 = vpop.xlane.xlu1 %232 }
 0x20b   :  { %3034 = vrcp.f32 %v233_v58  ;;  %v248_v63 = vand.u32 2147483648, %v233_v58  ;;  %v246_v1 = vand.u32 2147483647, %v233_v58  ;;  %vm242_vm3 = vweird.f32 %v233_v58 }
 0x20d   :  { %v249_v4 = vor.u32 1.1754944e-38, %v248_v63  ;;  %vm247_vm5 = vcmp.eq.f32.partialorder %v246_v1, 8.507059e+37 }
 0x211   :  { %v3035_v59 = vpop.eup %3034 }
 0x212   :  { %v238_v60 = vmul.f32 %v3035_v59, %v233_v58  ;;  %v236_v61 = vpop.xlane.xlu0 %235  ;;  %vm243_vm2 = vweird.f32 %v3035_v59  ;;  %v2779_v58 = vld [vmem:[%s4123_s1 + $0x50] sm:$0xff] }
 0x213   :  { %3036 = vrcp.f32 %v236_v61  ;;  %vm244_vm4 = vmor %vm242_vm3, %vm243_vm2  ;;  %v263_v11 = vand.u32 2147483648, %v236_v61  ;;  %v261_v13 = vand.u32 2147483647, %v236_v61  ;;  %vm257_vm7 = vweird.f32 %v236_v61 }
 0x214   :  { %v239_v62 = vsub.f32 1.0, %v238_v60 }
 0x215   :  { %v264_v16 = vor.u32 1.1754944e-38, %v263_v11  ;;  %vm262_vm9 = vcmp.eq.f32.partialorder %v261_v13, 8.507059e+37 }
 0x216   :  { %v240_v0 = vmul.f32 %v3035_v59, %v239_v62 }
 0x218   :  { %v241_v2 = vadd.f32 %v3035_v59, %v240_v0 }
 0x219   :  { %v3037_v3 = vpop.eup %3036 }
 0x21a   :  { %v245_v5 = vsel %vm244_vm4, %v3035_v59, %v241_v2  ;;  %v253_v6 = vmul.f32 %v3037_v3, %v236_v61  ;;  %vm258_vm6 = vweird.f32 %v3037_v3  ;;  %v2778_v59 = vld [vmem:[%s4123_s1 + $0x48] sm:$0xff]  ;;  %v2777_v61 = vld [vmem:[%s4123_s1 + $0x40] sm:$0xff] }
 0x21b   :  { %v250_v7 = vsel %vm247_vm5, %v249_v4, %v245_v5  ;;  %vm259_vm8 = vmor %vm257_vm7, %vm258_vm6 }
 0x21c   :  { %v254_v8 = vsub.f32 1.0, %v253_v6  ;;  %v251_v10 = vmul.f32 %v3031_v50, %v250_v7 }
 0x21e   :  { %v255_v12 = vmul.f32 %v3037_v3, %v254_v8  ;;  %2743 = vmatmul.msk.f32.vlgmr.msrb.gmra.mxu3 %vm166_vm1, %v251_v10 }
 0x21f   :  { %582 = vmatpush.msrb.mxu3 %v2772_v23 }
 0x220   :  { %v256_v14 = vadd.f32 %v3037_v3, %v255_v12 }
 0x222   :  { %v260_v18 = vsel %vm259_vm8, %v3037_v3, %v256_v14 }
 0x223   :  { %v265_v19 = vsel %vm262_vm9, %v264_v16, %v260_v18 }
 0x224   :  { %v266_v21 = vmul.f32 %v3033_v53, %v265_v19  ;;  %v2787_v53 = vld [vmem:[%s4101_s3 + $0x58] sm:$0xff] }
 0x226   :  { %2744 = vmatmul.msk.f32.vlgmr.msrb.gmra.mxu0 %vm166_vm1, %v266_v21  ;;  %2764 = vmatmul.msk.f32.vlgmr.msra.gmra.mxu3 %vm74_vm0, %v3264_v9 }
 0x227   :  { %2768 = vmatpush.xpose.msk.msrb.mxu0 %vm166_vm1, %v378_v20 }
 0x22e   :  { %2767 = vmatmul.msk.f32.vlgmr.msra.gmra.mxu0 %vm166_vm1, %v342_v24  ;;  %2765 = vmatmul.msk.f32.gmra.mxu3 %vm74_vm0, %v3291_v17 }
 0x22f   :  { %611 = vmatpush.msra.mxu0 %v313_v27  ;;  %v2999_v27 = vld [vmem:[%s4103_s5 + $0x2] ss:$0 sm:$0xff] }
 0x236   :  { %2769 = vmatmul.msk.f32.vlgmr.msrb.gmra.mxu0 %vm166_vm1, %v345_v26  ;;  %v2998_v26 = vld [vmem:[%s4104_s6 + $0x2] ss:$0 sm:$0xff] }
 0x2a1   :  { %v287_v28 = vpop.f32.mrf.mxu3 }
 0x2a2   :  { %2775 = vmatmul.msk.f32.vlgmr.msra.gmra.mxu0 %vm166_vm1, %v287_v28 }
 0x2a3   :  { %v310_v29 = vpop.f32.mrf.mxu0 }
 0x2a9   :  { %v407_v49 = vpop.f32.mrf.mxu3 }
 0x2aa   :  { %2776 = vmatmul.msk.f32.gmra.mxu0 %vm166_vm1, %v310_v29  ;;  %v408_v50 = vadd.f32 %v2997_v48, %v407_v49 }
 0x2ab   :  { %v436_v30 = vpop.f32.mrf.mxu0 }
 0x2ac   :  { %v465_v33 = vsel %vm166_vm1, %v436_v30, -inf  ;;  %531 = vmatpush.msra.mxu1 %v408_v50 }
 0x2ae   :  { %641 = vmatpush.msrb.mxu1 %v2780_v57 }
 0x2b0   :  { %642 = vmatpush.msrb.mxu1 %v2779_v58  ;;  %v3000_v58 = vld [vmem:[%s4105_s7 + $0x2] ss:$0 sm:$0xff] }
 0x2b1   :  { %v410_v51 = vpop.f32.mrf.mxu3 }
 0x2b2   :  { %v411_v52 = vadd.f32 %v2997_v48, %v410_v51  ;;  %643 = vmatpush.msrb.mxu1 %v2778_v59 }
 0x2b3   :  { %v462_v31 = vpop.f32.mrf.mxu0 }
 0x2b4   :  { %v468_v32 = vsel %vm166_vm1, %v462_v31, -inf  ;;  %554 = vmatpush.msrb.mxu2 %v411_v52  ;;  %644 = vmatpush.msrb.mxu1 %v2777_v61  ;;  %v2817_v61 = vld [vmem:[%s4101_s3 + $0x78] sm:$0xff] }
 0x2b5   :  { %469 = vmax.xlane.f32.xlu2 %v468_v32 }
 0x2b6   :  { %674 = vmatpush.msra.mxu2 %v2787_v53 }
 0x2b8   :  { %675 = vmatpush.msra.mxu2 %v2786_v54 }
 0x2ba   :  { %676 = vmatpush.msra.mxu2 %v2785_v55 }
 0x2bc   :  { %677 = vmatpush.msra.mxu2 %v2784_v56 }
 0x2bd   :  { %466 = vmax.xlane.f32.xlu2 %v465_v33 }
 0x31f   :  { %v3439_v36 = vpop.f32.mrf.mxu0 }
 0x327   :  { %v3441_v37 = vpop.f32.mrf.mxu0 }
 0x328   :  { %v470_v38 = vpop.xlane.xlu2 %469 }
 0x329   :  { %v472_v39 = vsub.f32 %v462_v31, %v470_v38 }
 0x32b   :  { %v475_v40 = vmul.f32 1.442695, %v472_v39 }
 0x32d   :  { %3038 = vpow2.f32 %v475_v40 }
 0x330   :  { %v467_v41 = vpop.xlane.xlu2 %466 }
 0x331   :  { %v471_v42 = vsub.f32 %v436_v30, %v467_v41 }
 0x333   :  { %v3039_v43 = vpop.eup %3038  ;;  %v473_v44 = vmul.f32 1.442695, %v471_v42  ;;  %v2794_v42 = vld [vmem:[%s4102_s4 + $0x58] sm:$0xff] }
 0x334   :  { %v480_v45 = vsel %vm166_vm1, %v3039_v43, 0.0  ;;  %707 = vmatpush.msra.mxu3 %v2794_v42 }
 0x335   :  { %3040 = vpow2.f32 %v473_v44  ;;  %481 = vadd.xlane.f32.xlu0 %v480_v45  ;;  %v2792_v44 = vld [vmem:[%s4102_s4 + $0x48] sm:$0xff]  ;;  %v2791_v45 = vld [vmem:[%s4102_s4 + $0x40] sm:$0xff] }
 0x33b   :  { %v3041_v46 = vpop.eup %3040 }
 0x33c   :  { %v477_v47 = vsel %vm166_vm1, %v3041_v46, 0.0 }
 0x33d   :  { %478 = vadd.xlane.f32.xlu1 %v477_v47 }
 0x3a8   :  { %v482_v60 = vpop.xlane.xlu0 %481 }
 0x3a9   :  { %3042 = vrcp.f32 %v482_v60  ;;  %v509_v2 = vand.u32 2147483648, %v482_v60  ;;  %v507_v4 = vand.u32 2147483647, %v482_v60  ;;  %vm503_vm11 = vweird.f32 %v482_v60 }
 0x3ab   :  { %v510_v7 = vor.u32 1.1754944e-38, %v509_v2  ;;  %vm508_vm13 = vcmp.eq.f32.partialorder %v507_v4, 8.507059e+37  ;;  %v2814_v2 = vld [vmem:[%s4101_s3 + $0x60] sm:$0xff]  ;;  %v2808_v4 = vld [vmem:[%s4123_s1 + $0x68] sm:$0xff] }
 0x3af   :  { %v3043_v62 = vpop.eup %3042 }
 0x3b0   :  { %v499_v63 = vmul.f32 %v3043_v62, %v482_v60  ;;  %v479_v0 = vpop.xlane.xlu1 %478  ;;  %vm504_vm10 = vweird.f32 %v3043_v62 }
 0x3b1   :  { %3044 = vrcp.f32 %v479_v0  ;;  %vm505_vm12 = vmor %vm503_vm11, %vm504_vm10  ;;  %v494_v14 = vand.u32 2147483648, %v479_v0  ;;  %v492_v16 = vand.u32 2147483647, %v479_v0  ;;  %vm488_vm15 = vweird.f32 %v479_v0 }
 0x3b2   :  { %v500_v1 = vsub.f32 1.0, %v499_v63  ;;  %v2810_v63 = vld [vmem:[%s4123_s1 + $0x78] sm:$0xff] }
 0x3b3   :  { %v495_v19 = vor.u32 1.1754944e-38, %v494_v14  ;;  %vm493_vm3 = vcmp.eq.f32.partialorder %v492_v16, 8.507059e+37 }
 0x3b4   :  { %v501_v3 = vmul.f32 %v3043_v62, %v500_v1  ;;  %v2809_v1 = vld [vmem:[%s4123_s1 + $0x70] sm:$0xff] }
 0x3b6   :  { %v502_v5 = vadd.f32 %v3043_v62, %v501_v3 }
 0x3b7   :  { %v3045_v6 = vpop.eup %3044 }
 0x3b8   :  { %v484_v8 = vmul.f32 %v3045_v6, %v479_v0  ;;  %v506_v10 = vsel %vm505_vm12, %v3043_v62, %v502_v5  ;;  %vm489_vm14 = vweird.f32 %v3045_v6  ;;  %v2816_v62 = vld [vmem:[%s4101_s3 + $0x70] sm:$0xff]  ;;  %v2815_v0 = vld [vmem:[%s4101_s3 + $0x68] sm:$0xff] }
 0x3b9   :  { %v511_v11 = vsel %vm508_vm13, %v510_v7, %v506_v10  ;;  %vm490_vm2 = vmor %vm488_vm15, %vm489_vm14 }
 0x3ba   :  { %v485_v12 = vsub.f32 1.0, %v484_v8  ;;  %v512_v13 = vmul.f32 %v3039_v43, %v511_v11  ;;  %v2793_v43 = vld [vmem:[%s4102_s4 + $0x50] sm:$0xff] }
 0x3bb   :  { %708 = vmatpush.msra.mxu3 %v2793_v43 }
 0x3bc   :  { %v486_v15 = vmul.f32 %v3045_v6, %v485_v12  ;;  %2771 = vmatmul.msk.f32.vlgmr.msrb.gmra.mxu2 %vm166_vm1, %v512_v13 }
 0x3bd   :  { %709 = vmatpush.msra.mxu3 %v2792_v44  ;;  %v3002_v44 = vld [vmem:[%s4103_s5 + $0x3] ss:$0 sm:$0xff] }
 0x3be   :  { %v487_v18 = vadd.f32 %v3045_v6, %v486_v15 }
 0x3bf   :  { %710 = vmatpush.msra.mxu3 %v2791_v45 }
 0x3c0   :  { %v491_v20 = vsel %vm490_vm2, %v3045_v6, %v487_v18  ;;  %v2807_v6 = vld [vmem:[%s4123_s1 + $0x60] sm:$0xff] }
 0x3c1   :  { %v496_v21 = vsel %vm493_vm3, %v495_v19, %v491_v20 }
 0x3c2   :  { %v497_v22 = vmul.f32 %v3041_v46, %v496_v21 }
 0x3c4   :  { %2770 = vmatmul.msk.f32.vlgmr.msra.gmra.mxu1 %vm166_vm1, %v497_v22  ;;  %2789 = vmatmul.msk.f32.vlgmr.msra.gmra.mxu2 %vm74_vm0, %v3264_v9 }
 0x3cc   :  { %2790 = vmatmul.msk.f32.gmra.mxu2 %vm74_vm0, %v3291_v17  ;;  %2782 = vmatmul.msk.f32.vlgmr.msrb.gmra.mxu1 %vm74_vm0, %v3264_v9 }
 0x3d4   :  { %2783 = vmatmul.msk.f32.gmra.mxu1 %vm74_vm0, %v3291_v17 }
 0x43f   :  { %v556_v24 = vpop.f32.mrf.mxu2 }
 0x441   :  { %v533_v25 = vpop.f32.mrf.mxu1 }
 0x442   :  { %2773 = vmatmul.msk.f32.vlgmr.msrb.gmra.mxu3 %vm166_vm1, %v533_v25 }
 0x443   :  { %952 = vmatpush.msrb.mxu3 %v2817_v61 }
 0x445   :  { %953 = vmatpush.msrb.mxu3 %v2816_v62 }
 0x447   :  { %v679_v28 = vpop.f32.mrf.mxu2  ;;  %954 = vmatpush.msrb.mxu3 %v2815_v0 }
 0x448   :  { %v680_v29 = vadd.f32 %v2998_v26, %v679_v28 }
 0x449   :  { %v646_v30 = vpop.f32.mrf.mxu1  ;;  %955 = vmatpush.msrb.mxu3 %v2814_v2 }
 0x44a   :  { %2774 = vmatmul.msk.f32.gmra.mxu3 %vm166_vm1, %v556_v24  ;;  %v647_v31 = vadd.f32 %v2999_v27, %v646_v30  ;;  %2798 = vmatpush.xpose.msk.msrb.mxu0 %vm166_vm1, %v680_v29 }
 0x44d   :  { %2799 = vmatmul.msk.f32.vlgmr.msrb.gmra.mxu0 %vm166_vm1, %v647_v31 }
 0x44f   :  { %v682_v32 = vpop.f32.mrf.mxu2 }
 0x450   :  { %v683_v33 = vadd.f32 %v2998_v26, %v682_v32 }
 0x451   :  { %v649_v34 = vpop.f32.mrf.mxu1 }
 0x452   :  { %v650_v35 = vadd.f32 %v2999_v27, %v649_v34  ;;  %2800 = vmatpush.xpose.msk.msra.mxu1 %vm166_vm1, %v683_v33  ;;  %2796 = vmatmul.msk.f32.vlgmr.msra.gmra.mxu3 %vm74_vm0, %v3264_v9  ;;  %v2804_v33 = vld [vmem:[%s4106_s8 + $0x10] sm:$0xff]  ;;  %v3001_v34 = vld [vmem:[%s4104_s6 + $0x3] ss:$0 sm:$0xff] }
 0x455   :  { %2801 = vmatmul.msk.f32.vlgmr.msra.gmra.mxu1 %vm166_vm1, %v650_v35 }
 0x456   :  { %887 = vmatpush.msrb.mxu1 %v2804_v33 }
 0x45a   :  { %2797 = vmatmul.msk.f32.gmra.mxu3 %vm74_vm0, %v3291_v17 }
 0x462   :  { %2819 = vmatmul.msk.f32.vlgmr.msrb.gmra.mxu3 %vm74_vm0, %v3264_v9 }
 0x46a   :  { %2820 = vmatmul.msk.f32.gmra.mxu3 %vm74_vm0, %v3291_v17 }
 0x4c5   :  { %v3466_v56 = vpop.f32.mrf.mxu3 }
 0x4ca   :  { %v741_v38 = vpop.f32.mrf.mxu0 }
 0x4cb   :  { %v770_v39 = vsel %vm166_vm1, %v741_v38, -inf }
 0x4cc   :  { %771 = vmax.xlane.f32.xlu2 %v770_v39 }
 0x4cd   :  { %v3468_v57 = vpop.f32.mrf.mxu3 }
 0x4d2   :  { %v767_v40 = vpop.f32.mrf.mxu1 }
 0x4d3   :  { %v773_v41 = vsel %vm166_vm1, %v767_v40, -inf }
 0x4d4   :  { %774 = vmax.xlane.f32.xlu0 %v773_v41 }
 0x4d5   :  { %v712_v59 = vpop.f32.mrf.mxu3 }
 0x4d6   :  { %v713_v60 = vadd.f32 %v3000_v58, %v712_v59 }
 0x4d8   :  { %836 = vmatpush.msrb.mxu2 %v713_v60 }
 0x4da   :  { %919 = vmatpush.msra.mxu2 %v2810_v63 }
 0x4dc   :  { %920 = vmatpush.msra.mxu2 %v2809_v1 }
 0x4dd   :  { %v715_v3 = vpop.f32.mrf.mxu3 }
 0x4de   :  { %v716_v5 = vadd.f32 %v3000_v58, %v715_v3  ;;  %921 = vmatpush.msra.mxu2 %v2808_v4 }
 0x4e0   :  { %859 = vmatpush.msra.mxu0 %v716_v5  ;;  %922 = vmatpush.msra.mxu2 %v2807_v6  ;;  %v3003_v6 = vld [vmem:[%s4105_s7 + $0x3] ss:$0 sm:$0xff] }
 0x4e5   :  { %v957_v35 = vpop.f32.mrf.mxu3 }
 0x4ed   :  { %v960_v39 = vpop.f32.mrf.mxu3 }
 0x53f   :  { %v772_v46 = vpop.xlane.xlu2 %771 }
 0x540   :  { %v776_v47 = vsub.f32 %v741_v38, %v772_v46  ;;  %v958_v38 = vadd.f32 %v3001_v34, %v957_v35 }
 0x542   :  { %v778_v48 = vmul.f32 1.442695, %v776_v47  ;;  %2828 = vmatpush.xpose.msk.msra.mxu1 %vm166_vm1, %v958_v38 }
 0x544   :  { %3046 = vpow2.f32 %v778_v48  ;;  %v614_v48 = vadd.f32 %v3439_v36, %v3466_v56  ;;  %v2824_v36 = vld [vmem:[%s4102_s4 + $0x78] sm:$0xff]  ;;  %v2822_v56 = vld [vmem:[%s4102_s4 + $0x68] sm:$0xff] }
 0x545   :  { %985 = vmatpush.msrb.mxu0 %v2824_v36 }
 0x547   :  { %v775_v49 = vpop.xlane.xlu0 %774 }
 0x548   :  { %v777_v50 = vsub.f32 %v767_v40, %v775_v49  ;;  %v961_v40 = vadd.f32 %v3001_v34, %v960_v39  ;;  %v2834_v39 = vld [vmem:[%s4106_s8 + $0x18] sm:$0xff] }
 0x54a   :  { %v3047_v51 = vpop.eup %3046  ;;  %v780_v52 = vmul.f32 1.442695, %v777_v50 }
 0x54b   :  { %v782_v53 = vsel %vm166_vm1, %v3047_v51, 0.0 }
 0x54c   :  { %3048 = vpow2.f32 %v780_v52  ;;  %783 = vadd.xlane.f32.xlu1 %v782_v53 }
 0x552   :  { %v3462_v54 = vpop.eup %3048 }
 0x553   :  { %v785_v55 = vsel %vm166_vm1, %v3462_v54, 0.0 }
 0x554   :  { %786 = vadd.xlane.f32.xlu2 %v785_v55 }
 0x5bf   :  { %v784_v7 = vpop.xlane.xlu1 %783 }
 0x5c0   :  { %3050 = vrcp.f32 %v784_v7  ;;  %v799_v13 = vand.u32 2147483648, %v784_v7  ;;  %v797_v15 = vand.u32 2147483647, %v784_v7  ;;  %vm793_vm5 = vweird.f32 %v784_v7 }
 0x5c2   :  { %v800_v19 = vor.u32 1.1754944e-38, %v799_v13  ;;  %vm798_vm7 = vcmp.eq.f32.partialorder %v797_v15, 8.507059e+37 }
 0x5c6   :  { %v3051_v8 = vpop.eup %3050 }
 0x5c7   :  { %v789_v10 = vmul.f32 %v3051_v8, %v784_v7  ;;  %v787_v11 = vpop.xlane.xlu2 %786  ;;  %vm794_vm4 = vweird.f32 %v3051_v8 }
 0x5c8   :  { %3052 = vrcp.f32 %v787_v11  ;;  %vm795_vm6 = vmor %vm793_vm5, %vm794_vm4  ;;  %v814_v25 = vand.u32 2147483648, %v787_v11  ;;  %v812_v27 = vand.u32 2147483647, %v787_v11  ;;  %vm808_vm9 = vweird.f32 %v787_v11 }
 0x5c9   :  { %v790_v12 = vsub.f32 1.0, %v789_v10 }
 0x5ca   :  { %v815_v29 = vor.u32 1.1754944e-38, %v814_v25  ;;  %vm813_vm11 = vcmp.eq.f32.partialorder %v812_v27, 8.507059e+37 }
 0x5cb   :  { %v791_v14 = vmul.f32 %v3051_v8, %v790_v12 }
 0x5cd   :  { %v792_v16 = vadd.f32 %v3051_v8, %v791_v14 }
 0x5ce   :  { %v3053_v18 = vpop.eup %3052 }
 0x5cf   :  { %v796_v20 = vsel %vm795_vm6, %v3051_v8, %v792_v16  ;;  %v804_v21 = vmul.f32 %v3053_v18, %v787_v11  ;;  %vm809_vm8 = vweird.f32 %v3053_v18 }
 0x5d0   :  { %v801_v22 = vsel %vm798_vm7, %v800_v19, %v796_v20  ;;  %vm810_vm10 = vmor %vm808_vm9, %vm809_vm8 }
 0x5d1   :  { %v805_v23 = vsub.f32 1.0, %v804_v21  ;;  %v802_v24 = vmul.f32 %v3047_v51, %v801_v22  ;;  %v617_v51 = vadd.f32 %v3441_v37, %v3468_v57  ;;  %v2823_v37 = vld [vmem:[%s4102_s4 + $0x70] sm:$0xff]  ;;  %v2821_v57 = vld [vmem:[%s4102_s4 + $0x60] sm:$0xff] }
 0x5d2   :  { %986 = vmatpush.msrb.mxu0 %v2823_v37 }
 0x5d3   :  { %v806_v26 = vmul.f32 %v3053_v18, %v805_v23  ;;  %2802 = vmatmul.msk.f32.vlgmr.msrb.gmra.mxu2 %vm166_vm1, %v802_v24 }
 0x5d4   :  { %2830 = vmatpush.xpose.msk.msrb.mxu2 %vm166_vm1, %v961_v40  ;;  %987 = vmatpush.msrb.mxu0 %v2822_v56 }
 0x5d5   :  { %v807_v28 = vadd.f32 %v3053_v18, %v806_v26 }
 0x5d6   :  { %988 = vmatpush.msrb.mxu0 %v2821_v57 }
 0x5d7   :  { %v811_v30 = vsel %vm810_vm10, %v3053_v18, %v807_v28 }
 0x5d8   :  { %v816_v31 = vsel %vm813_vm11, %v815_v29, %v811_v30 }
 0x5d9   :  { %v817_v32 = vmul.f32 %v3462_v54, %v816_v31 }
 0x5db   :  { %2803 = vmatmul.msk.f32.vlgmr.msra.gmra.mxu0 %vm166_vm1, %v817_v32  ;;  %2812 = vmatmul.msk.f32.vlgmr.msra.gmra.mxu2 %vm74_vm0, %v3264_v9 }
 0x5e3   :  { %2813 = vmatmul.msk.f32.gmra.mxu2 %vm74_vm0, %v3291_v17  ;;  %2826 = vmatmul.msk.f32.vlgmr.msrb.gmra.mxu0 %vm74_vm0, %v3264_v9 }
 0x5eb   :  { %2827 = vmatmul.msk.f32.gmra.mxu0 %vm74_vm0, %v3291_v17 }
 0x656   :  { %v838_v41 = vpop.f32.mrf.mxu2 }
 0x657   :  { %2805 = vmatmul.msk.f32.vlgmr.msrb.gmra.mxu1 %vm166_vm1, %v838_v41 }
 0x658   :  { %v861_v42 = vpop.f32.mrf.mxu0  ;;  %1165 = vmatpush.msrb.mxu1 %v2834_v39  ;;  %v1290_v39 = vld [vmem:[%s4110_s12 + $0x28] sm:$0xff] }
 0x65e   :  { %v924_v43 = vpop.f32.mrf.mxu2 }
 0x65f   :  { %2806 = vmatmul.msk.f32.gmra.mxu1 %vm166_vm1, %v861_v42  ;;  %v925_v45 = vadd.f32 %v3002_v44, %v924_v43  ;;  %v3004_v42 = vld [vmem:[%s4107_s9] ss:$0 sm:$0xff] }
 0x660   :  { %v990_v7 = vpop.f32.mrf.mxu0 }
 0x661   :  { %v991_v8 = vadd.f32 %v3003_v6, %v990_v7 }
 0x663   :  { %1114 = vmatpush.msra.mxu3 %v991_v8 }
 0x666   :  { %v927_v46 = vpop.f32.mrf.mxu2 }
 0x667   :  { %v928_v47 = vadd.f32 %v3002_v44, %v927_v46  ;;  %2829 = vmatmul.msk.f32.vlgmr.msra.gmra.mxu1 %vm166_vm1, %v925_v45 }
 0x668   :  { %v993_v10 = vpop.f32.mrf.mxu0 }
 0x669   :  { %2831 = vmatmul.msk.f32.vlgmr.msrb.gmra.mxu2 %vm166_vm1, %v928_v47  ;;  %v994_v11 = vadd.f32 %v3003_v6, %v993_v10  ;;  %v1300_v10 = vld [vmem:[%s4110_s12 + $0x78] sm:$0xff] }
 0x66a   :  { %1305 = vmatpush.msrb.mxu3 %v1300_v10 }
 0x66b   :  { %1137 = vmatpush.msra.mxu0 %v994_v11  ;;  %v1299_v11 = vld [vmem:[%s4110_s12 + $0x70] sm:$0xff] }
 0x66c   :  { %1306 = vmatpush.msrb.mxu3 %v1299_v11 }
 0x6d4   :  { %v889_v49 = vpop.f32.mrf.mxu1 }
 0x6d5   :  { %v3525_v50 = vadd.f32 %v889_v49, %v614_v48 }
 0x6dc   :  { %v892_v52 = vpop.f32.mrf.mxu1 }
 0x6dd   :  { %v3529_v53 = vadd.f32 %v892_v52, %v617_v51 }
 0x6e4   :  { %v1019_v54 = vpop.f32.mrf.mxu1 }
 0x6e5   :  { %v1048_v55 = vsel %vm166_vm1, %v1019_v54, -inf }
 0x6e6   :  { %1049 = vmax.xlane.f32.xlu0 %v1048_v55  ;;  %v3138_v55 = vmov 32.0  }
 0x6ec   :  { %v1045_v58 = vpop.f32.mrf.mxu2 }
 0x6ed   :  { %v1051_v59 = vsel %vm166_vm1, %v1045_v58, -inf }
 0x6ee   :  { %1052 = vmax.xlane.f32.xlu2 %v1051_v59 }
 0x759   :  { %v1050_v60 = vpop.xlane.xlu0 %1049 }
 0x75a   :  { %v1054_v61 = vsub.f32 %v1019_v54, %v1050_v60 }
 0x75c   :  { %v1056_v62 = vmul.f32 1.442695, %v1054_v61 }
 0x75e   :  { %3054 = vpow2.f32 %v1056_v62 }
 0x761   :  { %v1053_v63 = vpop.xlane.xlu2 %1052 }
 0x762   :  { %v1055_v0 = vsub.f32 %v1045_v58, %v1053_v63 }
 0x764   :  { %v3055_v1 = vpop.eup %3054  ;;  %v1058_v2 = vmul.f32 1.442695, %v1055_v0 }
 0x765   :  { %v1060_v3 = vsel %vm166_vm1, %v3055_v1, 0.0 }
 0x766   :  { %3056 = vpow2.f32 %v1058_v2  ;;  %1061 = vadd.xlane.f32.xlu1 %v1060_v3  ;;  %v1249_v2 = vld [vmem:[%s4108_s10 + $0x18] sm:$0xff]  ;;  %v1248_v3 = vld [vmem:[%s4108_s10 + $0x10] sm:$0xff] }
 0x767   :  { %1272 = vmatpush.msra.mxu2 %v1249_v2 }
 0x769   :  { %1273 = vmatpush.msra.mxu2 %v1248_v3 }
 0x76c   :  { %v3057_v4 = vpop.eup %3056 }
 0x76d   :  { %v1063_v5 = vsel %vm166_vm1, %v3057_v4, 0.0 }
 0x76e   :  { %1064 = vadd.xlane.f32.xlu0 %v1063_v5  ;;  %v1246_v5 = vld [vmem:[%s4108_s10] sm:$0xff] }
 0x7d9   :  { %v1062_v12 = vpop.xlane.xlu1 %1061 }
 0x7da   :  { %3058 = vrcp.f32 %v1062_v12  ;;  %v1077_v18 = vand.u32 2147483648, %v1062_v12  ;;  %v1075_v20 = vand.u32 2147483647, %v1062_v12  ;;  %vm1071_vm13 = vweird.f32 %v1062_v12 }
 0x7dc   :  { %v1078_v23 = vor.u32 1.1754944e-38, %v1077_v18  ;;  %vm1076_vm15 = vcmp.eq.f32.partialorder %v1075_v20, 8.507059e+37 }
 0x7e0   :  { %v3059_v13 = vpop.eup %3058 }
 0x7e1   :  { %v1067_v14 = vmul.f32 %v3059_v13, %v1062_v12  ;;  %v1065_v15 = vpop.xlane.xlu0 %1064  ;;  %vm1072_vm12 = vweird.f32 %v3059_v13  ;;  %v1298_v12 = vld [vmem:[%s4110_s12 + $0x68] sm:$0xff] }
 0x7e2   :  { %3060 = vrcp.f32 %v1065_v15  ;;  %vm1073_vm14 = vmor %vm1071_vm13, %vm1072_vm12  ;;  %v1092_v29 = vand.u32 2147483648, %v1065_v15  ;;  %v1090_v31 = vand.u32 2147483647, %v1065_v15  ;;  %vm1086_vm3 = vweird.f32 %v1065_v15  ;;  %1307 = vmatpush.msrb.mxu3 %v1298_v12 }
 0x7e3   :  { %v1068_v16 = vsub.f32 1.0, %v1067_v14  ;;  %3062 = vrcp.f32 %v3138_v55  ;;  %v1285_v55 = vld [vmem:[%s4110_s12] sm:$0xff] }
 0x7e4   :  { %v1093_v33 = vor.u32 1.1754944e-38, %v1092_v29  ;;  %vm1091_vm5 = vcmp.eq.f32.partialorder %v1090_v31, 8.507059e+37  ;;  %v3005_v31 = vld [vmem:[%s4112_s14] ss:$0 sm:$0xff] }
 0x7e5   :  { %v1069_v19 = vmul.f32 %v3059_v13, %v1068_v16 }
 0x7e7   :  { %v1070_v21 = vadd.f32 %v3059_v13, %v1069_v19  ;;  %v1296_v19 = vld [vmem:[%s4110_s12 + $0x58] sm:$0xff] }
 0x7e8   :  { %v3061_v22 = vpop.eup %3060 }
 0x7e9   :  { %v1074_v24 = vsel %vm1073_vm14, %v3059_v13, %v1070_v21  ;;  %v1082_v25 = vmul.f32 %v3061_v22, %v1065_v15  ;;  %vm1087_vm2 = vweird.f32 %v3061_v22  ;;  %v3063_v58 = vpop.eup %3062  ;;  %v1297_v15 = vld [vmem:[%s4110_s12 + $0x60] sm:$0xff]  ;;  %v1295_v21 = vld [vmem:[%s4110_s12 + $0x50] sm:$0xff] }
 0x7ea   :  { %v1079_v26 = vsel %vm1076_vm15, %v1078_v23, %v1074_v24  ;;  %vm1088_vm4 = vmor %vm1086_vm3, %vm1087_vm2  ;;  %v1192_v59 = vmul.f32 32.0, %v3063_v58  ;;  %vm1196_vm6 = vweird.f32 %v3063_v58  ;;  %1308 = vmatpush.msrb.mxu3 %v1297_v15  ;;  %v1294_v23 = vld [vmem:[%s4110_s12 + $0x48] sm:$0xff]  ;;  %v2849_v15 = vld [vmem:[%s4101_s3 + $0x98] sm:$0xff] }
 0x7eb   :  { %v1083_v27 = vsub.f32 1.0, %v1082_v25  ;;  %v1080_v28 = vmul.f32 %v3055_v1, %v1079_v26  ;;  %v1293_v25 = vld [vmem:[%s4110_s12 + $0x40] sm:$0xff]  ;;  %1447 = vmatpush.msra.mxu1 %v2849_v15 }
 0x7ec   :  { %1309 = vmatpush.msrb.mxu3 %v1296_v19  ;;  %v2848_v19 = vld [vmem:[%s4101_s3 + $0x90] sm:$0xff] }
 0x7ed   :  { %v1084_v30 = vmul.f32 %v3061_v22, %v1083_v27  ;;  %2832 = vmatmul.msk.f32.vlgmr.msra.gmra.mxu3 %vm166_vm1, %v1080_v28  ;;  %v1292_v28 = vld [vmem:[%s4110_s12 + $0x38] sm:$0xff]  ;;  %1448 = vmatpush.msra.mxu1 %v2848_v19 }
 0x7ee   :  { %1310 = vmatpush.msrb.mxu3 %v1295_v21  ;;  %v2840_v21 = vld [vmem:[%s4123_s1 + $0x88] sm:$0xff] }
 0x7ef   :  { %v1085_v32 = vadd.f32 %v3061_v22, %v1084_v30 }
 0x7f0   :  { %1311 = vmatpush.msrb.mxu3 %v1294_v23  ;;  %v2854_v23 = vld [vmem:[%s4102_s4 + $0x88] sm:$0xff] }
 0x7f1   :  { %v1089_v34 = vsel %vm1088_vm4, %v3061_v22, %v1085_v32  ;;  %v1291_v32 = vld [vmem:[%s4110_s12 + $0x30] sm:$0xff] }
 0x7f2   :  { %v1094_v35 = vsel %vm1091_vm5, %v1093_v33, %v1089_v34  ;;  %1312 = vmatpush.msrb.mxu3 %v1293_v25  ;;  %v2846_v25 = vld [vmem:[%s4101_s3 + $0x80] sm:$0xff] }
 0x7f3   :  { %v1095_v38 = vmul.f32 %v3057_v4, %v1094_v35  ;;  %v1247_v4 = vld [vmem:[%s4108_s10 + $0x8] sm:$0xff] }
 0x7f4   :  { %1274 = vmatpush.msra.mxu2 %v1247_v4  ;;  %1313 = vmatpush.msrb.mxu3 %v1292_v28 }
 0x7f5   :  { %2833 = vmatmul.msk.f32.vlgmr.msra.gmra.mxu0 %vm166_vm1, %v1095_v38  ;;  %v3006_v38 = vld [vmem:[%s4113_s15] ss:$0 sm:$0xff] }
 0x7f6   :  { %1275 = vmatpush.msra.mxu2 %v1246_v5  ;;  %1314 = vmatpush.msrb.mxu3 %v1291_v32 }
 0x7f8   :  { %1315 = vmatpush.msrb.mxu3 %v1290_v39 }
 0x870   :  { %v1116_v40 = vpop.f32.mrf.mxu3 }
 0x871   :  { %2835 = vmatmul.msk.f32.vlgmr.msrb.gmra.mxu1 %vm166_vm1, %v1116_v40 }
 0x872   :  { %v1139_v41 = vpop.f32.mrf.mxu0 }
 0x879   :  { %2836 = vmatmul.msk.f32.gmra.mxu1 %vm166_vm1, %v1139_v41 }
 0x8ee   :  { %v1167_v43 = vpop.f32.mrf.mxu1 }
 0x8ef   :  { %v1173_v44 = vadd.f32 %v1167_v43, %v3525_v50  ;;  %v1193_v50 = vsub.f32 1.0, %v1192_v59 }
 0x8f1   :  { %v1179_v45 = vadd.f32 %v3004_v42, %v1173_v44  ;;  %v1194_v36 = vmul.f32 %v3063_v58, %v1193_v50 }
 0x8f3   :  { %v1181_v46 = vadd.f32 %v1179_v45, %v3264_v9  ;;  %v1195_v37 = vadd.f32 %v3063_v58, %v1194_v36  ;;  %v1288_v45 = vld [vmem:[%s4110_s12 + $0x18] sm:$0xff] }
 0x8f5   :  { %v1185_v47 = vsel %vm74_vm0, %v1181_v46, 0.0  ;;  %v3570_v9 = vsel %vm1196_vm6, %v3063_v58, %v1195_v37  ;;  %v3007_v58 = vld [vmem:[%s4109_s11] ss:$0 sm:$0xff] }
 0x8f6   :  { %1186 = vadd.xlane.f32.xlu1 %v1185_v47  ;;  %v1170_v48 = vpop.f32.mrf.mxu1 }
 0x8f7   :  { %v1174_v49 = vadd.f32 %v1170_v48, %v3529_v53 }
 0x8f9   :  { %v1180_v51 = vadd.f32 %v3004_v42, %v1174_v49  ;;  %v1289_v42 = vld [vmem:[%s4110_s12 + $0x20] sm:$0xff] }
 0x8fa   :  { %1316 = vmatpush.msrb.mxu3 %v1289_v42 }
 0x8fb   :  { %v1182_v52 = vadd.f32 %v1180_v51, %v3291_v17 }
 0x8fc   :  { %1317 = vmatpush.msrb.mxu3 %v1288_v45 }
 0x8fd   :  { %v1188_v54 = vsel %vm74_vm0, %v1182_v52, 0.0 }
 0x8fe   :  { %1189 = vadd.xlane.f32.xlu0 %v1188_v54  ;;  %v1286_v54 = vld [vmem:[%s4110_s12 + $0x8] sm:$0xff] }
 0x969   :  { %v1187_v56 = vpop.xlane.xlu1 %1186 }
 0x96a   :  { %v1198_v57 = vmul.f32 %v3570_v9, %v1187_v56 }
 0x96c   :  { %v1200_v53 = vsub.f32 %v1181_v46, %v1198_v57 }
 0x96e   :  { %v1202_v60 = vmul.f32 %v1200_v53, %v1200_v53 }
 0x970   :  { %v1204_v17 = vsel %vm74_vm0, %v1202_v60, 0.0 }
 0x971   :  { %1205 = vadd.xlane.f32.xlu2 %v1204_v17  ;;  %v1190_v61 = vpop.xlane.xlu0 %1189 }
 0x972   :  { %v1199_v62 = vmul.f32 %v3570_v9, %v1190_v61 }
 0x974   :  { %v3575_v63 = vsub.f32 %v1182_v52, %v1199_v62  ;;  %v1287_v52 = vld [vmem:[%s4110_s12 + $0x10] sm:$0xff] }
 0x975   :  { %1318 = vmatpush.msrb.mxu3 %v1287_v52 }
 0x976   :  { %v1203_v0 = vmul.f32 %v3575_v63, %v3575_v63 }
 0x977   :  { %1319 = vmatpush.msrb.mxu3 %v1286_v54 }
 0x978   :  { %v1207_v1 = vsel %vm74_vm0, %v1203_v0, 0.0 }
 0x979   :  { %1208 = vadd.xlane.f32.xlu1 %v1207_v1  ;;  %1320 = vmatpush.msrb.mxu3 %v1285_v55 }
 0x9e4   :  { %v1206_v6 = vpop.xlane.xlu2 %1205 }
 0x9e5   :  { %v1210_v7 = vmul.f32 %v1206_v6, %v3570_v9 }
 0x9e7   :  { %v1212_v8 = vadd.f32 1e-05, %v1210_v7 }
 0x9e9   :  { %3064 = vrsqrt.f32 %v1212_v8  ;;  %vm1220_vm8 = vweird.f32 %v1212_v8 }
 0x9ec   :  { %v1209_v13 = vpop.xlane.xlu1 %1208 }
 0x9ed   :  { %v1211_v14 = vmul.f32 %v1209_v13, %v3570_v9 }
 0x9ef   :  { %v3065_v16 = vpop.eup %3064  ;;  %v1213_v18 = vadd.f32 1e-05, %v1211_v14  ;;  %v2842_v14 = vld [vmem:[%s4123_s1 + $0x98] sm:$0xff] }
 0x9f0   :  { %v1215_v20 = vmul.f32 %v3065_v16, %v1212_v8  ;;  %vm1221_vm7 = vweird.f32 %v3065_v16  ;;  %1414 = vmatpush.msrb.mxu0 %v2842_v14 }
 0x9f1   :  { %3066 = vrsqrt.f32 %v1213_v18  ;;  %vm1222_vm9 = vmor %vm1220_vm8, %vm1221_vm7  ;;  %vm1230_vm11 = vweird.f32 %v1213_v18 }
 0x9f2   :  { %v1216_v22 = vmul.f32 %v3065_v16, %v1215_v20  ;;  %v2855_v20 = vld [vmem:[%s4102_s4 + $0x90] sm:$0xff] }
 0x9f4   :  { %v1217_v24 = vmul.f32 0.5, %v1216_v22  ;;  %v2847_v22 = vld [vmem:[%s4101_s3 + $0x88] sm:$0xff] }
 0x9f5   :  { %1449 = vmatpush.msra.mxu1 %v2847_v22 }
 0x9f6   :  { %v1218_v26 = vsub.f32 1.5, %v1217_v24  ;;  %v2839_v24 = vld [vmem:[%s4123_s1 + $0x80] sm:$0xff] }
 0x9f7   :  { %v3067_v27 = vpop.eup %3066  ;;  %1450 = vmatpush.msra.mxu1 %v2846_v25  ;;  %v2877_v25 = vld [vmem:[%s4101_s3 + $0xb8] sm:$0xff] }
 0x9f8   :  { %v1219_v29 = vmul.f32 %v3065_v16, %v1218_v26  ;;  %v1225_v30 = vmul.f32 %v3067_v27, %v1213_v18  ;;  %vm1231_vm10 = vweird.f32 %v3067_v27  ;;  %v2841_v18 = vld [vmem:[%s4123_s1 + $0x90] sm:$0xff]  ;;  %v2853_v26 = vld [vmem:[%s4102_s4 + $0x80] sm:$0xff] }
 0x9f9   :  { %vm1232_vm12 = vmor %vm1230_vm11, %vm1231_vm10  ;;  %1415 = vmatpush.msrb.mxu0 %v2841_v18 }
 0x9fa   :  { %v1223_v33 = vsel %vm1222_vm9, %v3065_v16, %v1219_v29  ;;  %v1226_v34 = vmul.f32 %v3067_v27, %v1225_v30  ;;  %v2856_v16 = vld [vmem:[%s4102_s4 + $0x98] sm:$0xff] }
 0x9fb   :  { %v1234_v35 = vmul.f32 %v1223_v33, %v1200_v53  ;;  %v3008_v53 = vld [vmem:[%s4111_s13] ss:$0 sm:$0xff]  ;;  %1480 = vmatpush.msrb.mxu2 %v2856_v16  ;;  %1416 = vmatpush.msrb.mxu0 %v2840_v21 }
 0x9fc   :  { %v1227_v40 = vmul.f32 0.5, %v1226_v34 }
 0x9fd   :  { %v1239_v41 = vmul.f32 %v3005_v31, %v1234_v35  ;;  %1481 = vmatpush.msrb.mxu2 %v2855_v20  ;;  %1417 = vmatpush.msrb.mxu0 %v2839_v24 }
 0x9fe   :  { %v1228_v43 = vsub.f32 1.5, %v1227_v40 }
 0x9ff   :  { %v1244_v44 = vadd.f32 %v3006_v38, %v1239_v41  ;;  %1482 = vmatpush.msrb.mxu2 %v2854_v23 }
 0xa00   :  { %v1229_v46 = vmul.f32 %v3067_v27, %v1228_v43  ;;  %v3009_v43 = vld [vmem:[%s4114_s16] ss:$0 sm:$0xff] }
 0xa01   :  { %2837 = vmatmul.msk.f32.vlgmr.msra.gmra.mxu2 %vm74_vm0, %v1244_v44 }
 0xa02   :  { %v1233_v47 = vsel %vm1232_vm12, %v3067_v27, %v1229_v46  ;;  %1483 = vmatpush.msrb.mxu2 %v2853_v26  ;;  %v3010_v46 = vld [vmem:[%s4115_s17] ss:$0 sm:$0xff]  ;;  %v2876_v26 = vld [vmem:[%s4101_s3 + $0xb0] sm:$0xff] }
 0xa03   :  { %v1235_v48 = vmul.f32 %v1233_v47, %v3575_v63 }
 0xa05   :  { %v1240_v49 = vmul.f32 %v3005_v31, %v1235_v48 }
 0xa07   :  { %v1245_v51 = vadd.f32 %v3006_v38, %v1240_v49 }
 0xa09   :  { %2838 = vmatmul.msk.f32.gmra.mxu2 %vm74_vm0, %v1245_v51 }
 0xa84   :  { %v1277_v59 = vpop.f32.mrf.mxu2 }
 0xa85   :  { %v1278_v50 = vadd.f32 %v3007_v58, %v1277_v59 }
 0xa87   :  { %v1283_v36 = vmax.f32 %v1278_v50, 0.0 }
 0xa89   :  { %1321 = vmatmul.f32.vlgmr.msrb.gmra.mxu3 %v1283_v36  ;;  %v3012_v36 = vld [vmem:[%s4104_s6 + $0x4] ss:$0 sm:$0xff] }
 0xa8c   :  { %v1280_v37 = vpop.f32.mrf.mxu2 }
 0xa8d   :  { %v1281_v56 = vadd.f32 %v3007_v58, %v1280_v37  ;;  %v3011_v37 = vld [vmem:[%s4103_s5 + $0x4] ss:$0 sm:$0xff] }
 0xa8f   :  { %v1284_v57 = vmax.f32 %v1281_v56, 0.0 }
 0xa91   :  { %1324 = vmatmul.f32.gmra.mxu3 %v1284_v57 }
 0xb0c   :  { %v1322_v60 = vpop.f32.mrf.mxu3 }
 0xb0d   :  { %v1323_v17 = vadd.f32 %v3008_v53, %v1322_v60 }
 0xb0f   :  { %v1328_v61 = vadd.f32 %v1323_v17, %v1244_v44  ;;  %v3013_v17 = vld [vmem:[%s4105_s7 + $0x4] ss:$0 sm:$0xff] }
 0xb11   :  { %v1332_v62 = vsel %vm74_vm0, %v1328_v61, 0.0 }
 0xb12   :  { %1333 = vadd.xlane.f32.xlu2 %v1332_v62 }
 0xb14   :  { %v1325_v63 = vpop.f32.mrf.mxu3 }
 0xb15   :  { %v1326_v0 = vadd.f32 %v3008_v53, %v1325_v63 }
 0xb17   :  { %v1329_v1 = vadd.f32 %v1326_v0, %v1245_v51 }
 0xb19   :  { %v1335_v2 = vsel %vm74_vm0, %v1329_v1, 0.0 }
 0xb1a   :  { %1336 = vadd.xlane.f32.xlu1 %v1335_v2  ;;  %v2870_v2 = vld [vmem:[%s4123_s1 + $0xb8] sm:$0xff] }
 0xb85   :  { %v1334_v3 = vpop.xlane.xlu2 %1333 }
 0xb86   :  { %v1338_v4 = vmul.f32 %v1334_v3, %v3570_v9 }
 0xb88   :  { %v1340_v5 = vsub.f32 %v1328_v61, %v1338_v4  ;;  %v2869_v4 = vld [vmem:[%s4123_s1 + $0xb0] sm:$0xff] }
 0xb8a   :  { %v1342_v6 = vmul.f32 %v1340_v5, %v1340_v5 }
 0xb8c   :  { %v1344_v7 = vsel %vm74_vm0, %v1342_v6, 0.0 }
 0xb8d   :  { %1345 = vadd.xlane.f32.xlu0 %v1344_v7  ;;  %v1337_v8 = vpop.xlane.xlu1 %1336 }
 0xb8e   :  { %v1339_v10 = vmul.f32 %v1337_v8, %v3570_v9  ;;  %v2867_v8 = vld [vmem:[%s4123_s1 + $0xa0] sm:$0xff] }
 0xb90   :  { %v3662_v11 = vsub.f32 %v1329_v1, %v1339_v10 }
 0xb92   :  { %v1343_v12 = vmul.f32 %v3662_v11, %v3662_v11 }
 0xb94   :  { %v1347_v13 = vsel %vm74_vm0, %v1343_v12, 0.0 }
 0xb95   :  { %1348 = vadd.xlane.f32.xlu2 %v1347_v13 }
 0xc00   :  { %v1346_v27 = vpop.xlane.xlu0 %1345 }
 0xc01   :  { %v1350_v28 = vmul.f32 %v1346_v27, %v3570_v9  ;;  %v2875_v27 = vld [vmem:[%s4101_s3 + $0xa8] sm:$0xff] }
 0xc03   :  { %v1352_v29 = vadd.f32 1e-05, %v1350_v28  ;;  %v2874_v28 = vld [vmem:[%s4101_s3 + $0xa0] sm:$0xff] }
 0xc05   :  { %3068 = vrsqrt.f32 %v1352_v29  ;;  %vm1360_vm14 = vweird.f32 %v1352_v29 }
 0xc08   :  { %v1349_v30 = vpop.xlane.xlu2 %1348 }
 0xc09   :  { %v1351_v31 = vmul.f32 %v1349_v30, %v3570_v9  ;;  %v2883_v30 = vld [vmem:[%s4102_s4 + $0xb0] sm:$0xff] }
 0xc0b   :  { %v3069_v32 = vpop.eup %3068  ;;  %v1353_v33 = vadd.f32 1e-05, %v1351_v31  ;;  %v2882_v31 = vld [vmem:[%s4102_s4 + $0xa8] sm:$0xff] }
 0xc0c   :  { %v1355_v34 = vmul.f32 %v3069_v32, %v1352_v29  ;;  %vm1361_vm13 = vweird.f32 %v3069_v32  ;;  %v2884_v29 = vld [vmem:[%s4102_s4 + $0xb8] sm:$0xff] }
 0xc0d   :  { %3070 = vrsqrt.f32 %v1353_v33  ;;  %vm1362_vm15 = vmor %vm1360_vm14, %vm1361_vm13  ;;  %vm1370_vm3 = vweird.f32 %v1353_v33 }
 0xc0e   :  { %v1356_v35 = vmul.f32 %v3069_v32, %v1355_v34 }
 0xc10   :  { %v1357_v38 = vmul.f32 0.5, %v1356_v35 }
 0xc12   :  { %v1358_v39 = vsub.f32 1.5, %v1357_v38 }
 0xc13   :  { %v3071_v40 = vpop.eup %3070 }
 0xc14   :  { %v1359_v41 = vmul.f32 %v3069_v32, %v1358_v39  ;;  %v1365_v42 = vmul.f32 %v3071_v40, %v1353_v33  ;;  %vm1371_vm2 = vweird.f32 %v3071_v40  ;;  %v2881_v33 = vld [vmem:[%s4102_s4 + $0xa0] sm:$0xff] }
 0xc15   :  { %vm1372_vm4 = vmor %vm1370_vm3, %vm1371_vm2 }
 0xc16   :  { %v1363_v44 = vsel %vm1362_vm15, %v3069_v32, %v1359_v41  ;;  %v1366_v45 = vmul.f32 %v3071_v40, %v1365_v42 }
 0xc17   :  { %v1374_v47 = vmul.f32 %v1363_v44, %v1340_v5  ;;  %v2868_v5 = vld [vmem:[%s4123_s1 + $0xa8] sm:$0xff] }
 0xc18   :  { %v1367_v48 = vmul.f32 0.5, %v1366_v45 }
 0xc19   :  { %v1379_v49 = vmul.f32 %v3009_v43, %v1374_v47 }
 0xc1a   :  { %v1368_v51 = vsub.f32 1.5, %v1367_v48 }
 0xc1b   :  { %v3711_v52 = vadd.f32 %v3010_v46, %v1379_v49 }
 0xc1c   :  { %v1369_v54 = vmul.f32 %v3071_v40, %v1368_v51 }
 0xc1d   :  { %2844 = vmatmul.msk.f32.vlgmr.msrb.gmra.mxu0 %vm74_vm0, %v3711_v52  ;;  %2851 = vmatmul.msk.f32.vlgmr.msra.gmra.mxu1 %vm74_vm0, %v3711_v52 }
 0xc1e   :  { %v1373_v55 = vsel %vm1372_vm4, %v3071_v40, %v1369_v54  ;;  %2858 = vmatmul.msk.f32.vlgmr.msrb.gmra.mxu2 %vm74_vm0, %v3711_v52 }
 0xc1f   :  { %v1375_v58 = vmul.f32 %v1373_v55, %v3662_v11 }
 0xc21   :  { %v1380_v59 = vmul.f32 %v3009_v43, %v1375_v58 }
 0xc23   :  { %v3720_v50 = vadd.f32 %v3010_v46, %v1380_v59 }
 0xc25   :  { %2845 = vmatmul.msk.f32.gmra.mxu0 %vm74_vm0, %v3720_v50  ;;  %2852 = vmatmul.msk.f32.gmra.mxu1 %vm74_vm0, %v3720_v50 }
 0xc26   :  { %2859 = vmatmul.msk.f32.gmra.mxu2 %vm74_vm0, %v3720_v50 }
 0xc9a   :  { %v1419_v56 = vpop.f32.mrf.mxu0  ;;  %v1452_v57 = vpop.f32.mrf.mxu1 }
 0xc9b   :  { %v1453_v53 = vadd.f32 %v3012_v36, %v1452_v57  ;;  %v1420_v60 = vadd.f32 %v3011_v37, %v1419_v56 }
 0xc9d   :  { %2860 = vmatpush.xpose.msk.msra.mxu0 %vm166_vm1, %v1453_v53 }
 0xca0   :  { %2861 = vmatmul.msk.f32.vlgmr.msra.gmra.mxu0 %vm166_vm1, %v1420_v60  ;;  %v3015_v60 = vld [vmem:[%s4104_s6 + $0x5] ss:$0 sm:$0xff] }
 0xca1   :  { %v1485_v61 = vpop.f32.mrf.mxu2 }
 0xca2   :  { %v1486_v62 = vadd.f32 %v3013_v17, %v1485_v61  ;;  %v1455_v63 = vpop.f32.mrf.mxu1  ;;  %v1422_v0 = vpop.f32.mrf.mxu0  ;;  %v3014_v61 = vld [vmem:[%s4103_s5 + $0x5] ss:$0 sm:$0xff] }
 0xca3   :  { %v1456_v1 = vadd.f32 %v3012_v36, %v1455_v63  ;;  %v1423_v3 = vadd.f32 %v3011_v37, %v1422_v0 }
 0xca4   :  { %1609 = vmatpush.msrb.mxu1 %v1486_v62 }
 0xca5   :  { %2862 = vmatpush.xpose.msk.msrb.mxu0 %vm166_vm1, %v1456_v1 }
 0xca6   :  { %1694 = vmatpush.msra.mxu1 %v2877_v25 }
 0xca8   :  { %2863 = vmatmul.msk.f32.vlgmr.msrb.gmra.mxu0 %vm166_vm1, %v1423_v3  ;;  %1695 = vmatpush.msra.mxu1 %v2876_v26 }
 0xca9   :  { %1661 = vmatpush.msra.mxu0 %v2870_v2  ;;  %v1488_v6 = vpop.f32.mrf.mxu2 }
 0xcaa   :  { %v1489_v7 = vadd.f32 %v3013_v17, %v1488_v6  ;;  %1696 = vmatpush.msra.mxu1 %v2875_v27  ;;  %v3016_v6 = vld [vmem:[%s4105_s7 + $0x5] ss:$0 sm:$0xff] }
 0xcab   :  { %1662 = vmatpush.msra.mxu0 %v2869_v4 }
 0xcac   :  { %1632 = vmatpush.msra.mxu2 %v1489_v7  ;;  %1697 = vmatpush.msra.mxu1 %v2874_v28  ;;  %v2902_v28 = vld [vmem:[%s4123_s1 + $0xd8] sm:$0xff] }
 0xcad   :  { %1663 = vmatpush.msra.mxu0 %v2868_v5  ;;  %v2866_v5 = vld [vmem:[%s4106_s8 + $0x20] sm:$0xff] }
 0xcae   :  { %1727 = vmatpush.msrb.mxu2 %v2884_v29  ;;  %v2901_v29 = vld [vmem:[%s4123_s1 + $0xd0] sm:$0xff] }
 0xcaf   :  { %1664 = vmatpush.msra.mxu0 %v2867_v8 }
 0xcb0   :  { %2872 = vmatmul.msk.f32.vlgmr.msra.gmra.mxu0 %vm74_vm0, %v3711_v52  ;;  %1728 = vmatpush.msrb.mxu2 %v2883_v30  ;;  %v2900_v30 = vld [vmem:[%s4123_s1 + $0xc8] sm:$0xff] }
 0xcb2   :  { %1729 = vmatpush.msrb.mxu2 %v2882_v31  ;;  %v2899_v31 = vld [vmem:[%s4123_s1 + $0xc0] sm:$0xff] }
 0xcb4   :  { %1730 = vmatpush.msrb.mxu2 %v2881_v33  ;;  %v2908_v33 = vld [vmem:[%s4101_s3 + $0xd0] sm:$0xff] }
 0xcb8   :  { %2873 = vmatmul.msk.f32.gmra.mxu0 %vm74_vm0, %v3720_v50 }
 0xd1d   :  { %v1514_v10 = vpop.f32.mrf.mxu0 }
 0xd1e   :  { %v1543_v11 = vsel %vm166_vm1, %v1514_v10, -inf }
 0xd1f   :  { %1544 = vmax.xlane.f32.xlu0 %v1543_v11 }
 0xd25   :  { %v1540_v12 = vpop.f32.mrf.mxu0 }
 0xd26   :  { %v1546_v13 = vsel %vm166_vm1, %v1540_v12, -inf }
 0xd27   :  { %1547 = vmax.xlane.f32.xlu2 %v1546_v13 }
 0xd2d   :  { %v1666_v17 = vpop.f32.mrf.mxu0 }
 0xd2e   :  { %v1667_v0 = vadd.f32 %v3014_v61, %v1666_v17 }
 0xd35   :  { %v1669_v3 = vpop.f32.mrf.mxu0 }
 0xd36   :  { %v1670_v7 = vadd.f32 %v3014_v61, %v1669_v3  ;;  %v2894_v61 = vld [vmem:[%s4106_s8 + $0x28] sm:$0xff] }
 0xd92   :  { %v1545_v14 = vpop.xlane.xlu0 %1544 }
 0xd93   :  { %v1549_v15 = vsub.f32 %v1514_v10, %v1545_v14 }
 0xd95   :  { %v1551_v16 = vmul.f32 1.442695, %v1549_v15 }
 0xd97   :  { %3072 = vpow2.f32 %v1551_v16 }
 0xd9a   :  { %v1548_v18 = vpop.xlane.xlu2 %1547 }
 0xd9b   :  { %v1550_v19 = vsub.f32 %v1540_v12, %v1548_v18 }
 0xd9d   :  { %v3073_v20 = vpop.eup %3072  ;;  %v1553_v21 = vmul.f32 1.442695, %v1550_v19 }
 0xd9e   :  { %v1555_v22 = vsel %vm166_vm1, %v3073_v20, 0.0 }
 0xd9f   :  { %3074 = vpow2.f32 %v1553_v21  ;;  %1556 = vadd.xlane.f32.xlu1 %v1555_v22 }
 0xda5   :  { %v3075_v23 = vpop.eup %3074 }
 0xda6   :  { %v1558_v24 = vsel %vm166_vm1, %v3075_v23, 0.0 }
 0xda7   :  { %1559 = vadd.xlane.f32.xlu0 %v1558_v24 }
 0xe12   :  { %v1557_v32 = vpop.xlane.xlu1 %1556 }
 0xe13   :  { %3076 = vrcp.f32 %v1557_v32  ;;  %v1572_v40 = vand.u32 2147483648, %v1557_v32  ;;  %v1570_v42 = vand.u32 2147483647, %v1557_v32  ;;  %vm1566_vm6 = vweird.f32 %v1557_v32 }
 0xe15   :  { %v1573_v45 = vor.u32 1.1754944e-38, %v1572_v40  ;;  %vm1571_vm8 = vcmp.eq.f32.partialorder %v1570_v42, 8.507059e+37 }
 0xe19   :  { %v3077_v34 = vpop.eup %3076 }
 0xe1a   :  { %v1562_v35 = vmul.f32 %v3077_v34, %v1557_v32  ;;  %v1560_v38 = vpop.xlane.xlu0 %1559  ;;  %vm1567_vm5 = vweird.f32 %v3077_v34  ;;  %v2909_v32 = vld [vmem:[%s4101_s3 + $0xd8] sm:$0xff] }
 0xe1b   :  { %3078 = vrcp.f32 %v1560_v38  ;;  %vm1568_vm7 = vmor %vm1566_vm6, %vm1567_vm5  ;;  %v1587_v54 = vand.u32 2147483648, %v1560_v38  ;;  %v1585_v58 = vand.u32 2147483647, %v1560_v38  ;;  %vm1581_vm10 = vweird.f32 %v1560_v38 }
 0xe1c   :  { %v1563_v39 = vsub.f32 1.0, %v1562_v35 }
 0xe1d   :  { %v1588_v36 = vor.u32 1.1754944e-38, %v1587_v54  ;;  %vm1586_vm12 = vcmp.eq.f32.partialorder %v1585_v58, 8.507059e+37 }
 0xe1e   :  { %v1564_v41 = vmul.f32 %v3077_v34, %v1563_v39 }
 0xe20   :  { %v1565_v43 = vadd.f32 %v3077_v34, %v1564_v41 }
 0xe21   :  { %v3079_v44 = vpop.eup %3078 }
 0xe22   :  { %v1569_v46 = vsel %vm1568_vm7, %v3077_v34, %v1565_v43  ;;  %v1577_v47 = vmul.f32 %v3079_v44, %v1560_v38  ;;  %vm1582_vm9 = vweird.f32 %v3079_v44  ;;  %v2907_v34 = vld [vmem:[%s4101_s3 + $0xc8] sm:$0xff]  ;;  %v2906_v38 = vld [vmem:[%s4101_s3 + $0xc0] sm:$0xff] }
 0xe23   :  { %v1574_v48 = vsel %vm1571_vm8, %v1573_v45, %v1569_v46  ;;  %vm1583_vm11 = vmor %vm1581_vm10, %vm1582_vm9 }
 0xe24   :  { %v1578_v49 = vsub.f32 1.0, %v1577_v47  ;;  %v1575_v51 = vmul.f32 %v3073_v20, %v1574_v48 }
 0xe26   :  { %v1579_v55 = vmul.f32 %v3079_v44, %v1578_v49  ;;  %2864 = vmatmul.msk.f32.vlgmr.msrb.gmra.mxu1 %vm166_vm1, %v1575_v51 }
 0xe28   :  { %v1580_v59 = vadd.f32 %v3079_v44, %v1579_v55 }
 0xe2a   :  { %v1584_v37 = vsel %vm1583_vm11, %v3079_v44, %v1580_v59 }
 0xe2b   :  { %v1589_v56 = vsel %vm1586_vm12, %v1588_v36, %v1584_v37 }
 0xe2c   :  { %v1590_v57 = vmul.f32 %v3075_v23, %v1589_v56 }
 0xe2e   :  { %2865 = vmatmul.msk.f32.vlgmr.msra.gmra.mxu2 %vm166_vm1, %v1590_v57  ;;  %2879 = vmatmul.msk.f32.vlgmr.msra.gmra.mxu1 %vm74_vm0, %v3711_v52 }
 0xe2f   :  { %1907 = vmatpush.msra.mxu2 %v2894_v61 }
 0xe36   :  { %2880 = vmatmul.msk.f32.gmra.mxu1 %vm74_vm0, %v3720_v50  ;;  %2886 = vmatmul.msk.f32.vlgmr.msrb.gmra.mxu2 %vm74_vm0, %v3711_v52 }
 0xe3e   :  { %2887 = vmatmul.msk.f32.gmra.mxu2 %vm74_vm0, %v3720_v50 }
 0xea3   :  { %v1611_v53 = vpop.f32.mrf.mxu1 }
 0xeab   :  { %v1699_v62 = vpop.f32.mrf.mxu1 }
 0xeac   :  { %v1700_v63 = vadd.f32 %v3015_v60, %v1699_v62  ;;  %v2916_v62 = vld [vmem:[%s4102_s4 + $0xd8] sm:$0xff] }
 0xead   :  { %2032 = vmatpush.msrb.mxu2 %v2916_v62 }
 0xeae   :  { %2888 = vmatpush.xpose.msk.msra.mxu3 %vm166_vm1, %v1700_v63  ;;  %v2915_v63 = vld [vmem:[%s4102_s4 + $0xd0] sm:$0xff] }
 0xeaf   :  { %2033 = vmatpush.msrb.mxu2 %v2915_v63 }
 0xeb1   :  { %v1634_v1 = vpop.f32.mrf.mxu2  ;;  %2889 = vmatmul.msk.f32.vlgmr.msra.gmra.mxu3 %vm166_vm1, %v1667_v0  ;;  %v2914_v0 = vld [vmem:[%s4102_s4 + $0xc8] sm:$0xff] }
 0xeb2   :  { %2034 = vmatpush.msrb.mxu2 %v2914_v0 }
 0xeb3   :  { %v1702_v2 = vpop.f32.mrf.mxu1 }
 0xeb4   :  { %v1703_v4 = vadd.f32 %v3015_v60, %v1702_v2  ;;  %v2939_v2 = vld [vmem:[%s4101_s3 + $0xf8] sm:$0xff] }
 0xeb6   :  { %2890 = vmatpush.xpose.msk.msrb.mxu3 %vm166_vm1, %v1703_v4  ;;  %v2938_v4 = vld [vmem:[%s4101_s3 + $0xf0] sm:$0xff] }
 0xeb9   :  { %v1732_v8 = vpop.f32.mrf.mxu2  ;;  %2891 = vmatmul.msk.f32.vlgmr.msrb.gmra.mxu3 %vm166_vm1, %v1670_v7 }
 0xeba   :  { %1936 = vmatpush.msra.mxu3 %v2866_v5  ;;  %v1733_v10 = vadd.f32 %v3016_v6, %v1732_v8  ;;  %v2937_v5 = vld [vmem:[%s4101_s3 + $0xe8] sm:$0xff]  ;;  %v3018_v8 = vld [vmem:[%s4104_s6 + $0x6] ss:$0 sm:$0xff] }
 0xebc   :  { %1856 = vmatpush.msrb.mxu0 %v1733_v10 }
 0xebe   :  { %1966 = vmatpush.msra.mxu0 %v2902_v28 }
 0xec0   :  { %1967 = vmatpush.msra.mxu0 %v2901_v29 }
 0xec1   :  { %v1735_v11 = vpop.f32.mrf.mxu2  ;;  %2897 = vmatmul.msk.f32.vlgmr.msra.gmra.mxu3 %vm166_vm1, %v1611_v53 }
 0xec2   :  { %v1736_v12 = vadd.f32 %v3016_v6, %v1735_v11  ;;  %1968 = vmatpush.msra.mxu0 %v2900_v30  ;;  %v2936_v6 = vld [vmem:[%s4101_s3 + $0xe0] sm:$0xff] }
 0xec3   :  { %v3017_v11 = vld [vmem:[%s4103_s5 + $0x6] ss:$0 sm:$0xff] }
 0xec4   :  { %1879 = vmatpush.msrb.mxu1 %v1736_v12  ;;  %1969 = vmatpush.msra.mxu0 %v2899_v31 }
 0xec6   :  { %1999 = vmatpush.msra.mxu1 %v2909_v32 }
 0xec8   :  { %2000 = vmatpush.msra.mxu1 %v2908_v33 }
 0xec9   :  { %2898 = vmatmul.msk.f32.gmra.mxu3 %vm166_vm1, %v1634_v1  ;;  %v2913_v1 = vld [vmem:[%s4102_s4 + $0xc0] sm:$0xff] }
 0xeca   :  { %2001 = vmatpush.msra.mxu1 %v2907_v34  ;;  %2035 = vmatpush.msrb.mxu2 %v2913_v1 }
 0xecc   :  { %2002 = vmatpush.msra.mxu1 %v2906_v38 }
 0xf34   :  { %v1761_v13 = vpop.f32.mrf.mxu3 }
 0xf35   :  { %v1790_v14 = vsel %vm166_vm1, %v1761_v13, -inf }
 0xf36   :  { %1791 = vmax.xlane.f32.xlu2 %v1790_v14 }
 0xf3c   :  { %v1787_v15 = vpop.f32.mrf.mxu3 }
 0xf3d   :  { %v1793_v16 = vsel %vm166_vm1, %v1787_v15, -inf }
 0xf3e   :  { %1794 = vmax.xlane.f32.xlu1 %v1793_v16 }
 0xfa9   :  { %v1792_v18 = vpop.xlane.xlu2 %1791 }
 0xfaa   :  { %v1796_v19 = vsub.f32 %v1761_v13, %v1792_v18 }
 0xfac   :  { %v1798_v20 = vmul.f32 1.442695, %v1796_v19 }
 0xfae   :  { %3080 = vpow2.f32 %v1798_v20  ;;  %v3898_v20 = vpop.f32.mrf.mxu3 }
 0xfb1   :  { %v1795_v21 = vpop.xlane.xlu1 %1794 }
 0xfb2   :  { %v1797_v22 = vsub.f32 %v1787_v15, %v1795_v21 }
 0xfb4   :  { %v3081_v23 = vpop.eup %3080  ;;  %v1800_v24 = vmul.f32 1.442695, %v1797_v22  ;;  %v2926_v22 = vld [vmem:[%s4106_s8 + $0x30] sm:$0xff] }
 0xfb5   :  { %v1802_v25 = vsel %vm166_vm1, %v3081_v23, 0.0 }
 0xfb6   :  { %3082 = vpow2.f32 %v1800_v24  ;;  %1803 = vadd.xlane.f32.xlu1 %v1802_v25 }
 0xfbc   :  { %v3083_v26 = vpop.eup %3082 }
 0xfbd   :  { %v1805_v27 = vsel %vm166_vm1, %v3083_v26, 0.0 }
 0xfbe   :  { %1806 = vadd.xlane.f32.xlu0 %v1805_v27 }
0x1029   :  { %v1804_v35 = vpop.xlane.xlu1 %1803 }
0x102a   :  { %3084 = vrcp.f32 %v1804_v35  ;;  %v1819_v43 = vand.u32 2147483648, %v1804_v35  ;;  %v1817_v45 = vand.u32 2147483647, %v1804_v35  ;;  %vm1813_vm14 = vweird.f32 %v1804_v35 }
0x102c   :  { %v1820_v48 = vor.u32 1.1754944e-38, %v1819_v43  ;;  %vm1818_vm2 = vcmp.eq.f32.partialorder %v1817_v45, 8.507059e+37 }
0x1030   :  { %v3085_v39 = vpop.eup %3084 }
0x1031   :  { %v1809_v40 = vmul.f32 %v3085_v39, %v1804_v35  ;;  %v1807_v41 = vpop.xlane.xlu0 %1806  ;;  %vm1814_vm13 = vweird.f32 %v3085_v39  ;;  %v3915_v35 = vld [vmem:[%s4104_s6 + $0x7] ss:$0 sm:$0xff] }
0x1032   :  { %3086 = vrcp.f32 %v1807_v41  ;;  %vm1815_vm15 = vmor %vm1813_vm14, %vm1814_vm13  ;;  %v1834_v59 = vand.u32 2147483648, %v1807_v41  ;;  %v1832_v37 = vand.u32 2147483647, %v1807_v41  ;;  %vm1828_vm4 = vweird.f32 %v1807_v41 }
0x1033   :  { %v1810_v42 = vsub.f32 1.0, %v1809_v40 }
0x1034   :  { %v1835_v57 = vor.u32 1.1754944e-38, %v1834_v59  ;;  %vm1833_vm6 = vcmp.eq.f32.partialorder %v1832_v37, 8.507059e+37  ;;  %v2946_v59 = vld [vmem:[%s4102_s4 + $0xf8] sm:$0xff]  ;;  %v2944_v37 = vld [vmem:[%s4102_s4 + $0xe8] sm:$0xff] }
0x1035   :  { %v1811_v44 = vmul.f32 %v3085_v39, %v1810_v42 }
0x1037   :  { %v1812_v46 = vadd.f32 %v3085_v39, %v1811_v44 }
0x1038   :  { %v3087_v47 = vpop.eup %3086 }
0x1039   :  { %v1816_v49 = vsel %vm1815_vm15, %v3085_v39, %v1812_v46  ;;  %v1824_v51 = vmul.f32 %v3087_v47, %v1807_v41  ;;  %vm1829_vm3 = vweird.f32 %v3087_v47 }
0x103a   :  { %v1821_v54 = vsel %vm1818_vm2, %v1820_v48, %v1816_v49  ;;  %vm1830_vm5 = vmor %vm1828_vm4, %vm1829_vm3 }
0x103b   :  { %v1825_v55 = vsub.f32 1.0, %v1824_v51  ;;  %v1822_v58 = vmul.f32 %v3081_v23, %v1821_v54  ;;  %v1941_v23 = vpop.f32.mrf.mxu3  ;;  %v2932_v51 = vld [vmem:[%s4123_s1 + $0xf8] sm:$0xff]  ;;  %v2931_v54 = vld [vmem:[%s4123_s1 + $0xf0] sm:$0xff] }
0x103d   :  { %v1826_v36 = vmul.f32 %v3087_v47, %v1825_v55  ;;  %2892 = vmatmul.msk.f32.vlgmr.msrb.gmra.mxu0 %vm166_vm1, %v1822_v58  ;;  %v2930_v55 = vld [vmem:[%s4123_s1 + $0xe8] sm:$0xff]  ;;  %v2929_v58 = vld [vmem:[%s4123_s1 + $0xe0] sm:$0xff] }
0x103f   :  { %v1827_v56 = vadd.f32 %v3087_v47, %v1826_v36  ;;  %v2945_v36 = vld [vmem:[%s4102_s4 + $0xf0] sm:$0xff] }
0x1041   :  { %v1831_v53 = vsel %vm1830_vm5, %v3087_v47, %v1827_v56  ;;  %v2943_v56 = vld [vmem:[%s4102_s4 + $0xe0] sm:$0xff] }
0x1042   :  { %v1836_v60 = vsel %vm1833_vm6, %v1835_v57, %v1831_v53 }
0x1043   :  { %v1837_v17 = vmul.f32 %v3083_v26, %v1836_v60  ;;  %v3019_v26 = vld [vmem:[%s4105_s7 + $0x6] ss:$0 sm:$0xff] }
0x1045   :  { %2893 = vmatmul.msk.f32.vlgmr.msrb.gmra.mxu1 %vm166_vm1, %v1837_v17  ;;  %2904 = vmatmul.msk.f32.vlgmr.msra.gmra.mxu0 %vm74_vm0, %v3711_v52 }
0x104d   :  { %2905 = vmatmul.msk.f32.gmra.mxu0 %vm74_vm0, %v3720_v50  ;;  %2911 = vmatmul.msk.f32.vlgmr.msra.gmra.mxu1 %vm74_vm0, %v3711_v52 }
0x1055   :  { %2912 = vmatmul.msk.f32.gmra.mxu1 %vm74_vm0, %v3720_v50 }
0x10ba   :  { %v1858_v3 = vpop.f32.mrf.mxu0 }
0x10bb   :  { %2895 = vmatmul.msk.f32.vlgmr.msra.gmra.mxu2 %vm166_vm1, %v1858_v3 }
0x10bc   :  { %2277 = vmatpush.msra.mxu2 %v2939_v2 }
0x10be   :  { %2278 = vmatpush.msra.mxu2 %v2938_v4 }
0x10c0   :  { %2279 = vmatpush.msra.mxu2 %v2937_v5 }
0x10c2   :  { %v1881_v7 = vpop.f32.mrf.mxu1  ;;  %2280 = vmatpush.msra.mxu2 %v2936_v6  ;;  %v1971_v10 = vpop.f32.mrf.mxu0 }
0x10c3   :  { %2896 = vmatmul.msk.f32.gmra.mxu2 %vm166_vm1, %v1881_v7  ;;  %v1972_v14 = vadd.f32 %v3017_v11, %v1971_v10 }
0x10ca   :  { %v2004_v12 = vpop.f32.mrf.mxu1  ;;  %v1974_v16 = vpop.f32.mrf.mxu0 }
0x10cb   :  { %v2005_v13 = vadd.f32 %v3018_v8, %v2004_v12  ;;  %2918 = vmatmul.msk.f32.vlgmr.msrb.gmra.mxu2 %vm74_vm0, %v3711_v52  ;;  %v1975_v19 = vadd.f32 %v3017_v11, %v1974_v16 }
0x10cd   :  { %2920 = vmatpush.xpose.msk.msrb.mxu3 %vm166_vm1, %v2005_v13 }
0x10d0   :  { %2921 = vmatmul.msk.f32.vlgmr.msrb.gmra.mxu3 %vm166_vm1, %v1972_v14 }
0x10d2   :  { %v2007_v15 = vpop.f32.mrf.mxu1 }
0x10d3   :  { %v2008_v18 = vadd.f32 %v3018_v8, %v2007_v15  ;;  %2919 = vmatmul.msk.f32.gmra.mxu2 %vm74_vm0, %v3720_v50 }
0x10d5   :  { %2922 = vmatpush.xpose.msk.msrb.mxu0 %vm166_vm1, %v2008_v18 }
0x10d8   :  { %2923 = vmatmul.msk.f32.vlgmr.msrb.gmra.mxu0 %vm166_vm1, %v1975_v19 }
0x10d9   :  { %2212 = vmatpush.msra.mxu0 %v2926_v22 }
0x10db   :  { %2941 = vmatmul.msk.f32.vlgmr.msra.gmra.mxu2 %vm74_vm0, %v3711_v52 }
0x10e3   :  { %2942 = vmatmul.msk.f32.gmra.mxu2 %vm74_vm0, %v3720_v50 }
0x113e   :  { %v3900_v21 = vpop.f32.mrf.mxu2 }
0x1146   :  { %v1912_v24 = vpop.f32.mrf.mxu2 }
0x1147   :  { %v3905_v25 = vadd.f32 %v1941_v23, %v1912_v24 }
0x114e   :  { %v2037_v27 = vpop.f32.mrf.mxu2 }
0x114f   :  { %v2038_v28 = vadd.f32 %v3019_v26, %v2037_v27  ;;  %v3021_v27 = vld [vmem:[%s4103_s5 + $0x7] ss:$0 sm:$0xff] }
0x1151   :  { %2161 = vmatpush.msrb.mxu1 %v2038_v28  ;;  %v3022_v28 = vld [vmem:[%s4105_s7 + $0x7] ss:$0 sm:$0xff] }
0x1153   :  { %v2066_v29 = vpop.f32.mrf.mxu3  ;;  %2244 = vmatpush.msra.mxu1 %v2932_v51 }
0x1154   :  { %v2095_v30 = vsel %vm166_vm1, %v2066_v29, -inf }
0x1155   :  { %v2092_v31 = vpop.f32.mrf.mxu0  ;;  %2096 = vmax.xlane.f32.xlu2 %v2095_v30  ;;  %2245 = vmatpush.msra.mxu1 %v2931_v54 }
0x1156   :  { %v2040_v32 = vpop.f32.mrf.mxu2  ;;  %v2098_v33 = vsel %vm166_vm1, %v2092_v31, -inf }
0x1157   :  { %v2041_v34 = vadd.f32 %v3019_v26, %v2040_v32  ;;  %2099 = vmax.xlane.f32.xlu0 %v2098_v33  ;;  %2246 = vmatpush.msra.mxu1 %v2930_v55 }
0x1159   :  { %2184 = vmatpush.msra.mxu3 %v2041_v34  ;;  %2247 = vmatpush.msra.mxu1 %v2929_v58 }
0x115b   :  { %2310 = vmatpush.msrb.mxu3 %v2946_v59 }
0x115d   :  { %2311 = vmatpush.msrb.mxu3 %v2945_v36 }
0x115e   :  { %v2282_v38 = vpop.f32.mrf.mxu2 }
0x115f   :  { %v2283_v39 = vadd.f32 %v3915_v35, %v2282_v38  ;;  %2312 = vmatpush.msrb.mxu3 %v2944_v37  ;;  %v1939_v38 = vadd.f32 %v3898_v20, %v3900_v21 }
0x1161   :  { %2950 = vmatpush.xpose.msk.msrb.mxu0 %vm166_vm1, %v2283_v39  ;;  %2313 = vmatpush.msrb.mxu3 %v2943_v56 }
0x1166   :  { %v2285_v10 = vpop.f32.mrf.mxu2 }
0x1167   :  { %v2286_v18 = vadd.f32 %v3915_v35, %v2285_v10 }
0x11c8   :  { %v2097_v40 = vpop.xlane.xlu2 %2096 }
0x11c9   :  { %v2101_v41 = vsub.f32 %v2066_v29, %v2097_v40 }
0x11ca   :  { %v2100_v42 = vpop.xlane.xlu0 %2099 }
0x11cb   :  { %v2103_v43 = vmul.f32 1.442695, %v2101_v41  ;;  %v2102_v44 = vsub.f32 %v2092_v31, %v2100_v42 }
0x11cd   :  { %3088 = vpow2.f32 %v2103_v43  ;;  %v2105_v45 = vmul.f32 1.442695, %v2102_v44 }
0x11cf   :  { %3090 = vpow2.f32 %v2105_v45 }
0x11d3   :  { %v3089_v46 = vpop.eup %3088 }
0x11d4   :  { %v2107_v47 = vsel %vm166_vm1, %v3089_v46, 0.0 }
0x11d5   :  { %v3091_v48 = vpop.eup %3090  ;;  %2108 = vadd.xlane.f32.xlu1 %v2107_v47 }
0x11d6   :  { %v2110_v49 = vsel %vm166_vm1, %v3091_v48, 0.0 }
0x11d7   :  { %2111 = vadd.xlane.f32.xlu2 %v2110_v49 }
0x1248   :  { %v2109_v57 = vpop.xlane.xlu1 %2108 }
0x1249   :  { %3092 = vrcp.f32 %v2109_v57  ;;  %v2124_v0 = vand.u32 2147483648, %v2109_v57  ;;  %v2122_v2 = vand.u32 2147483647, %v2109_v57  ;;  %vm2118_vm8 = vweird.f32 %v2109_v57 }
0x124a   :  { %v2112_v53 = vpop.xlane.xlu2 %2111 }
0x124b   :  { %3094 = vrcp.f32 %v2112_v53  ;;  %v2139_v4 = vand.u32 2147483648, %v2112_v53  ;;  %v2137_v7 = vand.u32 2147483647, %v2112_v53  ;;  %v2125_v8 = vor.u32 1.1754944e-38, %v2124_v0 }
0x124c   :  { %vm2123_vm11 = vcmp.eq.f32.partialorder %v2122_v2, 8.507059e+37  ;;  %vm2133_vm12 = vweird.f32 %v2112_v53 }
0x124d   :  { %v2140_v14 = vor.u32 1.1754944e-38, %v2139_v4  ;;  %vm2138_vm14 = vcmp.eq.f32.partialorder %v2137_v7, 8.507059e+37 }
0x124f   :  { %v3093_v60 = vpop.eup %3092 }
0x1250   :  { %v2114_v17 = vmul.f32 %v3093_v60, %v2109_v57  ;;  %vm2119_vm7 = vweird.f32 %v3093_v60 }
0x1251   :  { %v3095_v61 = vpop.eup %3094  ;;  %vm2120_vm10 = vmor %vm2118_vm8, %vm2119_vm7 }
0x1252   :  { %v2115_v62 = vsub.f32 1.0, %v2114_v17  ;;  %v2129_v63 = vmul.f32 %v3095_v61, %v2112_v53  ;;  %vm2134_vm9 = vweird.f32 %v3095_v61 }
0x1253   :  { %vm2135_vm13 = vmor %vm2133_vm12, %vm2134_vm9 }
0x1254   :  { %v2116_v1 = vmul.f32 %v3093_v60, %v2115_v62  ;;  %v2130_v3 = vsub.f32 1.0, %v2129_v63 }
0x1256   :  { %v2117_v5 = vadd.f32 %v3093_v60, %v2116_v1  ;;  %v2131_v6 = vmul.f32 %v3095_v61, %v2130_v3 }
0x1258   :  { %v2121_v11 = vsel %vm2120_vm10, %v3093_v60, %v2117_v5  ;;  %v2132_v12 = vadd.f32 %v3095_v61, %v2131_v6 }
0x1259   :  { %v2126_v13 = vsel %vm2123_vm11, %v2125_v8, %v2121_v11 }
0x125a   :  { %v2136_v15 = vsel %vm2135_vm13, %v3095_v61, %v2132_v12  ;;  %v2127_v16 = vmul.f32 %v3089_v46, %v2126_v13 }
0x125b   :  { %v2141_v19 = vsel %vm2138_vm14, %v2140_v14, %v2136_v15  ;;  %v2956_v14 = vld [vmem:[%s4106_s8 + $0x38] sm:$0xff] }
0x125c   :  { %2924 = vmatmul.msk.f32.vlgmr.msrb.gmra.mxu1 %vm166_vm1, %v2127_v16  ;;  %v2142_v22 = vmul.f32 %v3091_v48, %v2141_v19 }
0x125d   :  { %2952 = vmatpush.xpose.msk.msrb.mxu1 %vm166_vm1, %v2286_v18  ;;  %v3023_v18 = vld [vmem:[%s4107_s9 + $0x1] ss:$0 sm:$0xff] }
0x125e   :  { %2925 = vmatmul.msk.f32.vlgmr.msra.gmra.mxu3 %vm166_vm1, %v2142_v22 }
0x1264   :  { %2934 = vmatmul.msk.f32.vlgmr.msra.gmra.mxu1 %vm74_vm0, %v3711_v52 }
0x1266   :  { %2948 = vmatmul.msk.f32.vlgmr.msrb.gmra.mxu3 %vm74_vm0, %v3711_v52 }
0x126c   :  { %2935 = vmatmul.msk.f32.gmra.mxu1 %vm74_vm0, %v3720_v50 }
0x126e   :  { %2949 = vmatmul.msk.f32.gmra.mxu3 %vm74_vm0, %v3720_v50 }
0x12d9   :  { %v2163_v23 = vpop.f32.mrf.mxu1 }
0x12da   :  { %2927 = vmatmul.msk.f32.vlgmr.msra.gmra.mxu0 %vm166_vm1, %v2163_v23 }
0x12db   :  { %2490 = vmatpush.msra.mxu0 %v2956_v14  ;;  %v2972_v14 = vld [vmem:[%s4110_s12 + $0x98] sm:$0xff] }
0x12e1   :  { %v2186_v24 = vpop.f32.mrf.mxu3  ;;  %v2249_v26 = vpop.f32.mrf.mxu1 }
0x12e2   :  { %2928 = vmatmul.msk.f32.gmra.mxu0 %vm166_vm1, %v2186_v24  ;;  %v2250_v29 = vadd.f32 %v3021_v27, %v2249_v26 }
0x12e9   :  { %v2252_v30 = vpop.f32.mrf.mxu1  ;;  %v2315_v31 = vpop.f32.mrf.mxu3 }
0x12ea   :  { %v2253_v32 = vadd.f32 %v3021_v27, %v2252_v30  ;;  %v2316_v33 = vadd.f32 %v3022_v28, %v2315_v31  ;;  %2951 = vmatmul.msk.f32.vlgmr.msrb.gmra.mxu0 %vm166_vm1, %v2250_v29 }
0x12ec   :  { %2953 = vmatmul.msk.f32.vlgmr.msrb.gmra.mxu1 %vm166_vm1, %v2253_v32  ;;  %2439 = vmatpush.msrb.mxu2 %v2316_v33 }
0x12f1   :  { %v2318_v34 = vpop.f32.mrf.mxu3 }
0x12f2   :  { %v2319_v35 = vadd.f32 %v3022_v28, %v2318_v34 }
0x12f4   :  { %2462 = vmatpush.msra.mxu3 %v2319_v35 }
0x1357   :  { %v2214_v39 = vpop.f32.mrf.mxu0 }
0x1358   :  { %v3969_v40 = vadd.f32 %v2214_v39, %v1939_v38 }
0x135f   :  { %v2217_v41 = vpop.f32.mrf.mxu0 }
0x1360   :  { %v3972_v42 = vadd.f32 %v2217_v41, %v3905_v25 }
0x1367   :  { %v2344_v43 = vpop.f32.mrf.mxu0 }
0x1368   :  { %v2373_v44 = vsel %vm166_vm1, %v2344_v43, -inf }
0x1369   :  { %v2370_v45 = vpop.f32.mrf.mxu1  ;;  %2374 = vmax.xlane.f32.xlu0 %v2373_v44  ;;  %v2963_v44 = vld [vmem:[%s4108_s10 + $0x28] sm:$0xff] }
0x136a   :  { %v2376_v46 = vsel %vm166_vm1, %v2370_v45, -inf }
0x136b   :  { %2377 = vmax.xlane.f32.xlu1 %v2376_v46 }
0x13dc   :  { %v2375_v47 = vpop.xlane.xlu0 %2374 }
0x13dd   :  { %v2379_v48 = vsub.f32 %v2344_v43, %v2375_v47  ;;  %v2964_v43 = vld [vmem:[%s4108_s10 + $0x30] sm:$0xff] }
0x13de   :  { %v2378_v49 = vpop.xlane.xlu1 %2377 }
0x13df   :  { %v2381_v51 = vmul.f32 1.442695, %v2379_v48  ;;  %v2380_v20 = vsub.f32 %v2370_v45, %v2378_v49  ;;  %v2962_v45 = vld [vmem:[%s4108_s10 + $0x20] sm:$0xff]  ;;  %v2984_v49 = vld [vmem:[%s4110_s12 + $0xf8] sm:$0xff] }
0x13e0   :  { %2630 = vmatpush.msra.mxu2 %v2984_v49 }
0x13e1   :  { %3096 = vpow2.f32 %v2381_v51  ;;  %v2383_v21 = vmul.f32 1.442695, %v2380_v20  ;;  %v2983_v51 = vld [vmem:[%s4110_s12 + $0xf0] sm:$0xff]  ;;  %v2982_v20 = vld [vmem:[%s4110_s12 + $0xe8] sm:$0xff] }
0x13e2   :  { %2631 = vmatpush.msra.mxu2 %v2983_v51 }
0x13e3   :  { %3098 = vpow2.f32 %v2383_v21 }
0x13e4   :  { %2632 = vmatpush.msra.mxu2 %v2982_v20 }
0x13e7   :  { %v3097_v54 = vpop.eup %3096 }
0x13e8   :  { %v2385_v25 = vsel %vm166_vm1, %v3097_v54, 0.0 }
0x13e9   :  { %v3099_v55 = vpop.eup %3098  ;;  %2386 = vadd.xlane.f32.xlu2 %v2385_v25  ;;  %v2981_v25 = vld [vmem:[%s4110_s12 + $0xe0] sm:$0xff] }
0x13ea   :  { %v2388_v58 = vsel %vm166_vm1, %v3099_v55, 0.0  ;;  %2633 = vmatpush.msra.mxu2 %v2981_v25 }
0x13eb   :  { %2389 = vadd.xlane.f32.xlu0 %v2388_v58 }
0x145c   :  { %v2387_v59 = vpop.xlane.xlu2 %2386 }
0x145d   :  { %3100 = vrcp.f32 %v2387_v59  ;;  %v2402_v17 = vand.u32 2147483648, %v2387_v59  ;;  %v2400_v62 = vand.u32 2147483647, %v2387_v59  ;;  %vm2396_vm2 = vweird.f32 %v2387_v59 }
0x145e   :  { %v2390_v36 = vpop.xlane.xlu0 %2389 }
0x145f   :  { %3102 = vrcp.f32 %v2390_v36  ;;  %v2417_v0 = vand.u32 2147483648, %v2390_v36  ;;  %v2415_v3 = vand.u32 2147483647, %v2390_v36  ;;  %v2403_v4 = vor.u32 1.1754944e-38, %v2402_v17 }
0x1460   :  { %vm2401_vm5 = vcmp.eq.f32.partialorder %v2400_v62, 8.507059e+37  ;;  %vm2411_vm6 = vweird.f32 %v2390_v36  ;;  %v2976_v62 = vld [vmem:[%s4110_s12 + $0xb8] sm:$0xff] }
0x1461   :  { %v2418_v8 = vor.u32 1.1754944e-38, %v2417_v0  ;;  %vm2416_vm8 = vcmp.eq.f32.partialorder %v2415_v3, 8.507059e+37 }
0x1463   :  { %v3101_v37 = vpop.eup %3100 }
0x1464   :  { %v2392_v56 = vmul.f32 %v3101_v37, %v2387_v59  ;;  %vm2397_vm15 = vweird.f32 %v3101_v37  ;;  %v2980_v59 = vld [vmem:[%s4110_s12 + $0xd8] sm:$0xff] }
0x1465   :  { %v3103_v57 = vpop.eup %3102  ;;  %vm2398_vm4 = vmor %vm2396_vm2, %vm2397_vm15  ;;  %2634 = vmatpush.msra.mxu2 %v2980_v59 }
0x1466   :  { %v2393_v53 = vsub.f32 1.0, %v2392_v56  ;;  %v2407_v60 = vmul.f32 %v3103_v57, %v2390_v36  ;;  %vm2412_vm3 = vweird.f32 %v3103_v57 }
0x1467   :  { %vm2413_vm7 = vmor %vm2411_vm6, %vm2412_vm3 }
0x1468   :  { %v2394_v61 = vmul.f32 %v3101_v37, %v2393_v53  ;;  %v2408_v63 = vsub.f32 1.0, %v2407_v60  ;;  %v2977_v60 = vld [vmem:[%s4110_s12 + $0xc0] sm:$0xff] }
0x146a   :  { %v2395_v1 = vadd.f32 %v3101_v37, %v2394_v61  ;;  %v2409_v2 = vmul.f32 %v3103_v57, %v2408_v63 }
0x146c   :  { %v2399_v5 = vsel %vm2398_vm4, %v3101_v37, %v2395_v1  ;;  %v2410_v6 = vadd.f32 %v3103_v57, %v2409_v2  ;;  %v2979_v37 = vld [vmem:[%s4110_s12 + $0xd0] sm:$0xff]  ;;  %v3024_v1 = vld [vmem:[%s4112_s14 + $0x1] ss:$0 sm:$0xff] }
0x146d   :  { %v2404_v7 = vsel %vm2401_vm5, %v2403_v4, %v2399_v5  ;;  %2635 = vmatpush.msra.mxu2 %v2979_v37  ;;  %v2975_v2 = vld [vmem:[%s4110_s12 + $0xb0] sm:$0xff]  ;;  %v3025_v5 = vld [vmem:[%s4113_s15 + $0x1] ss:$0 sm:$0xff] }
0x146e   :  { %v2414_v10 = vsel %vm2413_vm7, %v3103_v57, %v2410_v6  ;;  %v2405_v11 = vmul.f32 %v3097_v54, %v2404_v7  ;;  %v2978_v57 = vld [vmem:[%s4110_s12 + $0xc8] sm:$0xff] }
0x146f   :  { %v2419_v12 = vsel %vm2416_vm8, %v2418_v8, %v2414_v10  ;;  %2636 = vmatpush.msra.mxu2 %v2978_v57  ;;  %v2974_v7 = vld [vmem:[%s4110_s12 + $0xa8] sm:$0xff] }
0x1470   :  { %v2420_v13 = vmul.f32 %v3099_v55, %v2419_v12  ;;  %2954 = vmatmul.msk.f32.vlgmr.msrb.gmra.mxu2 %vm166_vm1, %v2405_v11  ;;  %v2973_v11 = vld [vmem:[%s4110_s12 + $0xa0] sm:$0xff] }
0x1471   :  { %2637 = vmatpush.msra.mxu2 %v2977_v60 }
0x1472   :  { %2955 = vmatmul.msk.f32.vlgmr.msra.gmra.mxu3 %vm166_vm1, %v2420_v13 }
0x1473   :  { %2638 = vmatpush.msra.mxu2 %v2976_v62 }
0x1475   :  { %2639 = vmatpush.msra.mxu2 %v2975_v2  ;;  %v3029_v2 = vld [vmem:[%s4115_s17 + $0x1] ss:$0 sm:$0xff]  ;;  %s3140_s17 = smov 128  }
0x1477   :  { %2640 = vmatpush.msra.mxu2 %v2974_v7 }
0x1479   :  { %2641 = vmatpush.msra.mxu2 %v2973_v11 }
0x147b   :  { %2642 = vmatpush.msra.mxu2 %v2972_v14 }
0x14f3   :  { %v2441_v15 = vpop.f32.mrf.mxu2 }
0x14f4   :  { %2957 = vmatmul.msk.f32.vlgmr.msra.gmra.mxu0 %vm166_vm1, %v2441_v15 }
0x14f5   :  { %v2464_v16 = vpop.f32.mrf.mxu3 }
0x14fc   :  { %2958 = vmatmul.msk.f32.gmra.mxu0 %vm166_vm1, %v2464_v16 }
0x1571   :  { %v2492_v19 = vpop.f32.mrf.mxu0 }
0x1572   :  { %v2498_v22 = vadd.f32 %v2492_v19, %v3969_v40 }
0x1574   :  { %v2505_v23 = vadd.f32 %v3023_v18, %v2498_v22 }
0x1576   :  { %v2507_v24 = vadd.f32 %v2505_v23, %v3711_v52  ;;  %v2971_v23 = vld [vmem:[%s4110_s12 + $0x90] sm:$0xff] }
0x1577   :  { %2643 = vmatpush.msra.mxu2 %v2971_v23 }
0x1578   :  { %v2513_v26 = vsel %vm74_vm0, %v2507_v24, 0.0 }
0x1579   :  { %2514 = vadd.xlane.f32.xlu1 %v2513_v26  ;;  %v2495_v27 = vpop.f32.mrf.mxu0  ;;  %v2969_v26 = vld [vmem:[%s4110_s12 + $0x80] sm:$0xff] }
0x157a   :  { %v2499_v28 = vadd.f32 %v2495_v27, %v3972_v42  ;;  %v2965_v42 = vld [vmem:[%s4108_s10 + $0x38] sm:$0xff]  ;;  %v3026_v27 = vld [vmem:[%s4109_s11 + $0x1] ss:$0 sm:$0xff] }
0x157b   :  { %2595 = vmatpush.msra.mxu1 %v2965_v42 }
0x157c   :  { %v2506_v29 = vadd.f32 %v3023_v18, %v2499_v28 }
0x157d   :  { %2596 = vmatpush.msra.mxu1 %v2964_v43 }
0x157e   :  { %v2508_v30 = vadd.f32 %v2506_v29, %v3720_v50 }
0x157f   :  { %2597 = vmatpush.msra.mxu1 %v2963_v44 }
0x1580   :  { %v2516_v31 = vsel %vm74_vm0, %v2508_v30, 0.0 }
0x1581   :  { %2517 = vadd.xlane.f32.xlu2 %v2516_v31  ;;  %2598 = vmatpush.msra.mxu1 %v2962_v45 }
0x15ec   :  { %v2515_v32 = vpop.xlane.xlu1 %2514 }
0x15ed   :  { %v2519_v33 = vmul.f32 %v2515_v32, %v3570_v9 }
0x15ef   :  { %v2521_v34 = vsub.f32 %v2507_v24, %v2519_v33  ;;  %v2970_v24 = vld [vmem:[%s4110_s12 + $0x88] sm:$0xff] }
0x15f0   :  { %2644 = vmatpush.msra.mxu2 %v2970_v24 }
0x15f1   :  { %v2523_v35 = vmul.f32 %v2521_v34, %v2521_v34 }
0x15f2   :  { %2645 = vmatpush.msra.mxu2 %v2969_v26 }
0x15f3   :  { %v2525_v38 = vsel %vm74_vm0, %v2523_v35, 0.0 }
0x15f4   :  { %2526 = vadd.xlane.f32.xlu0 %v2525_v38  ;;  %v2518_v52 = vpop.xlane.xlu2 %2517 }
0x15f5   :  { %v2520_v39 = vmul.f32 %v2518_v52, %v3570_v9 }
0x15f7   :  { %v3997_v40 = vsub.f32 %v2508_v30, %v2520_v39 }
0x15f9   :  { %v2524_v41 = vmul.f32 %v3997_v40, %v3997_v40 }
0x15fb   :  { %v2528_v50 = vsel %vm74_vm0, %v2524_v41, 0.0 }
0x15fc   :  { %2529 = vadd.xlane.f32.xlu1 %v2528_v50 }
0x1667   :  { %v2527_v46 = vpop.xlane.xlu0 %2526 }
0x1668   :  { %v2531_v47 = vmul.f32 %v2527_v46, %v3570_v9 }
0x166a   :  { %v2533_v48 = vadd.f32 1e-05, %v2531_v47 }
0x166c   :  { %3104 = vrsqrt.f32 %v2533_v48  ;;  %vm2541_vm9 = vweird.f32 %v2533_v48 }
0x166f   :  { %v2530_v21 = vpop.xlane.xlu1 %2529 }
0x1670   :  { %v2532_v54 = vmul.f32 %v2530_v21, %v3570_v9 }
0x1672   :  { %v3105_v55 = vpop.eup %3104  ;;  %v2534_v58 = vadd.f32 1e-05, %v2532_v54 }
0x1673   :  { %v2536_v36 = vmul.f32 %v3105_v55, %v2533_v48  ;;  %vm2542_vm1 = vweird.f32 %v3105_v55 }
0x1674   :  { %3106 = vrsqrt.f32 %v2534_v58  ;;  %vm2543_vm10 = vmor %vm2541_vm9, %vm2542_vm1  ;;  %vm2551_vm12 = vweird.f32 %v2534_v58 }
0x1675   :  { %v2537_v56 = vmul.f32 %v3105_v55, %v2536_v36 }
0x1677   :  { %v2538_v53 = vmul.f32 0.5, %v2537_v56 }
0x1679   :  { %v2539_v17 = vsub.f32 1.5, %v2538_v53 }
0x167a   :  { %v3107_v61 = vpop.eup %3106 }
0x167b   :  { %v2540_v63 = vmul.f32 %v3105_v55, %v2539_v17  ;;  %v2546_v0 = vmul.f32 %v3107_v61, %v2534_v58  ;;  %vm2552_vm11 = vweird.f32 %v3107_v61 }
0x167c   :  { %vm2553_vm13 = vmor %vm2551_vm12, %vm2552_vm11 }
0x167d   :  { %v2544_v3 = vsel %vm2543_vm10, %v3105_v55, %v2540_v63  ;;  %v2547_v4 = vmul.f32 %v3107_v61, %v2546_v0  ;;  %v3028_v63 = vld [vmem:[%s4114_s16 + $0x1] ss:$0 sm:$0xff]  ;;  %s3139_s16 = smov [#allocation2]  }
0x167e   :  { %v2555_v6 = vmul.f32 %v2544_v3, %v2521_v34  ;;  %v3027_v34 = vld [vmem:[%s4111_s13 + $0x1] ss:$0 sm:$0xff]  ;;  %s2719_s9 = sshll.u32 %s3139_s16, 4  ;;  %s2720_s9 = int_to_ptr.vmem [resolvable:$true] %s2719_s9 }
0x167f   :  { %v2548_v8 = vmul.f32 0.5, %v2547_v4 }
0x1680   :  { %v2560_v10 = vmul.f32 %v3024_v1, %v2555_v6 }
0x1681   :  { %v2549_v12 = vsub.f32 1.5, %v2548_v8 }
0x1682   :  { %v2565_v13 = vadd.f32 %v3025_v5, %v2560_v10 }
0x1683   :  { %v2550_v15 = vmul.f32 %v3107_v61, %v2549_v12 }
0x1684   :  { %2967 = vmatmul.msk.f32.vlgmr.msra.gmra.mxu1 %vm74_vm0, %v2565_v13 }
0x1685   :  { %v2554_v16 = vsel %vm2553_vm13, %v3107_v61, %v2550_v15 }
0x1686   :  { %v2556_v18 = vmul.f32 %v2554_v16, %v3997_v40 }
0x1688   :  { %v2561_v19 = vmul.f32 %v3024_v1, %v2556_v18 }
0x168a   :  { %v2566_v22 = vadd.f32 %v3025_v5, %v2561_v19 }
0x168c   :  { %2968 = vmatmul.msk.f32.gmra.mxu1 %vm74_vm0, %v2566_v22 }
0x1701   :  { %v2600_v28 = vpop.f32.mrf.mxu1 }
0x1702   :  { %v2601_v29 = vadd.f32 %v3026_v27, %v2600_v28 }
0x1704   :  { %v2606_v30 = vmax.f32 %v2601_v29, 0.0 }
0x1706   :  { %2646 = vmatmul.f32.vlgmr.msra.gmra.mxu2 %v2606_v30 }
0x1709   :  { %v2603_v31 = vpop.f32.mrf.mxu1 }
0x170a   :  { %v2604_v32 = vadd.f32 %v3026_v27, %v2603_v31 }
0x170c   :  { %v2607_v33 = vmax.f32 %v2604_v32, 0.0 }
0x170e   :  { %2649 = vmatmul.f32.gmra.mxu2 %v2607_v33 }
0x1789   :  { %v2647_v35 = vpop.f32.mrf.mxu2 }
0x178a   :  { %v2648_v38 = vadd.f32 %v3027_v34, %v2647_v35 }
0x178c   :  { %v2653_v52 = vadd.f32 %v2648_v38, %v2565_v13 }
0x178e   :  { %v2659_v39 = vsel %vm74_vm0, %v2653_v52, 0.0 }
0x178f   :  { %2660 = vadd.xlane.f32.xlu2 %v2659_v39 }
0x1791   :  { %v2650_v40 = vpop.f32.mrf.mxu2 }
0x1792   :  { %v2651_v41 = vadd.f32 %v3027_v34, %v2650_v40 }
0x1794   :  { %v2654_v50 = vadd.f32 %v2651_v41, %v2566_v22 }
0x1796   :  { %v2662_v42 = vsel %vm74_vm0, %v2654_v50, 0.0 }
0x1797   :  { %2663 = vadd.xlane.f32.xlu0 %v2662_v42 }
0x1802   :  { %v2661_v43 = vpop.xlane.xlu2 %2660 }
0x1803   :  { %v2665_v44 = vmul.f32 %v2661_v43, %v3570_v9 }
0x1805   :  { %v2667_v45 = vsub.f32 %v2653_v52, %v2665_v44 }
0x1807   :  { %v2669_v46 = vmul.f32 %v2667_v45, %v2667_v45 }
0x1809   :  { %v2671_v47 = vsel %vm74_vm0, %v2669_v46, 0.0 }
0x180a   :  { %v2664_v48 = vpop.xlane.xlu0 %2663  ;;  %2672 = vadd.xlane.f32.xlu1 %v2671_v47 }
0x180b   :  { %v2666_v49 = vmul.f32 %v2664_v48, %v3570_v9 }
0x180d   :  { %v2668_v51 = vsub.f32 %v2654_v50, %v2666_v49 }
0x180f   :  { %v2670_v20 = vmul.f32 %v2668_v51, %v2668_v51 }
0x1811   :  { %v2674_v21 = vsel %vm74_vm0, %v2670_v20, 0.0 }
0x1812   :  { %2675 = vadd.xlane.f32.xlu2 %v2674_v21 }
0x187d   :  { %v2673_v54 = vpop.xlane.xlu1 %2672 }
0x187e   :  { %v2677_v25 = vmul.f32 %v2673_v54, %v3570_v9 }
0x1880   :  { %v2679_v55 = vadd.f32 1e-05, %v2677_v25 }
0x1882   :  { %3108 = vrsqrt.f32 %v2679_v55  ;;  %vm2687_vm15 = vweird.f32 %v2679_v55 }
0x1885   :  { %v2676_v58 = vpop.xlane.xlu2 %2675 }
0x1886   :  { %v2678_v59 = vmul.f32 %v2676_v58, %v3570_v9 }
0x1888   :  { %v3109_v36 = vpop.eup %3108  ;;  %v2680_v37 = vadd.f32 1e-05, %v2678_v59 }
0x1889   :  { %v2682_v56 = vmul.f32 %v3109_v36, %v2679_v55  ;;  %vm2688_vm14 = vweird.f32 %v3109_v36 }
0x188a   :  { %3110 = vrsqrt.f32 %v2680_v37  ;;  %vm2689_vm2 = vmor %vm2687_vm15, %vm2688_vm14  ;;  %vm2697_vm4 = vweird.f32 %v2680_v37 }
0x188b   :  { %v2683_v57 = vmul.f32 %v3109_v36, %v2682_v56 }
0x188d   :  { %v2684_v53 = vmul.f32 0.5, %v2683_v57 }
0x188f   :  { %v2685_v60 = vsub.f32 1.5, %v2684_v53 }
0x1890   :  { %v3111_v17 = vpop.eup %3110 }
0x1891   :  { %v2686_v61 = vmul.f32 %v3109_v36, %v2685_v60  ;;  %v2692_v62 = vmul.f32 %v3111_v17, %v2680_v37  ;;  %vm2698_vm3 = vweird.f32 %v3111_v17 }
0x1892   :  { %vm2699_vm5 = vmor %vm2697_vm4, %vm2698_vm3 }
0x1893   :  { %v2690_v0 = vsel %vm2689_vm2, %v3109_v36, %v2686_v61  ;;  %v2693_v1 = vmul.f32 %v3111_v17, %v2692_v62 }
0x1894   :  { %v2701_v9 = vmul.f32 %v2690_v0, %v2667_v45 }
0x1895   :  { %v2694_v3 = vmul.f32 0.5, %v2693_v1 }
0x1896   :  { %v2706_v4 = vmul.f32 %v3028_v63, %v2701_v9 }
0x1897   :  { %v2695_v5 = vsub.f32 1.5, %v2694_v3 }
0x1898   :  { %v2711_v6 = vadd.f32 %v3029_v2, %v2706_v4 }
0x1899   :  { %v2696_v7 = vmul.f32 %v3111_v17, %v2695_v5 }
0x189a   :  { %2713 = vst.msk [vmem:[#allocation2] sm:$0xff] %vm74_vm0, %v2711_v6 }
0x189b   :  { %v2700_v8 = vsel %vm2699_vm5, %v3111_v17, %v2696_v7 }
0x189c   :  { %v2702_v10 = vmul.f32 %v2700_v8, %v2668_v51 }
0x189e   :  { %v2707_v11 = vmul.f32 %v3028_v63, %v2702_v10 }
0x18a0   :  { %v2712_v12 = vadd.f32 %v3029_v2, %v2707_v11 }
0x18a2   :  { %2714 = vst.msk [vmem:[#allocation2 + $0x8] sm:$0xff] %vm74_vm0, %v2712_v12 }
0x18a3   :  { %2727 = dma.vmem_to_hbm [thread:$0]  %s2720_s9, 256, %s2722_s22, [#allocation3], %s3140_s17, %s3140_s17, %s3141_s2  }
0x18a4   :  { %3136 = dma.done.wait [#allocation3], 256  }
0x18a5   :  { %3137 = vsyncadd [#allocation3], 4294967040 }
0x18a6   :  { %2732 = vsyncpa [#allocation3], 1 }

</bundles_post_ra>
